<compile_context>
chip_gen: v7x
topology: tpu7x:2x2x1
jax: 0.10.0
libtpu: 0.0.40
codegen_flags: <defaults>
</compile_context>

<pallas_src>
import math
import functools

import jax
import jax.numpy as jnp
from jax.experimental import pallas as pl
from jax.experimental.pallas import tpu as pltpu


_MXU_DTYPE = jnp.bfloat16  # MXU operand dtype; accumulation stays f32.


# ----------------------------- in-kernel helpers ----------------------------

def _mm(a, b):
    """MXU matmul: bf16 operands, f32 accumulation."""
    return jnp.dot(a.astype(_MXU_DTYPE), b.astype(_MXU_DTYPE),
                   preferred_element_type=jnp.float32)


def _gelu(x):
    # GPT-style tanh gelu (matches `gelu` used by MLP in the reference file)
    return 0.5 * x * (1.0 + jnp.tanh(math.sqrt(2.0 / math.pi) *
                                     (x + 0.044715 * x * x * x)))


def _ln(x, g, b):
    """Row-wise LayerNorm over last axis, eps=1e-5, biased variance (f32)."""
    mu = jnp.mean(x, axis=-1, keepdims=True)
    xc = x - mu
    var = jnp.mean(xc * xc, axis=-1, keepdims=True)
    return xc * jax.lax.rsqrt(var + 1e-5) * g + b


def _mha(q, k, v, n_head, scale=None, mask=None):
    """Multi-head softmax(q@k^T [*scale] [mask]) @ v.

    q:(Nq,D) k,v:(Nk,D) mask:(1,Nk) float {0,1}. Heads are static lane slices
    of the feature axis (no HBM transposes); returns (Nq, D).
    """
    D = q.shape[-1]
    dh = D // n_head
    outs = []
    for h in range(n_head):
        sl = slice(h * dh, (h + 1) * dh)
        qh, kh, vh = q[:, sl], k[:, sl], v[:, sl]
        w = jax.lax.dot_general(qh.astype(_MXU_DTYPE), kh.astype(_MXU_DTYPE),
                                (((1,), (1,)), ((), ())),
                                preferred_element_type=jnp.float32)   # (Nq, Nk)
        if scale is not None:
            w = w * scale
        if mask is not None:
            w = jnp.where(mask > 0.5, -10000.0, w)   # masked_fill(mask, -1e4)
        w = w - jnp.max(w, axis=-1, keepdims=True)
        e = jnp.exp(w)
        p = e * pl.reciprocal(jnp.sum(e, axis=-1, keepdims=True), approx=True)
        outs.append(jnp.dot(p.astype(_MXU_DTYPE), vh.astype(_MXU_DTYPE),
                            preferred_element_type=jnp.float32))      # (Nq, dh)
    return jnp.concatenate(outs, axis=-1)


# --------------------------------- kernels ----------------------------------

def _mem_proj_kernel(mem_ref, w_ref, b_ref, mk_ref, mv_ref):
    """memory_features @ mem_attn -> (memory_key, memory_value). Runs once."""
    D = mk_ref.shape[-1]
    kv = _mm(mem_ref[...], w_ref[...]) + b_ref[...]
    mk_ref[...] = kv[:, :D]
    mv_ref[...] = kv[:, D:]


def _self_attn_block_kernel(x_ref, g_ref, b_ref, wqkv_ref, bqkv_ref,
                            mk_ref, mv_ref, wal_ref, bal_ref,
                            wproj_ref, bproj_ref, o_ref, *, n_head):
    """a = x + Attention(ln_1(x)) for one batch element (fused)."""
    D = x_ref.shape[-1]
    x = x_ref[0]                                       # (N, D)
    h = _ln(x, g_ref[...], b_ref[...])                 # ln_1(x)
    qkv = _mm(h, wqkv_ref[...]) + bqkv_ref[...]        # (N, 3D)
    q, k, v = qkv[:, :D], qkv[:, D:2 * D], qkv[:, 2 * D:]
    a_self = _mha(q, k, v, n_head)                     # self-attn (no scale/mask)
    a_mem = _mha(q, mk_ref[...], mv_ref[...], n_head)  # memory-attn (no scale/mask)
    wal = wal_ref[...]
    alpha = jax.nn.sigmoid(_mm(a_self, wal[:D]) + _mm(a_mem, wal[D:]) + bal_ref[...])
    mixed = alpha * a_self + (1.0 - alpha) * a_mem
    o_ref[0] = x + _mm(mixed, wproj_ref[...]) + bproj_ref[...]   # fused residual


def _enc_dec_block_kernel(a_ref, enc_ref, mask_ref, g_ref, b_ref,
                          wq_ref, bq_ref, wk_ref, bk_ref, wv_ref, bv_ref,
                          wproj_ref, bproj_ref,
                          wa1_ref, ba1_ref, wa2_ref, ba2_ref,
                          o_ref, *, n_head):
    """(gate(a, enc_att1) + gate(a, enc_att2)) / sqrt(2) for one batch element."""
    D = a_ref.shape[-1]
    dh = D // n_head
    a = a_ref[0]                                       # (N, D)
    ha = _ln(a, g_ref[...], b_ref[...])                # ln_1(a) — computed ONCE
    q = _mm(ha, wq_ref[...]) + bq_ref[...]             # shared query projection
    enc_all = enc_ref[0]                               # (2, N_enc, D)
    mask = mask_ref[0]                                 # (1, N_enc)
    scale = 1.0 / math.sqrt(dh)

    def branch(e_idx, wa_ref, ba_ref):
        he = _ln(enc_all[e_idx], g_ref[...], b_ref[...])   # ln_1(enc_features[:, e])
        kk = _mm(he, wk_ref[...]) + bk_ref[...]
        vv = _mm(he, wv_ref[...]) + bv_ref[...]
        att = _mha(q, kk, vv, n_head, scale=scale, mask=mask)
        att = _mm(att, wproj_ref[...]) + bproj_ref[...]
        wa = wa_ref[...]
        alpha = jax.nn.sigmoid(_mm(a, wa[:D]) + _mm(att, wa[D:]) + ba_ref[...])
        return alpha * a + (1.0 - alpha) * att

    m1 = branch(0, wa1_ref, ba1_ref)
    m2 = branch(1, wa2_ref, ba2_ref)
    o_ref[0] = (m1 + m2) * (1.0 / math.sqrt(2.0))


def _mlp_block_kernel(a_ref, g_ref, b_ref, wfc_ref, bfc_ref,
                      wproj_ref, bproj_ref, o_ref):
    """out = a + MLP(ln_2(a)) for one batch element (fused)."""
    a = a_ref[0]
    h = _ln(a, g_ref[...], b_ref[...])
    h = _gelu(_mm(h, wfc_ref[...]) + bfc_ref[...])
    o_ref[0] = a + _mm(h, wproj_ref[...]) + bproj_ref[...]       # fused residual


# ------------------------------ spec helpers ---------------------------------

def _shared_spec(shape):
    """Whole-array block, resident across the batch grid."""
    zeros = (0,) * len(shape)
    return pl.BlockSpec(tuple(shape), lambda b: zeros)


def _batched_spec(tail):
    """(1, *tail) block selected by the batch grid index."""
    zeros = (0,) * len(tail)
    return pl.BlockSpec((1,) + tuple(tail), lambda b: (b,) + zeros)


_PARALLEL_B = pltpu.CompilerParams(dimension_semantics=("parallel",))


# ------------------------------ kernel wrappers ------------------------------

def memory_kv(p):
    """Project memory_features once (batch independent) -> (mem_k, mem_v)."""
    mem = p["memory_features"][0]                      # (M, D)
    M, D = mem.shape
    return pl.pallas_call(
        _mem_proj_kernel,
        out_shape=(jax.ShapeDtypeStruct((M, D), jnp.float32),
                   jax.ShapeDtypeStruct((M, D), jnp.float32)),
    )(mem, p["mem_attn_w"], p["mem_attn_b"].reshape(1, 2 * D))


def self_attn_block(x, p, n_head, mem_k, mem_v):
    B, N, D = x.shape
    M = mem_k.shape[0]
    kernel = functools.partial(_self_attn_block_kernel, n_head=n_head)
    return pl.pallas_call(
        kernel,
        out_shape=jax.ShapeDtypeStruct((B, N, D), jnp.float32),
        grid=(B,),
        in_specs=[
            _batched_spec((N, D)),                        # x
            _shared_spec((1, D)), _shared_spec((1, D)),   # ln_1 g, b
            _shared_spec((D, 3 * D)), _shared_spec((1, 3 * D)),   # c_attn
            _shared_spec((M, D)), _shared_spec((M, D)),   # mem_k, mem_v
            _shared_spec((2 * D, D)), _shared_spec((1, D)),       # alpha gate
            _shared_spec((D, D)), _shared_spec((1, D)),           # c_proj
        ],
        out_specs=_batched_spec((N, D)),
        compiler_params=_PARALLEL_B,
    )(x,
      p["ln1_g"].reshape(1, D), p["ln1_b"].reshape(1, D),
      p["attn_c_attn_w"], p["attn_c_attn_b"].reshape(1, 3 * D),
      mem_k, mem_v,
      p["attn_alpha_w"], p["attn_alpha_b"].reshape(1, D),
      p["attn_c_proj_w"], p["attn_c_proj_b"].reshape(1, D))


def enc_dec_block(a, enc_features, mask_f, p, n_head):
    B, N, D = a.shape
    _, E, Ne, _ = enc_features.shape                   # E == 2
    kernel = functools.partial(_enc_dec_block_kernel, n_head=n_head)
    return pl.pallas_call(
        kernel,
        out_shape=jax.ShapeDtypeStruct((B, N, D), jnp.float32),
        grid=(B,),
        in_specs=[
            _batched_spec((N, D)),                        # a
            _batched_spec((E, Ne, D)),                    # encoder features (both)
            _batched_spec((1, Ne)),                       # mask (float {0,1})
            _shared_spec((1, D)), _shared_spec((1, D)),   # ln_1 g, b (shared)
            _shared_spec((D, D)), _shared_spec((1, D)),   # fc_q
            _shared_spec((D, D)), _shared_spec((1, D)),   # fc_k
            _shared_spec((D, D)), _shared_spec((1, D)),   # fc_v
            _shared_spec((D, D)), _shared_spec((1, D)),   # c_proj
            _shared_spec((2 * D, D)), _shared_spec((1, D)),   # fc_alpha1
            _shared_spec((2 * D, D)), _shared_spec((1, D)),   # fc_alpha2
        ],
        out_specs=_batched_spec((N, D)),
        compiler_params=_PARALLEL_B,
    )(a, enc_features, mask_f,
      p["ln1_g"].reshape(1, D), p["ln1_b"].reshape(1, D),
      p["ed_fc_q_w"], p["ed_fc_q_b"].reshape(1, D),
      p["ed_fc_k_w"], p["ed_fc_k_b"].reshape(1, D),
      p["ed_fc_v_w"], p["ed_fc_v_b"].reshape(1, D),
      p["ed_c_proj_w"], p["ed_c_proj_b"].reshape(1, D),
      p["fc_alpha1_w"], p["fc_alpha1_b"].reshape(1, D),
      p["fc_alpha2_w"], p["fc_alpha2_b"].reshape(1, D))


def mlp_block(a, p):
    B, N, D = a.shape
    H4 = p["mlp_c_fc_w"].shape[-1]
    return pl.pallas_call(
        _mlp_block_kernel,
        out_shape=jax.ShapeDtypeStruct((B, N, D), jnp.float32),
        grid=(B,),
        in_specs=[
            _batched_spec((N, D)),                        # a
            _shared_spec((1, D)), _shared_spec((1, D)),   # ln_2 g, b
            _shared_spec((D, H4)), _shared_spec((1, H4)), # c_fc
            _shared_spec((H4, D)), _shared_spec((1, D)),  # c_proj
        ],
        out_specs=_batched_spec((N, D)),
        compiler_params=_PARALLEL_B,
    )(a,
      p["ln2_g"].reshape(1, D), p["ln2_b"].reshape(1, D),
      p["mlp_c_fc_w"], p["mlp_c_fc_b"].reshape(1, H4),
      p["mlp_c_proj_w"], p["mlp_c_proj_b"].reshape(1, D))


# ------------------------------ module logic ---------------------------------

def block_forward(p, x, encoder_features, mask_encoder, n_head):
    """Block.forward(x, encoder_features, mask_encoder). Dropouts = identity."""
    B, N, D = x.shape
    Ne = mask_encoder.shape[-1]

    mem_k, mem_v = memory_kv(p)                                 # once, not per batch
    a = self_attn_block(x, p, n_head, mem_k, mem_v)             # x + attn(ln1(x))
    mask_f = mask_encoder.reshape(B, 1, Ne).astype(jnp.float32)
    a2 = enc_dec_block(a, encoder_features, mask_f, p, n_head)  # gated enc-dec attn
    return mlp_block(a2, p)                                     # a2 + mlp(ln2(a2))


# ------------------------------ param init -----------------------------------

def init_params(key, n_state, n_emb, m=100):
    keys = jax.random.split(key, 16)

    def w(k, shape):
        return 0.02 * jax.random.normal(k, shape, jnp.float32)

    p = {
        "ln1_g": jnp.ones((n_emb,), jnp.float32),
        "ln1_b": jnp.zeros((n_emb,), jnp.float32),
        "ln2_g": jnp.ones((n_emb,), jnp.float32),
        "ln2_b": jnp.zeros((n_emb,), jnp.float32),
        # Attention
        "attn_c_attn_w": w(keys[0], (n_state, 3 * n_state)),
        "attn_c_attn_b": jnp.zeros((3 * n_state,), jnp.float32),
        "attn_c_proj_w": w(keys[1], (n_state, n_state)),
        "attn_c_proj_b": jnp.zeros((n_state,), jnp.float32),
        "memory_features": w(keys[2], (1, m, n_state)),
        "mem_attn_w": w(keys[3], (n_state, 2 * n_state)),
        "mem_attn_b": jnp.zeros((2 * n_state,), jnp.float32),
        "attn_alpha_w": w(keys[4], (2 * n_state, n_state)),
        "attn_alpha_b": jnp.zeros((n_state,), jnp.float32),
        # Enc_Dec_Attention (its c_attn is unused in forward)
        "ed_fc_q_w": w(keys[5], (n_state, n_emb)),
        "ed_fc_q_b": jnp.zeros((n_emb,), jnp.float32),
        "ed_fc_k_w": w(keys[6], (n_state, n_emb)),
        "ed_fc_k_b": jnp.zeros((n_emb,), jnp.float32),
        "ed_fc_v_w": w(keys[7], (n_state, n_emb)),
        "ed_fc_v_b": jnp.zeros((n_emb,), jnp.float32),
        "ed_c_proj_w": w(keys[8], (n_state, n_state)),
        "ed_c_proj_b": jnp.zeros((n_state,), jnp.float32),
        # MLP(4*n_state, n_emb)
        "mlp_c_fc_w": w(keys[9], (n_emb, 4 * n_state)),
        "mlp_c_fc_b": jnp.zeros((4 * n_state,), jnp.float32),
        "mlp_c_proj_w": w(keys[10], (4 * n_state, n_emb)),
        "mlp_c_proj_b": jnp.zeros((n_emb,), jnp.float32),
        # gating linears
        "fc_alpha1_w": w(keys[11], (2 * n_state, n_state)),
        "fc_alpha1_b": jnp.zeros((n_state,), jnp.float32),
        "fc_alpha2_w": w(keys[12], (2 * n_state, n_state)),
        "fc_alpha2_b": jnp.zeros((n_state,), jnp.float32),
    }
    return p


# ---------------------------------- main --------------------------------------

if __name__ == "__main__":
    # Small, module-consistent shapes: n_state == n_emb, head_dim = n_emb // n_head
    B, N_SEQ, N_ENC = 2, 8, 6
    N_STATE = N_EMB = 32
    N_HEAD = 4

    key = jax.random.PRNGKey(0)
    k_param, k_x, k_enc = jax.random.split(key, 3)

    params = init_params(k_param, N_STATE, N_EMB, m=100)

    x = jax.random.normal(k_x, (B, N_SEQ, N_EMB), jnp.float32)
    encoder_features = jax.random.normal(k_enc, (B, 2, N_ENC, N_EMB), jnp.float32)
    # boolean mask (True = masked out), shape (B, 1, 1, N_ENC)
    lengths = jnp.array([4, 6], jnp.int32)
    mask_encoder = (jnp.arange(N_ENC)[None, :] >= lengths[:, None]).reshape(B, 1, 1, N_ENC)

    fwd = jax.jit(functools.partial(block_forward, n_head=N_HEAD))
    out = fwd(params, x, encoder_features, mask_encoder)
    out = jax.block_until_ready(out)

    assert out.shape == (B, N_SEQ, N_EMB), out.shape
    assert bool(jnp.isfinite(out).all())
    print("KERNEL_OK")
</pallas_src>

<mosaic_0001>
module attributes {stable_mosaic.version = 11 : i64} {
  func.func @_self_attn_block_kernel(%arg0: i32, %arg1: memref<1x8x32xf32, #tpu.memory_space<vmem>>, %arg2: memref<1x32xf32, #tpu.memory_space<vmem>>, %arg3: memref<1x32xf32, #tpu.memory_space<vmem>>, %arg4: memref<32x96xf32, #tpu.memory_space<vmem>>, %arg5: memref<1x96xf32, #tpu.memory_space<vmem>>, %arg6: memref<100x32xf32, #tpu.memory_space<vmem>>, %arg7: memref<100x32xf32, #tpu.memory_space<vmem>>, %arg8: memref<64x32xf32, #tpu.memory_space<vmem>>, %arg9: memref<1x32xf32, #tpu.memory_space<vmem>>, %arg10: memref<32x32xf32, #tpu.memory_space<vmem>>, %arg11: memref<1x32xf32, #tpu.memory_space<vmem>>, %arg12: memref<1x8x32xf32, #tpu.memory_space<vmem>>) attributes {dimension_semantics = [#tpu.dimension_semantics<parallel>], iteration_bounds = array<i64: 2>, scalar_prefetch = 0 : i64, scratch_operands = 0 : i64, tpu.core_type = #tpu.core_type<tc>, window_params = [{transform_indices = @transform_0, window_bounds = array<i64: 1, 8, 32>}, {pipeline_mode = #tpu.pipeline_mode<synchronous>, transform_indices = @transform_1, window_bounds = array<i64: 1, 32>}, {pipeline_mode = #tpu.pipeline_mode<synchronous>, transform_indices = @transform_2, window_bounds = array<i64: 1, 32>}, {pipeline_mode = #tpu.pipeline_mode<synchronous>, transform_indices = @transform_3, window_bounds = array<i64: 32, 96>}, {pipeline_mode = #tpu.pipeline_mode<synchronous>, transform_indices = @transform_4, window_bounds = array<i64: 1, 96>}, {pipeline_mode = #tpu.pipeline_mode<synchronous>, transform_indices = @transform_5, window_bounds = array<i64: 100, 32>}, {pipeline_mode = #tpu.pipeline_mode<synchronous>, transform_indices = @transform_6, window_bounds = array<i64: 100, 32>}, {pipeline_mode = #tpu.pipeline_mode<synchronous>, transform_indices = @transform_7, window_bounds = array<i64: 64, 32>}, {pipeline_mode = #tpu.pipeline_mode<synchronous>, transform_indices = @transform_8, window_bounds = array<i64: 1, 32>}, {pipeline_mode = #tpu.pipeline_mode<synchronous>, transform_indices = @transform_9, window_bounds = array<i64: 32, 32>}, {pipeline_mode = #tpu.pipeline_mode<synchronous>, transform_indices = @transform_10, window_bounds = array<i64: 1, 32>}, {transform_indices = @transform_11, window_bounds = array<i64: 1, 8, 32>}]} {
    %c0 = arith.constant 0 : index
    %c0_0 = arith.constant 0 : index
    %c0_1 = arith.constant 0 : index
    %0 = vector.load %arg1[%c0, %c0_0, %c0_1] : memref<1x8x32xf32, #tpu.memory_space<vmem>>, vector<1x8x32xf32>
    %1 = vector.shape_cast %0 : vector<1x8x32xf32> to vector<8x32xf32>
    %c0_2 = arith.constant 0 : index
    %c0_3 = arith.constant 0 : index
    %2 = vector.load %arg2[%c0_2, %c0_3] : memref<1x32xf32, #tpu.memory_space<vmem>>, vector<1x32xf32>
    %c0_4 = arith.constant 0 : index
    %c0_5 = arith.constant 0 : index
    %3 = vector.load %arg3[%c0_4, %c0_5] : memref<1x32xf32, #tpu.memory_space<vmem>>, vector<1x32xf32>
    %cst = arith.constant dense<0.000000e+00> : vector<8xf32>
    %4 = vector.multi_reduction <add>, %1, %cst [1] : vector<8x32xf32> to vector<8xf32>
    %5 = vector.shape_cast %4 : vector<8xf32> to vector<8x1xf32>
    %cst_6 = arith.constant 3.200000e+01 : f32
    %6 = vector.broadcast %cst_6 : f32 to vector<8x1xf32>
    %7 = arith.divf %5, %6 : vector<8x1xf32>
    %8 = vector.broadcast %7 : vector<8x1xf32> to vector<8x32xf32>
    %9 = arith.subf %1, %8 : vector<8x32xf32>
    %10 = arith.mulf %9, %9 : vector<8x32xf32>
    %cst_7 = arith.constant dense<0.000000e+00> : vector<8xf32>
    %11 = vector.multi_reduction <add>, %10, %cst_7 [1] : vector<8x32xf32> to vector<8xf32>
    %12 = vector.shape_cast %11 : vector<8xf32> to vector<8x1xf32>
    %cst_8 = arith.constant 3.200000e+01 : f32
    %13 = vector.broadcast %cst_8 : f32 to vector<8x1xf32>
    %14 = arith.divf %12, %13 : vector<8x1xf32>
    %cst_9 = arith.constant 9.99999974E-6 : f32
    %15 = vector.broadcast %cst_9 : f32 to vector<8x1xf32>
    %16 = arith.addf %14, %15 : vector<8x1xf32>
    %17 = math.rsqrt %16 : vector<8x1xf32>
    %18 = vector.broadcast %17 : vector<8x1xf32> to vector<8x32xf32>
    %19 = arith.mulf %9, %18 : vector<8x32xf32>
    %20 = vector.broadcast %2 : vector<1x32xf32> to vector<8x32xf32>
    %21 = arith.mulf %19, %20 : vector<8x32xf32>
    %22 = vector.broadcast %3 : vector<1x32xf32> to vector<8x32xf32>
    %23 = arith.addf %21, %22 : vector<8x32xf32>
    %c0_10 = arith.constant 0 : index
    %c0_11 = arith.constant 0 : index
    %24 = vector.load %arg4[%c0_10, %c0_11] : memref<32x96xf32, #tpu.memory_space<vmem>>, vector<32x96xf32>
    %25 = arith.truncf %23 : vector<8x32xf32> to vector<8x32xbf16>
    %26 = arith.truncf %24 : vector<32x96xf32> to vector<32x96xbf16>
    %cst_12 = arith.constant dense<0.000000e+00> : vector<8x96xf32>
    %27 = tpu.matmul %25, %26, %cst_12 {dimension_numbers = #tpu.dot_dimension_numbers<[1], [0], [0], [1], [0, 0, 1, 1], [], []>} : vector<8x32xbf16>, vector<32x96xbf16>, vector<8x96xf32> -> vector<8x96xf32>
    %c0_13 = arith.constant 0 : index
    %c0_14 = arith.constant 0 : index
    %28 = vector.load %arg5[%c0_13, %c0_14] : memref<1x96xf32, #tpu.memory_space<vmem>>, vector<1x96xf32>
    %29 = vector.broadcast %28 : vector<1x96xf32> to vector<8x96xf32>
    %30 = arith.addf %27, %29 : vector<8x96xf32>
    %31 = vector.extract_strided_slice %30 {offsets = [0, 0], sizes = [8, 32], strides = [1, 1]} : vector<8x96xf32> to vector<8x32xf32>
    %32 = vector.extract_strided_slice %30 {offsets = [0, 32], sizes = [8, 32], strides = [1, 1]} : vector<8x96xf32> to vector<8x32xf32>
    %33 = vector.extract_strided_slice %30 {offsets = [0, 64], sizes = [8, 32], strides = [1, 1]} : vector<8x96xf32> to vector<8x32xf32>
    %34 = vector.extract_strided_slice %31 {offsets = [0, 0], sizes = [8, 8], strides = [1, 1]} : vector<8x32xf32> to vector<8x8xf32>
    %35 = vector.extract_strided_slice %32 {offsets = [0, 0], sizes = [8, 8], strides = [1, 1]} : vector<8x32xf32> to vector<8x8xf32>
    %36 = vector.extract_strided_slice %33 {offsets = [0, 0], sizes = [8, 8], strides = [1, 1]} : vector<8x32xf32> to vector<8x8xf32>
    %37 = arith.truncf %34 : vector<8x8xf32> to vector<8x8xbf16>
    %38 = arith.truncf %35 : vector<8x8xf32> to vector<8x8xbf16>
    %cst_15 = arith.constant dense<0.000000e+00> : vector<8x8xf32>
    %39 = tpu.matmul %37, %38, %cst_15 {dimension_numbers = #tpu.dot_dimension_numbers<[1], [1], [0], [0], [0, 0, 1, 0], [], []>} : vector<8x8xbf16>, vector<8x8xbf16>, vector<8x8xf32> -> vector<8x8xf32>
    %cst_16 = arith.constant dense<0xFF800000> : vector<8xf32>
    %40 = vector.multi_reduction <maximumf>, %39, %cst_16 [1] : vector<8x8xf32> to vector<8xf32>
    %41 = vector.shape_cast %40 : vector<8xf32> to vector<8x1xf32>
    %42 = vector.broadcast %41 : vector<8x1xf32> to vector<8x8xf32>
    %43 = arith.subf %39, %42 : vector<8x8xf32>
    %44 = math.exp %43 : vector<8x8xf32>
    %cst_17 = arith.constant dense<0.000000e+00> : vector<8xf32>
    %45 = vector.multi_reduction <add>, %44, %cst_17 [1] : vector<8x8xf32> to vector<8xf32>
    %46 = vector.shape_cast %45 : vector<8xf32> to vector<8x1xf32>
    %47 = tpu.reciprocal %46 {approx = true} : vector<8x1xf32> -> vector<8x1xf32>
    %48 = vector.broadcast %47 : vector<8x1xf32> to vector<8x8xf32>
    %49 = arith.mulf %44, %48 : vector<8x8xf32>
    %50 = arith.truncf %49 : vector<8x8xf32> to vector<8x8xbf16>
    %51 = arith.truncf %36 : vector<8x8xf32> to vector<8x8xbf16>
    %cst_18 = arith.constant dense<0.000000e+00> : vector<8x8xf32>
    %52 = tpu.matmul %50, %51, %cst_18 {dimension_numbers = #tpu.dot_dimension_numbers<[1], [0], [0], [1], [0, 0, 1, 1], [], []>} : vector<8x8xbf16>, vector<8x8xbf16>, vector<8x8xf32> -> vector<8x8xf32>
    %53 = vector.extract_strided_slice %31 {offsets = [0, 8], sizes = [8, 8], strides = [1, 1]} : vector<8x32xf32> to vector<8x8xf32>
    %54 = vector.extract_strided_slice %32 {offsets = [0, 8], sizes = [8, 8], strides = [1, 1]} : vector<8x32xf32> to vector<8x8xf32>
    %55 = vector.extract_strided_slice %33 {offsets = [0, 8], sizes = [8, 8], strides = [1, 1]} : vector<8x32xf32> to vector<8x8xf32>
    %56 = arith.truncf %53 : vector<8x8xf32> to vector<8x8xbf16>
    %57 = arith.truncf %54 : vector<8x8xf32> to vector<8x8xbf16>
    %cst_19 = arith.constant dense<0.000000e+00> : vector<8x8xf32>
    %58 = tpu.matmul %56, %57, %cst_19 {dimension_numbers = #tpu.dot_dimension_numbers<[1], [1], [0], [0], [0, 0, 1, 0], [], []>} : vector<8x8xbf16>, vector<8x8xbf16>, vector<8x8xf32> -> vector<8x8xf32>
    %cst_20 = arith.constant dense<0xFF800000> : vector<8xf32>
    %59 = vector.multi_reduction <maximumf>, %58, %cst_20 [1] : vector<8x8xf32> to vector<8xf32>
    %60 = vector.shape_cast %59 : vector<8xf32> to vector<8x1xf32>
    %61 = vector.broadcast %60 : vector<8x1xf32> to vector<8x8xf32>
    %62 = arith.subf %58, %61 : vector<8x8xf32>
    %63 = math.exp %62 : vector<8x8xf32>
    %cst_21 = arith.constant dense<0.000000e+00> : vector<8xf32>
    %64 = vector.multi_reduction <add>, %63, %cst_21 [1] : vector<8x8xf32> to vector<8xf32>
    %65 = vector.shape_cast %64 : vector<8xf32> to vector<8x1xf32>
    %66 = tpu.reciprocal %65 {approx = true} : vector<8x1xf32> -> vector<8x1xf32>
    %67 = vector.broadcast %66 : vector<8x1xf32> to vector<8x8xf32>
    %68 = arith.mulf %63, %67 : vector<8x8xf32>
    %69 = arith.truncf %68 : vector<8x8xf32> to vector<8x8xbf16>
    %70 = arith.truncf %55 : vector<8x8xf32> to vector<8x8xbf16>
    %cst_22 = arith.constant dense<0.000000e+00> : vector<8x8xf32>
    %71 = tpu.matmul %69, %70, %cst_22 {dimension_numbers = #tpu.dot_dimension_numbers<[1], [0], [0], [1], [0, 0, 1, 1], [], []>} : vector<8x8xbf16>, vector<8x8xbf16>, vector<8x8xf32> -> vector<8x8xf32>
    %72 = vector.extract_strided_slice %31 {offsets = [0, 16], sizes = [8, 8], strides = [1, 1]} : vector<8x32xf32> to vector<8x8xf32>
    %73 = vector.extract_strided_slice %32 {offsets = [0, 16], sizes = [8, 8], strides = [1, 1]} : vector<8x32xf32> to vector<8x8xf32>
    %74 = vector.extract_strided_slice %33 {offsets = [0, 16], sizes = [8, 8], strides = [1, 1]} : vector<8x32xf32> to vector<8x8xf32>
    %75 = arith.truncf %72 : vector<8x8xf32> to vector<8x8xbf16>
    %76 = arith.truncf %73 : vector<8x8xf32> to vector<8x8xbf16>
    %cst_23 = arith.constant dense<0.000000e+00> : vector<8x8xf32>
    %77 = tpu.matmul %75, %76, %cst_23 {dimension_numbers = #tpu.dot_dimension_numbers<[1], [1], [0], [0], [0, 0, 1, 0], [], []>} : vector<8x8xbf16>, vector<8x8xbf16>, vector<8x8xf32> -> vector<8x8xf32>
    %cst_24 = arith.constant dense<0xFF800000> : vector<8xf32>
    %78 = vector.multi_reduction <maximumf>, %77, %cst_24 [1] : vector<8x8xf32> to vector<8xf32>
    %79 = vector.shape_cast %78 : vector<8xf32> to vector<8x1xf32>
    %80 = vector.broadcast %79 : vector<8x1xf32> to vector<8x8xf32>
    %81 = arith.subf %77, %80 : vector<8x8xf32>
    %82 = math.exp %81 : vector<8x8xf32>
    %cst_25 = arith.constant dense<0.000000e+00> : vector<8xf32>
    %83 = vector.multi_reduction <add>, %82, %cst_25 [1] : vector<8x8xf32> to vector<8xf32>
    %84 = vector.shape_cast %83 : vector<8xf32> to vector<8x1xf32>
    %85 = tpu.reciprocal %84 {approx = true} : vector<8x1xf32> -> vector<8x1xf32>
    %86 = vector.broadcast %85 : vector<8x1xf32> to vector<8x8xf32>
    %87 = arith.mulf %82, %86 : vector<8x8xf32>
    %88 = arith.truncf %87 : vector<8x8xf32> to vector<8x8xbf16>
    %89 = arith.truncf %74 : vector<8x8xf32> to vector<8x8xbf16>
    %cst_26 = arith.constant dense<0.000000e+00> : vector<8x8xf32>
    %90 = tpu.matmul %88, %89, %cst_26 {dimension_numbers = #tpu.dot_dimension_numbers<[1], [0], [0], [1], [0, 0, 1, 1], [], []>} : vector<8x8xbf16>, vector<8x8xbf16>, vector<8x8xf32> -> vector<8x8xf32>
    %91 = vector.extract_strided_slice %31 {offsets = [0, 24], sizes = [8, 8], strides = [1, 1]} : vector<8x32xf32> to vector<8x8xf32>
    %92 = vector.extract_strided_slice %32 {offsets = [0, 24], sizes = [8, 8], strides = [1, 1]} : vector<8x32xf32> to vector<8x8xf32>
    %93 = vector.extract_strided_slice %33 {offsets = [0, 24], sizes = [8, 8], strides = [1, 1]} : vector<8x32xf32> to vector<8x8xf32>
    %94 = arith.truncf %91 : vector<8x8xf32> to vector<8x8xbf16>
    %95 = arith.truncf %92 : vector<8x8xf32> to vector<8x8xbf16>
    %cst_27 = arith.constant dense<0.000000e+00> : vector<8x8xf32>
    %96 = tpu.matmul %94, %95, %cst_27 {dimension_numbers = #tpu.dot_dimension_numbers<[1], [1], [0], [0], [0, 0, 1, 0], [], []>} : vector<8x8xbf16>, vector<8x8xbf16>, vector<8x8xf32> -> vector<8x8xf32>
    %cst_28 = arith.constant dense<0xFF800000> : vector<8xf32>
    %97 = vector.multi_reduction <maximumf>, %96, %cst_28 [1] : vector<8x8xf32> to vector<8xf32>
    %98 = vector.shape_cast %97 : vector<8xf32> to vector<8x1xf32>
    %99 = vector.broadcast %98 : vector<8x1xf32> to vector<8x8xf32>
    %100 = arith.subf %96, %99 : vector<8x8xf32>
    %101 = math.exp %100 : vector<8x8xf32>
    %cst_29 = arith.constant dense<0.000000e+00> : vector<8xf32>
    %102 = vector.multi_reduction <add>, %101, %cst_29 [1] : vector<8x8xf32> to vector<8xf32>
    %103 = vector.shape_cast %102 : vector<8xf32> to vector<8x1xf32>
    %104 = tpu.reciprocal %103 {approx = true} : vector<8x1xf32> -> vector<8x1xf32>
    %105 = vector.broadcast %104 : vector<8x1xf32> to vector<8x8xf32>
    %106 = arith.mulf %101, %105 : vector<8x8xf32>
    %107 = arith.truncf %106 : vector<8x8xf32> to vector<8x8xbf16>
    %108 = arith.truncf %93 : vector<8x8xf32> to vector<8x8xbf16>
    %cst_30 = arith.constant dense<0.000000e+00> : vector<8x8xf32>
    %109 = tpu.matmul %107, %108, %cst_30 {dimension_numbers = #tpu.dot_dimension_numbers<[1], [0], [0], [1], [0, 0, 1, 1], [], []>} : vector<8x8xbf16>, vector<8x8xbf16>, vector<8x8xf32> -> vector<8x8xf32>
    %110 = tpu.concatenate %52, %71, %90, %109 in 1 : vector<8x8xf32>, vector<8x8xf32>, vector<8x8xf32>, vector<8x8xf32> -> vector<8x32xf32>
    %c0_31 = arith.constant 0 : index
    %c0_32 = arith.constant 0 : index
    %111 = vector.load %arg6[%c0_31, %c0_32] : memref<100x32xf32, #tpu.memory_space<vmem>>, vector<100x32xf32>
    %c0_33 = arith.constant 0 : index
    %c0_34 = arith.constant 0 : index
    %112 = vector.load %arg7[%c0_33, %c0_34] : memref<100x32xf32, #tpu.memory_space<vmem>>, vector<100x32xf32>
    %113 = vector.extract_strided_slice %31 {offsets = [0, 0], sizes = [8, 8], strides = [1, 1]} : vector<8x32xf32> to vector<8x8xf32>
    %114 = vector.extract_strided_slice %111 {offsets = [0, 0], sizes = [100, 8], strides = [1, 1]} : vector<100x32xf32> to vector<100x8xf32>
    %115 = vector.extract_strided_slice %112 {offsets = [0, 0], sizes = [100, 8], strides = [1, 1]} : vector<100x32xf32> to vector<100x8xf32>
    %116 = arith.truncf %113 : vector<8x8xf32> to vector<8x8xbf16>
    %117 = arith.truncf %114 : vector<100x8xf32> to vector<100x8xbf16>
    %cst_35 = arith.constant dense<0.000000e+00> : vector<8x100xf32>
    %118 = tpu.matmul %116, %117, %cst_35 {dimension_numbers = #tpu.dot_dimension_numbers<[1], [1], [0], [0], [0, 0, 1, 0], [], []>} : vector<8x8xbf16>, vector<100x8xbf16>, vector<8x100xf32> -> vector<8x100xf32>
    %cst_36 = arith.constant dense<0xFF800000> : vector<8xf32>
    %119 = vector.multi_reduction <maximumf>, %118, %cst_36 [1] : vector<8x100xf32> to vector<8xf32>
    %120 = vector.shape_cast %119 : vector<8xf32> to vector<8x1xf32>
    %121 = vector.broadcast %120 : vector<8x1xf32> to vector<8x100xf32>
    %122 = arith.subf %118, %121 : vector<8x100xf32>
    %123 = math.exp %122 : vector<8x100xf32>
    %cst_37 = arith.constant dense<0.000000e+00> : vector<8xf32>
    %124 = vector.multi_reduction <add>, %123, %cst_37 [1] : vector<8x100xf32> to vector<8xf32>
    %125 = vector.shape_cast %124 : vector<8xf32> to vector<8x1xf32>
    %126 = tpu.reciprocal %125 {approx = true} : vector<8x1xf32> -> vector<8x1xf32>
    %127 = vector.broadcast %126 : vector<8x1xf32> to vector<8x100xf32>
    %128 = arith.mulf %123, %127 : vector<8x100xf32>
    %129 = arith.truncf %128 : vector<8x100xf32> to vector<8x100xbf16>
    %130 = arith.truncf %115 : vector<100x8xf32> to vector<100x8xbf16>
    %cst_38 = arith.constant dense<0.000000e+00> : vector<8x8xf32>
    %131 = tpu.matmul %129, %130, %cst_38 {dimension_numbers = #tpu.dot_dimension_numbers<[1], [0], [0], [1], [0, 0, 1, 1], [], []>} : vector<8x100xbf16>, vector<100x8xbf16>, vector<8x8xf32> -> vector<8x8xf32>
    %132 = vector.extract_strided_slice %31 {offsets = [0, 8], sizes = [8, 8], strides = [1, 1]} : vector<8x32xf32> to vector<8x8xf32>
    %133 = vector.extract_strided_slice %111 {offsets = [0, 8], sizes = [100, 8], strides = [1, 1]} : vector<100x32xf32> to vector<100x8xf32>
    %134 = vector.extract_strided_slice %112 {offsets = [0, 8], sizes = [100, 8], strides = [1, 1]} : vector<100x32xf32> to vector<100x8xf32>
    %135 = arith.truncf %132 : vector<8x8xf32> to vector<8x8xbf16>
    %136 = arith.truncf %133 : vector<100x8xf32> to vector<100x8xbf16>
    %cst_39 = arith.constant dense<0.000000e+00> : vector<8x100xf32>
    %137 = tpu.matmul %135, %136, %cst_39 {dimension_numbers = #tpu.dot_dimension_numbers<[1], [1], [0], [0], [0, 0, 1, 0], [], []>} : vector<8x8xbf16>, vector<100x8xbf16>, vector<8x100xf32> -> vector<8x100xf32>
    %cst_40 = arith.constant dense<0xFF800000> : vector<8xf32>
    %138 = vector.multi_reduction <maximumf>, %137, %cst_40 [1] : vector<8x100xf32> to vector<8xf32>
    %139 = vector.shape_cast %138 : vector<8xf32> to vector<8x1xf32>
    %140 = vector.broadcast %139 : vector<8x1xf32> to vector<8x100xf32>
    %141 = arith.subf %137, %140 : vector<8x100xf32>
    %142 = math.exp %141 : vector<8x100xf32>
    %cst_41 = arith.constant dense<0.000000e+00> : vector<8xf32>
    %143 = vector.multi_reduction <add>, %142, %cst_41 [1] : vector<8x100xf32> to vector<8xf32>
    %144 = vector.shape_cast %143 : vector<8xf32> to vector<8x1xf32>
    %145 = tpu.reciprocal %144 {approx = true} : vector<8x1xf32> -> vector<8x1xf32>
    %146 = vector.broadcast %145 : vector<8x1xf32> to vector<8x100xf32>
    %147 = arith.mulf %142, %146 : vector<8x100xf32>
    %148 = arith.truncf %147 : vector<8x100xf32> to vector<8x100xbf16>
    %149 = arith.truncf %134 : vector<100x8xf32> to vector<100x8xbf16>
    %cst_42 = arith.constant dense<0.000000e+00> : vector<8x8xf32>
    %150 = tpu.matmul %148, %149, %cst_42 {dimension_numbers = #tpu.dot_dimension_numbers<[1], [0], [0], [1], [0, 0, 1, 1], [], []>} : vector<8x100xbf16>, vector<100x8xbf16>, vector<8x8xf32> -> vector<8x8xf32>
    %151 = vector.extract_strided_slice %31 {offsets = [0, 16], sizes = [8, 8], strides = [1, 1]} : vector<8x32xf32> to vector<8x8xf32>
    %152 = vector.extract_strided_slice %111 {offsets = [0, 16], sizes = [100, 8], strides = [1, 1]} : vector<100x32xf32> to vector<100x8xf32>
    %153 = vector.extract_strided_slice %112 {offsets = [0, 16], sizes = [100, 8], strides = [1, 1]} : vector<100x32xf32> to vector<100x8xf32>
    %154 = arith.truncf %151 : vector<8x8xf32> to vector<8x8xbf16>
    %155 = arith.truncf %152 : vector<100x8xf32> to vector<100x8xbf16>
    %cst_43 = arith.constant dense<0.000000e+00> : vector<8x100xf32>
    %156 = tpu.matmul %154, %155, %cst_43 {dimension_numbers = #tpu.dot_dimension_numbers<[1], [1], [0], [0], [0, 0, 1, 0], [], []>} : vector<8x8xbf16>, vector<100x8xbf16>, vector<8x100xf32> -> vector<8x100xf32>
    %cst_44 = arith.constant dense<0xFF800000> : vector<8xf32>
    %157 = vector.multi_reduction <maximumf>, %156, %cst_44 [1] : vector<8x100xf32> to vector<8xf32>
    %158 = vector.shape_cast %157 : vector<8xf32> to vector<8x1xf32>
    %159 = vector.broadcast %158 : vector<8x1xf32> to vector<8x100xf32>
    %160 = arith.subf %156, %159 : vector<8x100xf32>
    %161 = math.exp %160 : vector<8x100xf32>
    %cst_45 = arith.constant dense<0.000000e+00> : vector<8xf32>
    %162 = vector.multi_reduction <add>, %161, %cst_45 [1] : vector<8x100xf32> to vector<8xf32>
    %163 = vector.shape_cast %162 : vector<8xf32> to vector<8x1xf32>
    %164 = tpu.reciprocal %163 {approx = true} : vector<8x1xf32> -> vector<8x1xf32>
    %165 = vector.broadcast %164 : vector<8x1xf32> to vector<8x100xf32>
    %166 = arith.mulf %161, %165 : vector<8x100xf32>
    %167 = arith.truncf %166 : vector<8x100xf32> to vector<8x100xbf16>
    %168 = arith.truncf %153 : vector<100x8xf32> to vector<100x8xbf16>
    %cst_46 = arith.constant dense<0.000000e+00> : vector<8x8xf32>
    %169 = tpu.matmul %167, %168, %cst_46 {dimension_numbers = #tpu.dot_dimension_numbers<[1], [0], [0], [1], [0, 0, 1, 1], [], []>} : vector<8x100xbf16>, vector<100x8xbf16>, vector<8x8xf32> -> vector<8x8xf32>
    %170 = vector.extract_strided_slice %31 {offsets = [0, 24], sizes = [8, 8], strides = [1, 1]} : vector<8x32xf32> to vector<8x8xf32>
    %171 = vector.extract_strided_slice %111 {offsets = [0, 24], sizes = [100, 8], strides = [1, 1]} : vector<100x32xf32> to vector<100x8xf32>
    %172 = vector.extract_strided_slice %112 {offsets = [0, 24], sizes = [100, 8], strides = [1, 1]} : vector<100x32xf32> to vector<100x8xf32>
    %173 = arith.truncf %170 : vector<8x8xf32> to vector<8x8xbf16>
    %174 = arith.truncf %171 : vector<100x8xf32> to vector<100x8xbf16>
    %cst_47 = arith.constant dense<0.000000e+00> : vector<8x100xf32>
    %175 = tpu.matmul %173, %174, %cst_47 {dimension_numbers = #tpu.dot_dimension_numbers<[1], [1], [0], [0], [0, 0, 1, 0], [], []>} : vector<8x8xbf16>, vector<100x8xbf16>, vector<8x100xf32> -> vector<8x100xf32>
    %cst_48 = arith.constant dense<0xFF800000> : vector<8xf32>
    %176 = vector.multi_reduction <maximumf>, %175, %cst_48 [1] : vector<8x100xf32> to vector<8xf32>
    %177 = vector.shape_cast %176 : vector<8xf32> to vector<8x1xf32>
    %178 = vector.broadcast %177 : vector<8x1xf32> to vector<8x100xf32>
    %179 = arith.subf %175, %178 : vector<8x100xf32>
    %180 = math.exp %179 : vector<8x100xf32>
    %cst_49 = arith.constant dense<0.000000e+00> : vector<8xf32>
    %181 = vector.multi_reduction <add>, %180, %cst_49 [1] : vector<8x100xf32> to vector<8xf32>
    %182 = vector.shape_cast %181 : vector<8xf32> to vector<8x1xf32>
    %183 = tpu.reciprocal %182 {approx = true} : vector<8x1xf32> -> vector<8x1xf32>
    %184 = vector.broadcast %183 : vector<8x1xf32> to vector<8x100xf32>
    %185 = arith.mulf %180, %184 : vector<8x100xf32>
    %186 = arith.truncf %185 : vector<8x100xf32> to vector<8x100xbf16>
    %187 = arith.truncf %172 : vector<100x8xf32> to vector<100x8xbf16>
    %cst_50 = arith.constant dense<0.000000e+00> : vector<8x8xf32>
    %188 = tpu.matmul %186, %187, %cst_50 {dimension_numbers = #tpu.dot_dimension_numbers<[1], [0], [0], [1], [0, 0, 1, 1], [], []>} : vector<8x100xbf16>, vector<100x8xbf16>, vector<8x8xf32> -> vector<8x8xf32>
    %189 = tpu.concatenate %131, %150, %169, %188 in 1 : vector<8x8xf32>, vector<8x8xf32>, vector<8x8xf32>, vector<8x8xf32> -> vector<8x32xf32>
    %c0_51 = arith.constant 0 : index
    %c0_52 = arith.constant 0 : index
    %190 = vector.load %arg8[%c0_51, %c0_52] : memref<64x32xf32, #tpu.memory_space<vmem>>, vector<64x32xf32>
    %191 = vector.extract_strided_slice %190 {offsets = [0, 0], sizes = [32, 32], strides = [1, 1]} : vector<64x32xf32> to vector<32x32xf32>
    %192 = arith.truncf %110 : vector<8x32xf32> to vector<8x32xbf16>
    %193 = arith.truncf %191 : vector<32x32xf32> to vector<32x32xbf16>
    %cst_53 = arith.constant dense<0.000000e+00> : vector<8x32xf32>
    %194 = tpu.matmul %192, %193, %cst_53 {dimension_numbers = #tpu.dot_dimension_numbers<[1], [0], [0], [1], [0, 0, 1, 1], [], []>} : vector<8x32xbf16>, vector<32x32xbf16>, vector<8x32xf32> -> vector<8x32xf32>
    %195 = vector.extract_strided_slice %190 {offsets = [32, 0], sizes = [32, 32], strides = [1, 1]} : vector<64x32xf32> to vector<32x32xf32>
    %196 = arith.truncf %189 : vector<8x32xf32> to vector<8x32xbf16>
    %197 = arith.truncf %195 : vector<32x32xf32> to vector<32x32xbf16>
    %cst_54 = arith.constant dense<0.000000e+00> : vector<8x32xf32>
    %198 = tpu.matmul %196, %197, %cst_54 {dimension_numbers = #tpu.dot_dimension_numbers<[1], [0], [0], [1], [0, 0, 1, 1], [], []>} : vector<8x32xbf16>, vector<32x32xbf16>, vector<8x32xf32> -> vector<8x32xf32>
    %199 = arith.addf %194, %198 : vector<8x32xf32>
    %c0_55 = arith.constant 0 : index
    %c0_56 = arith.constant 0 : index
    %200 = vector.load %arg9[%c0_55, %c0_56] : memref<1x32xf32, #tpu.memory_space<vmem>>, vector<1x32xf32>
    %201 = vector.broadcast %200 : vector<1x32xf32> to vector<8x32xf32>
    %202 = arith.addf %199, %201 : vector<8x32xf32>
    %203 = arith.negf %202 : vector<8x32xf32>
    %204 = math.exp %203 : vector<8x32xf32>
    %cst_57 = arith.constant 1.000000e+00 : f32
    %205 = vector.broadcast %cst_57 : f32 to vector<8x32xf32>
    %206 = arith.addf %205, %204 : vector<8x32xf32>
    %207 = arith.divf %205, %206 : vector<8x32xf32>
    %208 = arith.mulf %207, %110 : vector<8x32xf32>
    %cst_58 = arith.constant 1.000000e+00 : f32
    %209 = vector.broadcast %cst_58 : f32 to vector<8x32xf32>
    %210 = arith.subf %209, %207 : vector<8x32xf32>
    %211 = arith.mulf %210, %189 : vector<8x32xf32>
    %212 = arith.addf %208, %211 : vector<8x32xf32>
    %c0_59 = arith.constant 0 : index
    %c0_60 = arith.constant 0 : index
    %213 = vector.load %arg10[%c0_59, %c0_60] : memref<32x32xf32, #tpu.memory_space<vmem>>, vector<32x32xf32>
    %214 = arith.truncf %212 : vector<8x32xf32> to vector<8x32xbf16>
    %215 = arith.truncf %213 : vector<32x32xf32> to vector<32x32xbf16>
    %cst_61 = arith.constant dense<0.000000e+00> : vector<8x32xf32>
    %216 = tpu.matmul %214, %215, %cst_61 {dimension_numbers = #tpu.dot_dimension_numbers<[1], [0], [0], [1], [0, 0, 1, 1], [], []>} : vector<8x32xbf16>, vector<32x32xbf16>, vector<8x32xf32> -> vector<8x32xf32>
    %217 = arith.addf %1, %216 : vector<8x32xf32>
    %c0_62 = arith.constant 0 : index
    %c0_63 = arith.constant 0 : index
    %218 = vector.load %arg11[%c0_62, %c0_63] : memref<1x32xf32, #tpu.memory_space<vmem>>, vector<1x32xf32>
    %219 = vector.broadcast %218 : vector<1x32xf32> to vector<8x32xf32>
    %220 = arith.addf %217, %219 : vector<8x32xf32>
    %c0_64 = arith.constant 0 : index
    %c0_65 = arith.constant 0 : index
    %c0_66 = arith.constant 0 : index
    %221 = vector.load %arg12[%c0_64, %c0_65, %c0_66] : memref<1x8x32xf32, #tpu.memory_space<vmem>>, vector<1x8x32xf32>
    %222 = vector.shape_cast %221 : vector<1x8x32xf32> to vector<8x32xf32>
    %223 = vector.shape_cast %220 : vector<8x32xf32> to vector<1x8x32xf32>
    tpu.vector_store %arg12[%c0_64, %c0_65, %c0_66], %223 {strides = array<i32>} : memref<1x8x32xf32, #tpu.memory_space<vmem>>, vector<1x8x32xf32>,
    return
  }
  func.func @transform_0(%arg0: i32) -> (i32, i32, i32) {
    %c0_i32 = arith.constant 0 : i32
    %c0_i32_0 = arith.constant 0 : i32
    %c0_i32_1 = arith.constant 0 : i32
    return %arg0, %c0_i32, %c0_i32_0 : i32, i32, i32
  }
  func.func @transform_1(%arg0: i32) -> (i32, i32) {
    %c0_i32 = arith.constant 0 : i32
    %c0_i32_0 = arith.constant 0 : i32
    %c0_i32_1 = arith.constant 0 : i32
    return %c0_i32, %c0_i32_0 : i32, i32
  }
  func.func @transform_2(%arg0: i32) -> (i32, i32) {
    %c0_i32 = arith.constant 0 : i32
    %c0_i32_0 = arith.constant 0 : i32
    %c0_i32_1 = arith.constant 0 : i32
    return %c0_i32, %c0_i32_0 : i32, i32
  }
  func.func @transform_3(%arg0: i32) -> (i32, i32) {
    %c0_i32 = arith.constant 0 : i32
    %c0_i32_0 = arith.constant 0 : i32
    %c0_i32_1 = arith.constant 0 : i32
    return %c0_i32, %c0_i32_0 : i32, i32
  }
  func.func @transform_4(%arg0: i32) -> (i32, i32) {
    %c0_i32 = arith.constant 0 : i32
    %c0_i32_0 = arith.constant 0 : i32
    %c0_i32_1 = arith.constant 0 : i32
    return %c0_i32, %c0_i32_0 : i32, i32
  }
  func.func @transform_5(%arg0: i32) -> (i32, i32) {
    %c0_i32 = arith.constant 0 : i32
    %c0_i32_0 = arith.constant 0 : i32
    %c0_i32_1 = arith.constant 0 : i32
    return %c0_i32, %c0_i32_0 : i32, i32
  }
  func.func @transform_6(%arg0: i32) -> (i32, i32) {
    %c0_i32 = arith.constant 0 : i32
    %c0_i32_0 = arith.constant 0 : i32
    %c0_i32_1 = arith.constant 0 : i32
    return %c0_i32, %c0_i32_0 : i32, i32
  }
  func.func @transform_7(%arg0: i32) -> (i32, i32) {
    %c0_i32 = arith.constant 0 : i32
    %c0_i32_0 = arith.constant 0 : i32
    %c0_i32_1 = arith.constant 0 : i32
    return %c0_i32, %c0_i32_0 : i32, i32
  }
  func.func @transform_8(%arg0: i32) -> (i32, i32) {
    %c0_i32 = arith.constant 0 : i32
    %c0_i32_0 = arith.constant 0 : i32
    %c0_i32_1 = arith.constant 0 : i32
    return %c0_i32, %c0_i32_0 : i32, i32
  }
  func.func @transform_9(%arg0: i32) -> (i32, i32) {
    %c0_i32 = arith.constant 0 : i32
    %c0_i32_0 = arith.constant 0 : i32
    %c0_i32_1 = arith.constant 0 : i32
    return %c0_i32, %c0_i32_0 : i32, i32
  }
  func.func @transform_10(%arg0: i32) -> (i32, i32) {
    %c0_i32 = arith.constant 0 : i32
    %c0_i32_0 = arith.constant 0 : i32
    %c0_i32_1 = arith.constant 0 : i32
    return %c0_i32, %c0_i32_0 : i32, i32
  }
  func.func @transform_11(%arg0: i32) -> (i32, i32, i32) {
    %c0_i32 = arith.constant 0 : i32
    %c0_i32_0 = arith.constant 0 : i32
    %c0_i32_1 = arith.constant 0 : i32
    return %arg0, %c0_i32, %c0_i32_0 : i32, i32, i32
  }
}

module attributes {stable_mosaic.version = 11 : i64} {
  func.func @_mem_proj_kernel(%arg0: memref<100x32xf32, #tpu.memory_space<vmem>>, %arg1: memref<32x64xf32, #tpu.memory_space<vmem>>, %arg2: memref<1x64xf32, #tpu.memory_space<vmem>>, %arg3: memref<100x32xf32, #tpu.memory_space<vmem>>, %arg4: memref<100x32xf32, #tpu.memory_space<vmem>>) attributes {dimension_semantics = [], scalar_prefetch = 0 : i64, scratch_operands = 0 : i64, tpu.core_type = #tpu.core_type<tc>} {
    %c0 = arith.constant 0 : index
    %c0_0 = arith.constant 0 : index
    %0 = vector.load %arg0[%c0, %c0_0] : memref<100x32xf32, #tpu.memory_space<vmem>>, vector<100x32xf32>
    %c0_1 = arith.constant 0 : index
    %c0_2 = arith.constant 0 : index
    %1 = vector.load %arg1[%c0_1, %c0_2] : memref<32x64xf32, #tpu.memory_space<vmem>>, vector<32x64xf32>
    %2 = arith.truncf %0 : vector<100x32xf32> to vector<100x32xbf16>
    %3 = arith.truncf %1 : vector<32x64xf32> to vector<32x64xbf16>
    %cst = arith.constant dense<0.000000e+00> : vector<100x64xf32>
    %4 = tpu.matmul %2, %3, %cst {dimension_numbers = #tpu.dot_dimension_numbers<[1], [0], [0], [1], [0, 0, 1, 1], [], []>} : vector<100x32xbf16>, vector<32x64xbf16>, vector<100x64xf32> -> vector<100x64xf32>
    %c0_3 = arith.constant 0 : index
    %c0_4 = arith.constant 0 : index
    %5 = vector.load %arg2[%c0_3, %c0_4] : memref<1x64xf32, #tpu.memory_space<vmem>>, vector<1x64xf32>
    %6 = vector.broadcast %5 : vector<1x64xf32> to vector<100x64xf32>
    %7 = arith.addf %4, %6 : vector<100x64xf32>
    %8 = vector.extract_strided_slice %7 {offsets = [0, 0], sizes = [100, 32], strides = [1, 1]} : vector<100x64xf32> to vector<100x32xf32>
    %c0_5 = arith.constant 0 : index
    %c0_6 = arith.constant 0 : index
    %9 = vector.load %arg3[%c0_5, %c0_6] : memref<100x32xf32, #tpu.memory_space<vmem>>, vector<100x32xf32>
    tpu.vector_store %arg3[%c0_5, %c0_6], %8 {strides = array<i32>} : memref<100x32xf32, #tpu.memory_space<vmem>>, vector<100x32xf32>,
    %10 = vector.extract_strided_slice %7 {offsets = [0, 32], sizes = [100, 32], strides = [1, 1]} : vector<100x64xf32> to vector<100x32xf32>
    %c0_7 = arith.constant 0 : index
    %c0_8 = arith.constant 0 : index
    %11 = vector.load %arg4[%c0_7, %c0_8] : memref<100x32xf32, #tpu.memory_space<vmem>>, vector<100x32xf32>
    tpu.vector_store %arg4[%c0_7, %c0_8], %10 {strides = array<i32>} : memref<100x32xf32, #tpu.memory_space<vmem>>, vector<100x32xf32>,
    return
  }
}

module attributes {stable_mosaic.version = 11 : i64} {
  func.func @_mlp_block_kernel(%arg0: i32, %arg1: memref<1x8x32xf32, #tpu.memory_space<vmem>>, %arg2: memref<1x32xf32, #tpu.memory_space<vmem>>, %arg3: memref<1x32xf32, #tpu.memory_space<vmem>>, %arg4: memref<32x128xf32, #tpu.memory_space<vmem>>, %arg5: memref<1x128xf32, #tpu.memory_space<vmem>>, %arg6: memref<128x32xf32, #tpu.memory_space<vmem>>, %arg7: memref<1x32xf32, #tpu.memory_space<vmem>>, %arg8: memref<1x8x32xf32, #tpu.memory_space<vmem>>) attributes {dimension_semantics = [#tpu.dimension_semantics<parallel>], iteration_bounds = array<i64: 2>, scalar_prefetch = 0 : i64, scratch_operands = 0 : i64, tpu.core_type = #tpu.core_type<tc>, window_params = [{transform_indices = @transform_0, window_bounds = array<i64: 1, 8, 32>}, {pipeline_mode = #tpu.pipeline_mode<synchronous>, transform_indices = @transform_1, window_bounds = array<i64: 1, 32>}, {pipeline_mode = #tpu.pipeline_mode<synchronous>, transform_indices = @transform_2, window_bounds = array<i64: 1, 32>}, {pipeline_mode = #tpu.pipeline_mode<synchronous>, transform_indices = @transform_3, window_bounds = array<i64: 32, 128>}, {pipeline_mode = #tpu.pipeline_mode<synchronous>, transform_indices = @transform_4, window_bounds = array<i64: 1, 128>}, {pipeline_mode = #tpu.pipeline_mode<synchronous>, transform_indices = @transform_5, window_bounds = array<i64: 128, 32>}, {pipeline_mode = #tpu.pipeline_mode<synchronous>, transform_indices = @transform_6, window_bounds = array<i64: 1, 32>}, {transform_indices = @transform_7, window_bounds = array<i64: 1, 8, 32>}]} {
    %c0 = arith.constant 0 : index
    %c0_0 = arith.constant 0 : index
    %c0_1 = arith.constant 0 : index
    %0 = vector.load %arg1[%c0, %c0_0, %c0_1] : memref<1x8x32xf32, #tpu.memory_space<vmem>>, vector<1x8x32xf32>
    %1 = vector.shape_cast %0 : vector<1x8x32xf32> to vector<8x32xf32>
    %c0_2 = arith.constant 0 : index
    %c0_3 = arith.constant 0 : index
    %2 = vector.load %arg2[%c0_2, %c0_3] : memref<1x32xf32, #tpu.memory_space<vmem>>, vector<1x32xf32>
    %c0_4 = arith.constant 0 : index
    %c0_5 = arith.constant 0 : index
    %3 = vector.load %arg3[%c0_4, %c0_5] : memref<1x32xf32, #tpu.memory_space<vmem>>, vector<1x32xf32>
    %cst = arith.constant dense<0.000000e+00> : vector<8xf32>
    %4 = vector.multi_reduction <add>, %1, %cst [1] : vector<8x32xf32> to vector<8xf32>
    %5 = vector.shape_cast %4 : vector<8xf32> to vector<8x1xf32>
    %cst_6 = arith.constant 3.200000e+01 : f32
    %6 = vector.broadcast %cst_6 : f32 to vector<8x1xf32>
    %7 = arith.divf %5, %6 : vector<8x1xf32>
    %8 = vector.broadcast %7 : vector<8x1xf32> to vector<8x32xf32>
    %9 = arith.subf %1, %8 : vector<8x32xf32>
    %10 = arith.mulf %9, %9 : vector<8x32xf32>
    %cst_7 = arith.constant dense<0.000000e+00> : vector<8xf32>
    %11 = vector.multi_reduction <add>, %10, %cst_7 [1] : vector<8x32xf32> to vector<8xf32>
    %12 = vector.shape_cast %11 : vector<8xf32> to vector<8x1xf32>
    %cst_8 = arith.constant 3.200000e+01 : f32
    %13 = vector.broadcast %cst_8 : f32 to vector<8x1xf32>
    %14 = arith.divf %12, %13 : vector<8x1xf32>
    %cst_9 = arith.constant 9.99999974E-6 : f32
    %15 = vector.broadcast %cst_9 : f32 to vector<8x1xf32>
    %16 = arith.addf %14, %15 : vector<8x1xf32>
    %17 = math.rsqrt %16 : vector<8x1xf32>
    %18 = vector.broadcast %17 : vector<8x1xf32> to vector<8x32xf32>
    %19 = arith.mulf %9, %18 : vector<8x32xf32>
    %20 = vector.broadcast %2 : vector<1x32xf32> to vector<8x32xf32>
    %21 = arith.mulf %19, %20 : vector<8x32xf32>
    %22 = vector.broadcast %3 : vector<1x32xf32> to vector<8x32xf32>
    %23 = arith.addf %21, %22 : vector<8x32xf32>
    %c0_10 = arith.constant 0 : index
    %c0_11 = arith.constant 0 : index
    %24 = vector.load %arg4[%c0_10, %c0_11] : memref<32x128xf32, #tpu.memory_space<vmem>>, vector<32x128xf32>
    %25 = arith.truncf %23 : vector<8x32xf32> to vector<8x32xbf16>
    %26 = arith.truncf %24 : vector<32x128xf32> to vector<32x128xbf16>
    %cst_12 = arith.constant dense<0.000000e+00> : vector<8x128xf32>
    %27 = tpu.matmul %25, %26, %cst_12 {dimension_numbers = #tpu.dot_dimension_numbers<[1], [0], [0], [1], [0, 0, 1, 1], [], []>} : vector<8x32xbf16>, vector<32x128xbf16>, vector<8x128xf32> -> vector<8x128xf32>
    %c0_13 = arith.constant 0 : index
    %c0_14 = arith.constant 0 : index
    %28 = vector.load %arg5[%c0_13, %c0_14] : memref<1x128xf32, #tpu.memory_space<vmem>>, vector<1x128xf32>
    %29 = vector.broadcast %28 : vector<1x128xf32> to vector<8x128xf32>
    %30 = arith.addf %27, %29 : vector<8x128xf32>
    %cst_15 = arith.constant 5.000000e-01 : f32
    %31 = vector.broadcast %cst_15 : f32 to vector<8x128xf32>
    %32 = arith.mulf %31, %30 : vector<8x128xf32>
    %cst_16 = arith.constant 4.471500e-02 : f32
    %33 = vector.broadcast %cst_16 : f32 to vector<8x128xf32>
    %34 = arith.mulf %33, %30 : vector<8x128xf32>
    %35 = arith.mulf %34, %30 : vector<8x128xf32>
    %36 = arith.mulf %35, %30 : vector<8x128xf32>
    %37 = arith.addf %30, %36 : vector<8x128xf32>
    %cst_17 = arith.constant 0.797884583 : f32
    %38 = vector.broadcast %cst_17 : f32 to vector<8x128xf32>
    %39 = arith.mulf %38, %37 : vector<8x128xf32>
    %40 = math.tanh %39 : vector<8x128xf32>
    %cst_18 = arith.constant 1.000000e+00 : f32
    %41 = vector.broadcast %cst_18 : f32 to vector<8x128xf32>
    %42 = arith.addf %41, %40 : vector<8x128xf32>
    %43 = arith.mulf %32, %42 : vector<8x128xf32>
    %c0_19 = arith.constant 0 : index
    %c0_20 = arith.constant 0 : index
    %44 = vector.load %arg6[%c0_19, %c0_20] : memref<128x32xf32, #tpu.memory_space<vmem>>, vector<128x32xf32>
    %45 = arith.truncf %43 : vector<8x128xf32> to vector<8x128xbf16>
    %46 = arith.truncf %44 : vector<128x32xf32> to vector<128x32xbf16>
    %cst_21 = arith.constant dense<0.000000e+00> : vector<8x32xf32>
    %47 = tpu.matmul %45, %46, %cst_21 {dimension_numbers = #tpu.dot_dimension_numbers<[1], [0], [0], [1], [0, 0, 1, 1], [], []>} : vector<8x128xbf16>, vector<128x32xbf16>, vector<8x32xf32> -> vector<8x32xf32>
    %48 = arith.addf %1, %47 : vector<8x32xf32>
    %c0_22 = arith.constant 0 : index
    %c0_23 = arith.constant 0 : index
    %49 = vector.load %arg7[%c0_22, %c0_23] : memref<1x32xf32, #tpu.memory_space<vmem>>, vector<1x32xf32>
    %50 = vector.broadcast %49 : vector<1x32xf32> to vector<8x32xf32>
    %51 = arith.addf %48, %50 : vector<8x32xf32>
    %c0_24 = arith.constant 0 : index
    %c0_25 = arith.constant 0 : index
    %c0_26 = arith.constant 0 : index
    %52 = vector.load %arg8[%c0_24, %c0_25, %c0_26] : memref<1x8x32xf32, #tpu.memory_space<vmem>>, vector<1x8x32xf32>
    %53 = vector.shape_cast %52 : vector<1x8x32xf32> to vector<8x32xf32>
    %54 = vector.shape_cast %51 : vector<8x32xf32> to vector<1x8x32xf32>
    tpu.vector_store %arg8[%c0_24, %c0_25, %c0_26], %54 {strides = array<i32>} : memref<1x8x32xf32, #tpu.memory_space<vmem>>, vector<1x8x32xf32>,
    return
  }
  func.func @transform_0(%arg0: i32) -> (i32, i32, i32) {
    %c0_i32 = arith.constant 0 : i32
    %c0_i32_0 = arith.constant 0 : i32
    %c0_i32_1 = arith.constant 0 : i32
    return %arg0, %c0_i32, %c0_i32_0 : i32, i32, i32
  }
  func.func @transform_1(%arg0: i32) -> (i32, i32) {
    %c0_i32 = arith.constant 0 : i32
    %c0_i32_0 = arith.constant 0 : i32
    %c0_i32_1 = arith.constant 0 : i32
    return %c0_i32, %c0_i32_0 : i32, i32
  }
  func.func @transform_2(%arg0: i32) -> (i32, i32) {
    %c0_i32 = arith.constant 0 : i32
    %c0_i32_0 = arith.constant 0 : i32
    %c0_i32_1 = arith.constant 0 : i32
    return %c0_i32, %c0_i32_0 : i32, i32
  }
  func.func @transform_3(%arg0: i32) -> (i32, i32) {
    %c0_i32 = arith.constant 0 : i32
    %c0_i32_0 = arith.constant 0 : i32
    %c0_i32_1 = arith.constant 0 : i32
    return %c0_i32, %c0_i32_0 : i32, i32
  }
  func.func @transform_4(%arg0: i32) -> (i32, i32) {
    %c0_i32 = arith.constant 0 : i32
    %c0_i32_0 = arith.constant 0 : i32
    %c0_i32_1 = arith.constant 0 : i32
    return %c0_i32, %c0_i32_0 : i32, i32
  }
  func.func @transform_5(%arg0: i32) -> (i32, i32) {
    %c0_i32 = arith.constant 0 : i32
    %c0_i32_0 = arith.constant 0 : i32
    %c0_i32_1 = arith.constant 0 : i32
    return %c0_i32, %c0_i32_0 : i32, i32
  }
  func.func @transform_6(%arg0: i32) -> (i32, i32) {
    %c0_i32 = arith.constant 0 : i32
    %c0_i32_0 = arith.constant 0 : i32
    %c0_i32_1 = arith.constant 0 : i32
    return %c0_i32, %c0_i32_0 : i32, i32
  }
  func.func @transform_7(%arg0: i32) -> (i32, i32, i32) {
    %c0_i32 = arith.constant 0 : i32
    %c0_i32_0 = arith.constant 0 : i32
    %c0_i32_1 = arith.constant 0 : i32
    return %arg0, %c0_i32, %c0_i32_0 : i32, i32, i32
  }
}

module attributes {stable_mosaic.version = 11 : i64} {
  func.func @_enc_dec_block_kernel(%arg0: i32, %arg1: memref<1x8x32xf32, #tpu.memory_space<vmem>>, %arg2: memref<1x2x6x32xf32, #tpu.memory_space<vmem>>, %arg3: memref<1x1x6xf32, #tpu.memory_space<vmem>>, %arg4: memref<1x32xf32, #tpu.memory_space<vmem>>, %arg5: memref<1x32xf32, #tpu.memory_space<vmem>>, %arg6: memref<32x32xf32, #tpu.memory_space<vmem>>, %arg7: memref<1x32xf32, #tpu.memory_space<vmem>>, %arg8: memref<32x32xf32, #tpu.memory_space<vmem>>, %arg9: memref<1x32xf32, #tpu.memory_space<vmem>>, %arg10: memref<32x32xf32, #tpu.memory_space<vmem>>, %arg11: memref<1x32xf32, #tpu.memory_space<vmem>>, %arg12: memref<32x32xf32, #tpu.memory_space<vmem>>, %arg13: memref<1x32xf32, #tpu.memory_space<vmem>>, %arg14: memref<64x32xf32, #tpu.memory_space<vmem>>, %arg15: memref<1x32xf32, #tpu.memory_space<vmem>>, %arg16: memref<64x32xf32, #tpu.memory_space<vmem>>, %arg17: memref<1x32xf32, #tpu.memory_space<vmem>>, %arg18: memref<1x8x32xf32, #tpu.memory_space<vmem>>) attributes {dimension_semantics = [#tpu.dimension_semantics<parallel>], iteration_bounds = array<i64: 2>, scalar_prefetch = 0 : i64, scratch_operands = 0 : i64, tpu.core_type = #tpu.core_type<tc>, window_params = [{transform_indices = @transform_0, window_bounds = array<i64: 1, 8, 32>}, {transform_indices = @transform_1, window_bounds = array<i64: 1, 2, 6, 32>}, {transform_indices = @transform_2, window_bounds = array<i64: 1, 1, 6>}, {pipeline_mode = #tpu.pipeline_mode<synchronous>, transform_indices = @transform_3, window_bounds = array<i64: 1, 32>}, {pipeline_mode = #tpu.pipeline_mode<synchronous>, transform_indices = @transform_4, window_bounds = array<i64: 1, 32>}, {pipeline_mode = #tpu.pipeline_mode<synchronous>, transform_indices = @transform_5, window_bounds = array<i64: 32, 32>}, {pipeline_mode = #tpu.pipeline_mode<synchronous>, transform_indices = @transform_6, window_bounds = array<i64: 1, 32>}, {pipeline_mode = #tpu.pipeline_mode<synchronous>, transform_indices = @transform_7, window_bounds = array<i64: 32, 32>}, {pipeline_mode = #tpu.pipeline_mode<synchronous>, transform_indices = @transform_8, window_bounds = array<i64: 1, 32>}, {pipeline_mode = #tpu.pipeline_mode<synchronous>, transform_indices = @transform_9, window_bounds = array<i64: 32, 32>}, {pipeline_mode = #tpu.pipeline_mode<synchronous>, transform_indices = @transform_10, window_bounds = array<i64: 1, 32>}, {pipeline_mode = #tpu.pipeline_mode<synchronous>, transform_indices = @transform_11, window_bounds = array<i64: 32, 32>}, {pipeline_mode = #tpu.pipeline_mode<synchronous>, transform_indices = @transform_12, window_bounds = array<i64: 1, 32>}, {pipeline_mode = #tpu.pipeline_mode<synchronous>, transform_indices = @transform_13, window_bounds = array<i64: 64, 32>}, {pipeline_mode = #tpu.pipeline_mode<synchronous>, transform_indices = @transform_14, window_bounds = array<i64: 1, 32>}, {pipeline_mode = #tpu.pipeline_mode<synchronous>, transform_indices = @transform_15, window_bounds = array<i64: 64, 32>}, {pipeline_mode = #tpu.pipeline_mode<synchronous>, transform_indices = @transform_16, window_bounds = array<i64: 1, 32>}, {transform_indices = @transform_17, window_bounds = array<i64: 1, 8, 32>}]} {
    %c0 = arith.constant 0 : index
    %c0_0 = arith.constant 0 : index
    %c0_1 = arith.constant 0 : index
    %0 = vector.load %arg1[%c0, %c0_0, %c0_1] : memref<1x8x32xf32, #tpu.memory_space<vmem>>, vector<1x8x32xf32>
    %1 = vector.shape_cast %0 : vector<1x8x32xf32> to vector<8x32xf32>
    %c0_2 = arith.constant 0 : index
    %c0_3 = arith.constant 0 : index
    %2 = vector.load %arg4[%c0_2, %c0_3] : memref<1x32xf32, #tpu.memory_space<vmem>>, vector<1x32xf32>
    %c0_4 = arith.constant 0 : index
    %c0_5 = arith.constant 0 : index
    %3 = vector.load %arg5[%c0_4, %c0_5] : memref<1x32xf32, #tpu.memory_space<vmem>>, vector<1x32xf32>
    %cst = arith.constant dense<0.000000e+00> : vector<8xf32>
    %4 = vector.multi_reduction <add>, %1, %cst [1] : vector<8x32xf32> to vector<8xf32>
    %5 = vector.shape_cast %4 : vector<8xf32> to vector<8x1xf32>
    %cst_6 = arith.constant 3.200000e+01 : f32
    %6 = vector.broadcast %cst_6 : f32 to vector<8x1xf32>
    %7 = arith.divf %5, %6 : vector<8x1xf32>
    %8 = vector.broadcast %7 : vector<8x1xf32> to vector<8x32xf32>
    %9 = arith.subf %1, %8 : vector<8x32xf32>
    %10 = arith.mulf %9, %9 : vector<8x32xf32>
    %cst_7 = arith.constant dense<0.000000e+00> : vector<8xf32>
    %11 = vector.multi_reduction <add>, %10, %cst_7 [1] : vector<8x32xf32> to vector<8xf32>
    %12 = vector.shape_cast %11 : vector<8xf32> to vector<8x1xf32>
    %cst_8 = arith.constant 3.200000e+01 : f32
    %13 = vector.broadcast %cst_8 : f32 to vector<8x1xf32>
    %14 = arith.divf %12, %13 : vector<8x1xf32>
    %cst_9 = arith.constant 9.99999974E-6 : f32
    %15 = vector.broadcast %cst_9 : f32 to vector<8x1xf32>
    %16 = arith.addf %14, %15 : vector<8x1xf32>
    %17 = math.rsqrt %16 : vector<8x1xf32>
    %18 = vector.broadcast %17 : vector<8x1xf32> to vector<8x32xf32>
    %19 = arith.mulf %9, %18 : vector<8x32xf32>
    %20 = vector.broadcast %2 : vector<1x32xf32> to vector<8x32xf32>
    %21 = arith.mulf %19, %20 : vector<8x32xf32>
    %22 = vector.broadcast %3 : vector<1x32xf32> to vector<8x32xf32>
    %23 = arith.addf %21, %22 : vector<8x32xf32>
    %c0_10 = arith.constant 0 : index
    %c0_11 = arith.constant 0 : index
    %24 = vector.load %arg6[%c0_10, %c0_11] : memref<32x32xf32, #tpu.memory_space<vmem>>, vector<32x32xf32>
    %25 = arith.truncf %23 : vector<8x32xf32> to vector<8x32xbf16>
    %26 = arith.truncf %24 : vector<32x32xf32> to vector<32x32xbf16>
    %cst_12 = arith.constant dense<0.000000e+00> : vector<8x32xf32>
    %27 = tpu.matmul %25, %26, %cst_12 {dimension_numbers = #tpu.dot_dimension_numbers<[1], [0], [0], [1], [0, 0, 1, 1], [], []>} : vector<8x32xbf16>, vector<32x32xbf16>, vector<8x32xf32> -> vector<8x32xf32>
    %c0_13 = arith.constant 0 : index
    %c0_14 = arith.constant 0 : index
    %28 = vector.load %arg7[%c0_13, %c0_14] : memref<1x32xf32, #tpu.memory_space<vmem>>, vector<1x32xf32>
    %29 = vector.broadcast %28 : vector<1x32xf32> to vector<8x32xf32>
    %30 = arith.addf %27, %29 : vector<8x32xf32>
    %c0_15 = arith.constant 0 : index
    %c0_16 = arith.constant 0 : index
    %c0_17 = arith.constant 0 : index
    %c0_18 = arith.constant 0 : index
    %31 = vector.load %arg2[%c0_15, %c0_16, %c0_17, %c0_18] : memref<1x2x6x32xf32, #tpu.memory_space<vmem>>, vector<1x2x6x32xf32>
    %32 = vector.shape_cast %31 : vector<1x2x6x32xf32> to vector<2x6x32xf32>
    %c0_19 = arith.constant 0 : index
    %c0_20 = arith.constant 0 : index
    %c0_21 = arith.constant 0 : index
    %33 = vector.load %arg3[%c0_19, %c0_20, %c0_21] : memref<1x1x6xf32, #tpu.memory_space<vmem>>, vector<1x1x6xf32>
    %34 = vector.shape_cast %33 : vector<1x1x6xf32> to vector<1x6xf32>
    %35 = vector.extract_strided_slice %32 {offsets = [0, 0, 0], sizes = [1, 6, 32], strides = [1, 1, 1]} : vector<2x6x32xf32> to vector<1x6x32xf32>
    %36 = vector.shape_cast %35 : vector<1x6x32xf32> to vector<6x32xf32>
    %c0_22 = arith.constant 0 : index
    %c0_23 = arith.constant 0 : index
    %37 = vector.load %arg4[%c0_22, %c0_23] : memref<1x32xf32, #tpu.memory_space<vmem>>, vector<1x32xf32>
    %c0_24 = arith.constant 0 : index
    %c0_25 = arith.constant 0 : index
    %38 = vector.load %arg5[%c0_24, %c0_25] : memref<1x32xf32, #tpu.memory_space<vmem>>, vector<1x32xf32>
    %cst_26 = arith.constant dense<0.000000e+00> : vector<6xf32>
    %39 = vector.multi_reduction <add>, %36, %cst_26 [1] : vector<6x32xf32> to vector<6xf32>
    %40 = vector.shape_cast %39 : vector<6xf32> to vector<6x1xf32>
    %cst_27 = arith.constant 3.200000e+01 : f32
    %41 = vector.broadcast %cst_27 : f32 to vector<6x1xf32>
    %42 = arith.divf %40, %41 : vector<6x1xf32>
    %43 = vector.broadcast %42 : vector<6x1xf32> to vector<6x32xf32>
    %44 = arith.subf %36, %43 : vector<6x32xf32>
    %45 = arith.mulf %44, %44 : vector<6x32xf32>
    %cst_28 = arith.constant dense<0.000000e+00> : vector<6xf32>
    %46 = vector.multi_reduction <add>, %45, %cst_28 [1] : vector<6x32xf32> to vector<6xf32>
    %47 = vector.shape_cast %46 : vector<6xf32> to vector<6x1xf32>
    %cst_29 = arith.constant 3.200000e+01 : f32
    %48 = vector.broadcast %cst_29 : f32 to vector<6x1xf32>
    %49 = arith.divf %47, %48 : vector<6x1xf32>
    %cst_30 = arith.constant 9.99999974E-6 : f32
    %50 = vector.broadcast %cst_30 : f32 to vector<6x1xf32>
    %51 = arith.addf %49, %50 : vector<6x1xf32>
    %52 = math.rsqrt %51 : vector<6x1xf32>
    %53 = vector.broadcast %52 : vector<6x1xf32> to vector<6x32xf32>
    %54 = arith.mulf %44, %53 : vector<6x32xf32>
    %55 = vector.broadcast %37 : vector<1x32xf32> to vector<6x32xf32>
    %56 = arith.mulf %54, %55 : vector<6x32xf32>
    %57 = vector.broadcast %38 : vector<1x32xf32> to vector<6x32xf32>
    %58 = arith.addf %56, %57 : vector<6x32xf32>
    %c0_31 = arith.constant 0 : index
    %c0_32 = arith.constant 0 : index
    %59 = vector.load %arg8[%c0_31, %c0_32] : memref<32x32xf32, #tpu.memory_space<vmem>>, vector<32x32xf32>
    %60 = arith.truncf %58 : vector<6x32xf32> to vector<6x32xbf16>
    %61 = arith.truncf %59 : vector<32x32xf32> to vector<32x32xbf16>
    %cst_33 = arith.constant dense<0.000000e+00> : vector<6x32xf32>
    %62 = tpu.matmul %60, %61, %cst_33 {dimension_numbers = #tpu.dot_dimension_numbers<[1], [0], [0], [1], [0, 0, 1, 1], [], []>} : vector<6x32xbf16>, vector<32x32xbf16>, vector<6x32xf32> -> vector<6x32xf32>
    %c0_34 = arith.constant 0 : index
    %c0_35 = arith.constant 0 : index
    %63 = vector.load %arg9[%c0_34, %c0_35] : memref<1x32xf32, #tpu.memory_space<vmem>>, vector<1x32xf32>
    %64 = vector.broadcast %63 : vector<1x32xf32> to vector<6x32xf32>
    %65 = arith.addf %62, %64 : vector<6x32xf32>
    %c0_36 = arith.constant 0 : index
    %c0_37 = arith.constant 0 : index
    %66 = vector.load %arg10[%c0_36, %c0_37] : memref<32x32xf32, #tpu.memory_space<vmem>>, vector<32x32xf32>
    %67 = arith.truncf %58 : vector<6x32xf32> to vector<6x32xbf16>
    %68 = arith.truncf %66 : vector<32x32xf32> to vector<32x32xbf16>
    %cst_38 = arith.constant dense<0.000000e+00> : vector<6x32xf32>
    %69 = tpu.matmul %67, %68, %cst_38 {dimension_numbers = #tpu.dot_dimension_numbers<[1], [0], [0], [1], [0, 0, 1, 1], [], []>} : vector<6x32xbf16>, vector<32x32xbf16>, vector<6x32xf32> -> vector<6x32xf32>
    %c0_39 = arith.constant 0 : index
    %c0_40 = arith.constant 0 : index
    %70 = vector.load %arg11[%c0_39, %c0_40] : memref<1x32xf32, #tpu.memory_space<vmem>>, vector<1x32xf32>
    %71 = vector.broadcast %70 : vector<1x32xf32> to vector<6x32xf32>
    %72 = arith.addf %69, %71 : vector<6x32xf32>
    %73 = vector.extract_strided_slice %30 {offsets = [0, 0], sizes = [8, 8], strides = [1, 1]} : vector<8x32xf32> to vector<8x8xf32>
    %74 = vector.extract_strided_slice %65 {offsets = [0, 0], sizes = [6, 8], strides = [1, 1]} : vector<6x32xf32> to vector<6x8xf32>
    %75 = vector.extract_strided_slice %72 {offsets = [0, 0], sizes = [6, 8], strides = [1, 1]} : vector<6x32xf32> to vector<6x8xf32>
    %76 = arith.truncf %73 : vector<8x8xf32> to vector<8x8xbf16>
    %77 = arith.truncf %74 : vector<6x8xf32> to vector<6x8xbf16>
    %cst_41 = arith.constant dense<0.000000e+00> : vector<8x6xf32>
    %78 = tpu.matmul %76, %77, %cst_41 {dimension_numbers = #tpu.dot_dimension_numbers<[1], [1], [0], [0], [0, 0, 1, 0], [], []>} : vector<8x8xbf16>, vector<6x8xbf16>, vector<8x6xf32> -> vector<8x6xf32>
    %cst_42 = arith.constant 0.353553385 : f32
    %79 = vector.broadcast %cst_42 : f32 to vector<8x6xf32>
    %80 = arith.mulf %78, %79 : vector<8x6xf32>
    %cst_43 = arith.constant 5.000000e-01 : f32
    %81 = vector.broadcast %cst_43 : f32 to vector<1x6xf32>
    %82 = arith.cmpf ogt, %34, %81 : vector<1x6xf32>
    %cst_44 = arith.constant -1.000000e+04 : f32
    %83 = vector.shape_cast %82 : vector<1x6xi1> to vector<1x6xi1>
    %84 = vector.broadcast %83 : vector<1x6xi1> to vector<8x6xi1>
    %85 = vector.broadcast %cst_44 : f32 to vector<8x6xf32>
    %86 = arith.select %84, %85, %80 : vector<8x6xi1>, vector<8x6xf32>
    %cst_45 = arith.constant dense<0xFF800000> : vector<8xf32>
    %87 = vector.multi_reduction <maximumf>, %86, %cst_45 [1] : vector<8x6xf32> to vector<8xf32>
    %88 = vector.shape_cast %87 : vector<8xf32> to vector<8x1xf32>
    %89 = vector.broadcast %88 : vector<8x1xf32> to vector<8x6xf32>
    %90 = arith.subf %86, %89 : vector<8x6xf32>
    %91 = math.exp %90 : vector<8x6xf32>
    %cst_46 = arith.constant dense<0.000000e+00> : vector<8xf32>
    %92 = vector.multi_reduction <add>, %91, %cst_46 [1] : vector<8x6xf32> to vector<8xf32>
    %93 = vector.shape_cast %92 : vector<8xf32> to vector<8x1xf32>
    %94 = tpu.reciprocal %93 {approx = true} : vector<8x1xf32> -> vector<8x1xf32>
    %95 = vector.broadcast %94 : vector<8x1xf32> to vector<8x6xf32>
    %96 = arith.mulf %91, %95 : vector<8x6xf32>
    %97 = arith.truncf %96 : vector<8x6xf32> to vector<8x6xbf16>
    %98 = arith.truncf %75 : vector<6x8xf32> to vector<6x8xbf16>
    %cst_47 = arith.constant dense<0.000000e+00> : vector<8x8xf32>
    %99 = tpu.matmul %97, %98, %cst_47 {dimension_numbers = #tpu.dot_dimension_numbers<[1], [0], [0], [1], [0, 0, 1, 1], [], []>} : vector<8x6xbf16>, vector<6x8xbf16>, vector<8x8xf32> -> vector<8x8xf32>
    %100 = vector.extract_strided_slice %30 {offsets = [0, 8], sizes = [8, 8], strides = [1, 1]} : vector<8x32xf32> to vector<8x8xf32>
    %101 = vector.extract_strided_slice %65 {offsets = [0, 8], sizes = [6, 8], strides = [1, 1]} : vector<6x32xf32> to vector<6x8xf32>
    %102 = vector.extract_strided_slice %72 {offsets = [0, 8], sizes = [6, 8], strides = [1, 1]} : vector<6x32xf32> to vector<6x8xf32>
    %103 = arith.truncf %100 : vector<8x8xf32> to vector<8x8xbf16>
    %104 = arith.truncf %101 : vector<6x8xf32> to vector<6x8xbf16>
    %cst_48 = arith.constant dense<0.000000e+00> : vector<8x6xf32>
    %105 = tpu.matmul %103, %104, %cst_48 {dimension_numbers = #tpu.dot_dimension_numbers<[1], [1], [0], [0], [0, 0, 1, 0], [], []>} : vector<8x8xbf16>, vector<6x8xbf16>, vector<8x6xf32> -> vector<8x6xf32>
    %cst_49 = arith.constant 0.353553385 : f32
    %106 = vector.broadcast %cst_49 : f32 to vector<8x6xf32>
    %107 = arith.mulf %105, %106 : vector<8x6xf32>
    %cst_50 = arith.constant 5.000000e-01 : f32
    %108 = vector.broadcast %cst_50 : f32 to vector<1x6xf32>
    %109 = arith.cmpf ogt, %34, %108 : vector<1x6xf32>
    %cst_51 = arith.constant -1.000000e+04 : f32
    %110 = vector.shape_cast %109 : vector<1x6xi1> to vector<1x6xi1>
    %111 = vector.broadcast %110 : vector<1x6xi1> to vector<8x6xi1>
    %112 = vector.broadcast %cst_51 : f32 to vector<8x6xf32>
    %113 = arith.select %111, %112, %107 : vector<8x6xi1>, vector<8x6xf32>
    %cst_52 = arith.constant dense<0xFF800000> : vector<8xf32>
    %114 = vector.multi_reduction <maximumf>, %113, %cst_52 [1] : vector<8x6xf32> to vector<8xf32>
    %115 = vector.shape_cast %114 : vector<8xf32> to vector<8x1xf32>
    %116 = vector.broadcast %115 : vector<8x1xf32> to vector<8x6xf32>
    %117 = arith.subf %113, %116 : vector<8x6xf32>
    %118 = math.exp %117 : vector<8x6xf32>
    %cst_53 = arith.constant dense<0.000000e+00> : vector<8xf32>
    %119 = vector.multi_reduction <add>, %118, %cst_53 [1] : vector<8x6xf32> to vector<8xf32>
    %120 = vector.shape_cast %119 : vector<8xf32> to vector<8x1xf32>
    %121 = tpu.reciprocal %120 {approx = true} : vector<8x1xf32> -> vector<8x1xf32>
    %122 = vector.broadcast %121 : vector<8x1xf32> to vector<8x6xf32>
    %123 = arith.mulf %118, %122 : vector<8x6xf32>
    %124 = arith.truncf %123 : vector<8x6xf32> to vector<8x6xbf16>
    %125 = arith.truncf %102 : vector<6x8xf32> to vector<6x8xbf16>
    %cst_54 = arith.constant dense<0.000000e+00> : vector<8x8xf32>
    %126 = tpu.matmul %124, %125, %cst_54 {dimension_numbers = #tpu.dot_dimension_numbers<[1], [0], [0], [1], [0, 0, 1, 1], [], []>} : vector<8x6xbf16>, vector<6x8xbf16>, vector<8x8xf32> -> vector<8x8xf32>
    %127 = vector.extract_strided_slice %30 {offsets = [0, 16], sizes = [8, 8], strides = [1, 1]} : vector<8x32xf32> to vector<8x8xf32>
    %128 = vector.extract_strided_slice %65 {offsets = [0, 16], sizes = [6, 8], strides = [1, 1]} : vector<6x32xf32> to vector<6x8xf32>
    %129 = vector.extract_strided_slice %72 {offsets = [0, 16], sizes = [6, 8], strides = [1, 1]} : vector<6x32xf32> to vector<6x8xf32>
    %130 = arith.truncf %127 : vector<8x8xf32> to vector<8x8xbf16>
    %131 = arith.truncf %128 : vector<6x8xf32> to vector<6x8xbf16>
    %cst_55 = arith.constant dense<0.000000e+00> : vector<8x6xf32>
    %132 = tpu.matmul %130, %131, %cst_55 {dimension_numbers = #tpu.dot_dimension_numbers<[1], [1], [0], [0], [0, 0, 1, 0], [], []>} : vector<8x8xbf16>, vector<6x8xbf16>, vector<8x6xf32> -> vector<8x6xf32>
    %cst_56 = arith.constant 0.353553385 : f32
    %133 = vector.broadcast %cst_56 : f32 to vector<8x6xf32>
    %134 = arith.mulf %132, %133 : vector<8x6xf32>
    %cst_57 = arith.constant 5.000000e-01 : f32
    %135 = vector.broadcast %cst_57 : f32 to vector<1x6xf32>
    %136 = arith.cmpf ogt, %34, %135 : vector<1x6xf32>
    %cst_58 = arith.constant -1.000000e+04 : f32
    %137 = vector.shape_cast %136 : vector<1x6xi1> to vector<1x6xi1>
    %138 = vector.broadcast %137 : vector<1x6xi1> to vector<8x6xi1>
    %139 = vector.broadcast %cst_58 : f32 to vector<8x6xf32>
    %140 = arith.select %138, %139, %134 : vector<8x6xi1>, vector<8x6xf32>
    %cst_59 = arith.constant dense<0xFF800000> : vector<8xf32>
    %141 = vector.multi_reduction <maximumf>, %140, %cst_59 [1] : vector<8x6xf32> to vector<8xf32>
    %142 = vector.shape_cast %141 : vector<8xf32> to vector<8x1xf32>
    %143 = vector.broadcast %142 : vector<8x1xf32> to vector<8x6xf32>
    %144 = arith.subf %140, %143 : vector<8x6xf32>
    %145 = math.exp %144 : vector<8x6xf32>
    %cst_60 = arith.constant dense<0.000000e+00> : vector<8xf32>
    %146 = vector.multi_reduction <add>, %145, %cst_60 [1] : vector<8x6xf32> to vector<8xf32>
    %147 = vector.shape_cast %146 : vector<8xf32> to vector<8x1xf32>
    %148 = tpu.reciprocal %147 {approx = true} : vector<8x1xf32> -> vector<8x1xf32>
    %149 = vector.broadcast %148 : vector<8x1xf32> to vector<8x6xf32>
    %150 = arith.mulf %145, %149 : vector<8x6xf32>
    %151 = arith.truncf %150 : vector<8x6xf32> to vector<8x6xbf16>
    %152 = arith.truncf %129 : vector<6x8xf32> to vector<6x8xbf16>
    %cst_61 = arith.constant dense<0.000000e+00> : vector<8x8xf32>
    %153 = tpu.matmul %151, %152, %cst_61 {dimension_numbers = #tpu.dot_dimension_numbers<[1], [0], [0], [1], [0, 0, 1, 1], [], []>} : vector<8x6xbf16>, vector<6x8xbf16>, vector<8x8xf32> -> vector<8x8xf32>
    %154 = vector.extract_strided_slice %30 {offsets = [0, 24], sizes = [8, 8], strides = [1, 1]} : vector<8x32xf32> to vector<8x8xf32>
    %155 = vector.extract_strided_slice %65 {offsets = [0, 24], sizes = [6, 8], strides = [1, 1]} : vector<6x32xf32> to vector<6x8xf32>
    %156 = vector.extract_strided_slice %72 {offsets = [0, 24], sizes = [6, 8], strides = [1, 1]} : vector<6x32xf32> to vector<6x8xf32>
    %157 = arith.truncf %154 : vector<8x8xf32> to vector<8x8xbf16>
    %158 = arith.truncf %155 : vector<6x8xf32> to vector<6x8xbf16>
    %cst_62 = arith.constant dense<0.000000e+00> : vector<8x6xf32>
    %159 = tpu.matmul %157, %158, %cst_62 {dimension_numbers = #tpu.dot_dimension_numbers<[1], [1], [0], [0], [0, 0, 1, 0], [], []>} : vector<8x8xbf16>, vector<6x8xbf16>, vector<8x6xf32> -> vector<8x6xf32>
    %cst_63 = arith.constant 0.353553385 : f32
    %160 = vector.broadcast %cst_63 : f32 to vector<8x6xf32>
    %161 = arith.mulf %159, %160 : vector<8x6xf32>
    %cst_64 = arith.constant 5.000000e-01 : f32
    %162 = vector.broadcast %cst_64 : f32 to vector<1x6xf32>
    %163 = arith.cmpf ogt, %34, %162 : vector<1x6xf32>
    %cst_65 = arith.constant -1.000000e+04 : f32
    %164 = vector.shape_cast %163 : vector<1x6xi1> to vector<1x6xi1>
    %165 = vector.broadcast %164 : vector<1x6xi1> to vector<8x6xi1>
    %166 = vector.broadcast %cst_65 : f32 to vector<8x6xf32>
    %167 = arith.select %165, %166, %161 : vector<8x6xi1>, vector<8x6xf32>
    %cst_66 = arith.constant dense<0xFF800000> : vector<8xf32>
    %168 = vector.multi_reduction <maximumf>, %167, %cst_66 [1] : vector<8x6xf32> to vector<8xf32>
    %169 = vector.shape_cast %168 : vector<8xf32> to vector<8x1xf32>
    %170 = vector.broadcast %169 : vector<8x1xf32> to vector<8x6xf32>
    %171 = arith.subf %167, %170 : vector<8x6xf32>
    %172 = math.exp %171 : vector<8x6xf32>
    %cst_67 = arith.constant dense<0.000000e+00> : vector<8xf32>
    %173 = vector.multi_reduction <add>, %172, %cst_67 [1] : vector<8x6xf32> to vector<8xf32>
    %174 = vector.shape_cast %173 : vector<8xf32> to vector<8x1xf32>
    %175 = tpu.reciprocal %174 {approx = true} : vector<8x1xf32> -> vector<8x1xf32>
    %176 = vector.broadcast %175 : vector<8x1xf32> to vector<8x6xf32>
    %177 = arith.mulf %172, %176 : vector<8x6xf32>
    %178 = arith.truncf %177 : vector<8x6xf32> to vector<8x6xbf16>
    %179 = arith.truncf %156 : vector<6x8xf32> to vector<6x8xbf16>
    %cst_68 = arith.constant dense<0.000000e+00> : vector<8x8xf32>
    %180 = tpu.matmul %178, %179, %cst_68 {dimension_numbers = #tpu.dot_dimension_numbers<[1], [0], [0], [1], [0, 0, 1, 1], [], []>} : vector<8x6xbf16>, vector<6x8xbf16>, vector<8x8xf32> -> vector<8x8xf32>
    %181 = tpu.concatenate %99, %126, %153, %180 in 1 : vector<8x8xf32>, vector<8x8xf32>, vector<8x8xf32>, vector<8x8xf32> -> vector<8x32xf32>
    %c0_69 = arith.constant 0 : index
    %c0_70 = arith.constant 0 : index
    %182 = vector.load %arg12[%c0_69, %c0_70] : memref<32x32xf32, #tpu.memory_space<vmem>>, vector<32x32xf32>
    %183 = arith.truncf %181 : vector<8x32xf32> to vector<8x32xbf16>
    %184 = arith.truncf %182 : vector<32x32xf32> to vector<32x32xbf16>
    %cst_71 = arith.constant dense<0.000000e+00> : vector<8x32xf32>
    %185 = tpu.matmul %183, %184, %cst_71 {dimension_numbers = #tpu.dot_dimension_numbers<[1], [0], [0], [1], [0, 0, 1, 1], [], []>} : vector<8x32xbf16>, vector<32x32xbf16>, vector<8x32xf32> -> vector<8x32xf32>
    %c0_72 = arith.constant 0 : index
    %c0_73 = arith.constant 0 : index
    %186 = vector.load %arg13[%c0_72, %c0_73] : memref<1x32xf32, #tpu.memory_space<vmem>>, vector<1x32xf32>
    %187 = vector.broadcast %186 : vector<1x32xf32> to vector<8x32xf32>
    %188 = arith.addf %185, %187 : vector<8x32xf32>
    %c0_74 = arith.constant 0 : index
    %c0_75 = arith.constant 0 : index
    %189 = vector.load %arg14[%c0_74, %c0_75] : memref<64x32xf32, #tpu.memory_space<vmem>>, vector<64x32xf32>
    %190 = vector.extract_strided_slice %189 {offsets = [0, 0], sizes = [32, 32], strides = [1, 1]} : vector<64x32xf32> to vector<32x32xf32>
    %191 = arith.truncf %1 : vector<8x32xf32> to vector<8x32xbf16>
    %192 = arith.truncf %190 : vector<32x32xf32> to vector<32x32xbf16>
    %cst_76 = arith.constant dense<0.000000e+00> : vector<8x32xf32>
    %193 = tpu.matmul %191, %192, %cst_76 {dimension_numbers = #tpu.dot_dimension_numbers<[1], [0], [0], [1], [0, 0, 1, 1], [], []>} : vector<8x32xbf16>, vector<32x32xbf16>, vector<8x32xf32> -> vector<8x32xf32>
    %194 = vector.extract_strided_slice %189 {offsets = [32, 0], sizes = [32, 32], strides = [1, 1]} : vector<64x32xf32> to vector<32x32xf32>
    %195 = arith.truncf %188 : vector<8x32xf32> to vector<8x32xbf16>
    %196 = arith.truncf %194 : vector<32x32xf32> to vector<32x32xbf16>
    %cst_77 = arith.constant dense<0.000000e+00> : vector<8x32xf32>
    %197 = tpu.matmul %195, %196, %cst_77 {dimension_numbers = #tpu.dot_dimension_numbers<[1], [0], [0], [1], [0, 0, 1, 1], [], []>} : vector<8x32xbf16>, vector<32x32xbf16>, vector<8x32xf32> -> vector<8x32xf32>
    %198 = arith.addf %193, %197 : vector<8x32xf32>
    %c0_78 = arith.constant 0 : index
    %c0_79 = arith.constant 0 : index
    %199 = vector.load %arg15[%c0_78, %c0_79] : memref<1x32xf32, #tpu.memory_space<vmem>>, vector<1x32xf32>
    %200 = vector.broadcast %199 : vector<1x32xf32> to vector<8x32xf32>
    %201 = arith.addf %198, %200 : vector<8x32xf32>
    %202 = arith.negf %201 : vector<8x32xf32>
    %203 = math.exp %202 : vector<8x32xf32>
    %cst_80 = arith.constant 1.000000e+00 : f32
    %204 = vector.broadcast %cst_80 : f32 to vector<8x32xf32>
    %205 = arith.addf %204, %203 : vector<8x32xf32>
    %206 = arith.divf %204, %205 : vector<8x32xf32>
    %207 = arith.mulf %206, %1 : vector<8x32xf32>
    %cst_81 = arith.constant 1.000000e+00 : f32
    %208 = vector.broadcast %cst_81 : f32 to vector<8x32xf32>
    %209 = arith.subf %208, %206 : vector<8x32xf32>
    %210 = arith.mulf %209, %188 : vector<8x32xf32>
    %211 = arith.addf %207, %210 : vector<8x32xf32>
    %212 = vector.extract_strided_slice %32 {offsets = [1, 0, 0], sizes = [1, 6, 32], strides = [1, 1, 1]} : vector<2x6x32xf32> to vector<1x6x32xf32>
    %213 = vector.shape_cast %212 : vector<1x6x32xf32> to vector<6x32xf32>
    %c0_82 = arith.constant 0 : index
    %c0_83 = arith.constant 0 : index
    %214 = vector.load %arg4[%c0_82, %c0_83] : memref<1x32xf32, #tpu.memory_space<vmem>>, vector<1x32xf32>
    %c0_84 = arith.constant 0 : index
    %c0_85 = arith.constant 0 : index
    %215 = vector.load %arg5[%c0_84, %c0_85] : memref<1x32xf32, #tpu.memory_space<vmem>>, vector<1x32xf32>
    %cst_86 = arith.constant dense<0.000000e+00> : vector<6xf32>
    %216 = vector.multi_reduction <add>, %213, %cst_86 [1] : vector<6x32xf32> to vector<6xf32>
    %217 = vector.shape_cast %216 : vector<6xf32> to vector<6x1xf32>
    %cst_87 = arith.constant 3.200000e+01 : f32
    %218 = vector.broadcast %cst_87 : f32 to vector<6x1xf32>
    %219 = arith.divf %217, %218 : vector<6x1xf32>
    %220 = vector.broadcast %219 : vector<6x1xf32> to vector<6x32xf32>
    %221 = arith.subf %213, %220 : vector<6x32xf32>
    %222 = arith.mulf %221, %221 : vector<6x32xf32>
    %cst_88 = arith.constant dense<0.000000e+00> : vector<6xf32>
    %223 = vector.multi_reduction <add>, %222, %cst_88 [1] : vector<6x32xf32> to vector<6xf32>
    %224 = vector.shape_cast %223 : vector<6xf32> to vector<6x1xf32>
    %cst_89 = arith.constant 3.200000e+01 : f32
    %225 = vector.broadcast %cst_89 : f32 to vector<6x1xf32>
    %226 = arith.divf %224, %225 : vector<6x1xf32>
    %cst_90 = arith.constant 9.99999974E-6 : f32
    %227 = vector.broadcast %cst_90 : f32 to vector<6x1xf32>
    %228 = arith.addf %226, %227 : vector<6x1xf32>
    %229 = math.rsqrt %228 : vector<6x1xf32>
    %230 = vector.broadcast %229 : vector<6x1xf32> to vector<6x32xf32>
    %231 = arith.mulf %221, %230 : vector<6x32xf32>
    %232 = vector.broadcast %214 : vector<1x32xf32> to vector<6x32xf32>
    %233 = arith.mulf %231, %232 : vector<6x32xf32>
    %234 = vector.broadcast %215 : vector<1x32xf32> to vector<6x32xf32>
    %235 = arith.addf %233, %234 : vector<6x32xf32>
    %c0_91 = arith.constant 0 : index
    %c0_92 = arith.constant 0 : index
    %236 = vector.load %arg8[%c0_91, %c0_92] : memref<32x32xf32, #tpu.memory_space<vmem>>, vector<32x32xf32>
    %237 = arith.truncf %235 : vector<6x32xf32> to vector<6x32xbf16>
    %238 = arith.truncf %236 : vector<32x32xf32> to vector<32x32xbf16>
    %cst_93 = arith.constant dense<0.000000e+00> : vector<6x32xf32>
    %239 = tpu.matmul %237, %238, %cst_93 {dimension_numbers = #tpu.dot_dimension_numbers<[1], [0], [0], [1], [0, 0, 1, 1], [], []>} : vector<6x32xbf16>, vector<32x32xbf16>, vector<6x32xf32> -> vector<6x32xf32>
    %c0_94 = arith.constant 0 : index
    %c0_95 = arith.constant 0 : index
    %240 = vector.load %arg9[%c0_94, %c0_95] : memref<1x32xf32, #tpu.memory_space<vmem>>, vector<1x32xf32>
    %241 = vector.broadcast %240 : vector<1x32xf32> to vector<6x32xf32>
    %242 = arith.addf %239, %241 : vector<6x32xf32>
    %c0_96 = arith.constant 0 : index
    %c0_97 = arith.constant 0 : index
    %243 = vector.load %arg10[%c0_96, %c0_97] : memref<32x32xf32, #tpu.memory_space<vmem>>, vector<32x32xf32>
    %244 = arith.truncf %235 : vector<6x32xf32> to vector<6x32xbf16>
    %245 = arith.truncf %243 : vector<32x32xf32> to vector<32x32xbf16>
    %cst_98 = arith.constant dense<0.000000e+00> : vector<6x32xf32>
    %246 = tpu.matmul %244, %245, %cst_98 {dimension_numbers = #tpu.dot_dimension_numbers<[1], [0], [0], [1], [0, 0, 1, 1], [], []>} : vector<6x32xbf16>, vector<32x32xbf16>, vector<6x32xf32> -> vector<6x32xf32>
    %c0_99 = arith.constant 0 : index
    %c0_100 = arith.constant 0 : index
    %247 = vector.load %arg11[%c0_99, %c0_100] : memref<1x32xf32, #tpu.memory_space<vmem>>, vector<1x32xf32>
    %248 = vector.broadcast %247 : vector<1x32xf32> to vector<6x32xf32>
    %249 = arith.addf %246, %248 : vector<6x32xf32>
    %250 = vector.extract_strided_slice %30 {offsets = [0, 0], sizes = [8, 8], strides = [1, 1]} : vector<8x32xf32> to vector<8x8xf32>
    %251 = vector.extract_strided_slice %242 {offsets = [0, 0], sizes = [6, 8], strides = [1, 1]} : vector<6x32xf32> to vector<6x8xf32>
    %252 = vector.extract_strided_slice %249 {offsets = [0, 0], sizes = [6, 8], strides = [1, 1]} : vector<6x32xf32> to vector<6x8xf32>
    %253 = arith.truncf %250 : vector<8x8xf32> to vector<8x8xbf16>
    %254 = arith.truncf %251 : vector<6x8xf32> to vector<6x8xbf16>
    %cst_101 = arith.constant dense<0.000000e+00> : vector<8x6xf32>
    %255 = tpu.matmul %253, %254, %cst_101 {dimension_numbers = #tpu.dot_dimension_numbers<[1], [1], [0], [0], [0, 0, 1, 0], [], []>} : vector<8x8xbf16>, vector<6x8xbf16>, vector<8x6xf32> -> vector<8x6xf32>
    %cst_102 = arith.constant 0.353553385 : f32
    %256 = vector.broadcast %cst_102 : f32 to vector<8x6xf32>
    %257 = arith.mulf %255, %256 : vector<8x6xf32>
    %cst_103 = arith.constant 5.000000e-01 : f32
    %258 = vector.broadcast %cst_103 : f32 to vector<1x6xf32>
    %259 = arith.cmpf ogt, %34, %258 : vector<1x6xf32>
    %cst_104 = arith.constant -1.000000e+04 : f32
    %260 = vector.shape_cast %259 : vector<1x6xi1> to vector<1x6xi1>
    %261 = vector.broadcast %260 : vector<1x6xi1> to vector<8x6xi1>
    %262 = vector.broadcast %cst_104 : f32 to vector<8x6xf32>
    %263 = arith.select %261, %262, %257 : vector<8x6xi1>, vector<8x6xf32>
    %cst_105 = arith.constant dense<0xFF800000> : vector<8xf32>
    %264 = vector.multi_reduction <maximumf>, %263, %cst_105 [1] : vector<8x6xf32> to vector<8xf32>
    %265 = vector.shape_cast %264 : vector<8xf32> to vector<8x1xf32>
    %266 = vector.broadcast %265 : vector<8x1xf32> to vector<8x6xf32>
    %267 = arith.subf %263, %266 : vector<8x6xf32>
    %268 = math.exp %267 : vector<8x6xf32>
    %cst_106 = arith.constant dense<0.000000e+00> : vector<8xf32>
    %269 = vector.multi_reduction <add>, %268, %cst_106 [1] : vector<8x6xf32> to vector<8xf32>
    %270 = vector.shape_cast %269 : vector<8xf32> to vector<8x1xf32>
    %271 = tpu.reciprocal %270 {approx = true} : vector<8x1xf32> -> vector<8x1xf32>
    %272 = vector.broadcast %271 : vector<8x1xf32> to vector<8x6xf32>
    %273 = arith.mulf %268, %272 : vector<8x6xf32>
    %274 = arith.truncf %273 : vector<8x6xf32> to vector<8x6xbf16>
    %275 = arith.truncf %252 : vector<6x8xf32> to vector<6x8xbf16>
    %cst_107 = arith.constant dense<0.000000e+00> : vector<8x8xf32>
    %276 = tpu.matmul %274, %275, %cst_107 {dimension_numbers = #tpu.dot_dimension_numbers<[1], [0], [0], [1], [0, 0, 1, 1], [], []>} : vector<8x6xbf16>, vector<6x8xbf16>, vector<8x8xf32> -> vector<8x8xf32>
    %277 = vector.extract_strided_slice %30 {offsets = [0, 8], sizes = [8, 8], strides = [1, 1]} : vector<8x32xf32> to vector<8x8xf32>
    %278 = vector.extract_strided_slice %242 {offsets = [0, 8], sizes = [6, 8], strides = [1, 1]} : vector<6x32xf32> to vector<6x8xf32>
    %279 = vector.extract_strided_slice %249 {offsets = [0, 8], sizes = [6, 8], strides = [1, 1]} : vector<6x32xf32> to vector<6x8xf32>
    %280 = arith.truncf %277 : vector<8x8xf32> to vector<8x8xbf16>
    %281 = arith.truncf %278 : vector<6x8xf32> to vector<6x8xbf16>
    %cst_108 = arith.constant dense<0.000000e+00> : vector<8x6xf32>
    %282 = tpu.matmul %280, %281, %cst_108 {dimension_numbers = #tpu.dot_dimension_numbers<[1], [1], [0], [0], [0, 0, 1, 0], [], []>} : vector<8x8xbf16>, vector<6x8xbf16>, vector<8x6xf32> -> vector<8x6xf32>
    %cst_109 = arith.constant 0.353553385 : f32
    %283 = vector.broadcast %cst_109 : f32 to vector<8x6xf32>
    %284 = arith.mulf %282, %283 : vector<8x6xf32>
    %cst_110 = arith.constant 5.000000e-01 : f32
    %285 = vector.broadcast %cst_110 : f32 to vector<1x6xf32>
    %286 = arith.cmpf ogt, %34, %285 : vector<1x6xf32>
    %cst_111 = arith.constant -1.000000e+04 : f32
    %287 = vector.shape_cast %286 : vector<1x6xi1> to vector<1x6xi1>
    %288 = vector.broadcast %287 : vector<1x6xi1> to vector<8x6xi1>
    %289 = vector.broadcast %cst_111 : f32 to vector<8x6xf32>
    %290 = arith.select %288, %289, %284 : vector<8x6xi1>, vector<8x6xf32>
    %cst_112 = arith.constant dense<0xFF800000> : vector<8xf32>
    %291 = vector.multi_reduction <maximumf>, %290, %cst_112 [1] : vector<8x6xf32> to vector<8xf32>
    %292 = vector.shape_cast %291 : vector<8xf32> to vector<8x1xf32>
    %293 = vector.broadcast %292 : vector<8x1xf32> to vector<8x6xf32>
    %294 = arith.subf %290, %293 : vector<8x6xf32>
    %295 = math.exp %294 : vector<8x6xf32>
    %cst_113 = arith.constant dense<0.000000e+00> : vector<8xf32>
    %296 = vector.multi_reduction <add>, %295, %cst_113 [1] : vector<8x6xf32> to vector<8xf32>
    %297 = vector.shape_cast %296 : vector<8xf32> to vector<8x1xf32>
    %298 = tpu.reciprocal %297 {approx = true} : vector<8x1xf32> -> vector<8x1xf32>
    %299 = vector.broadcast %298 : vector<8x1xf32> to vector<8x6xf32>
    %300 = arith.mulf %295, %299 : vector<8x6xf32>
    %301 = arith.truncf %300 : vector<8x6xf32> to vector<8x6xbf16>
    %302 = arith.truncf %279 : vector<6x8xf32> to vector<6x8xbf16>
    %cst_114 = arith.constant dense<0.000000e+00> : vector<8x8xf32>
    %303 = tpu.matmul %301, %302, %cst_114 {dimension_numbers = #tpu.dot_dimension_numbers<[1], [0], [0], [1], [0, 0, 1, 1], [], []>} : vector<8x6xbf16>, vector<6x8xbf16>, vector<8x8xf32> -> vector<8x8xf32>
    %304 = vector.extract_strided_slice %30 {offsets = [0, 16], sizes = [8, 8], strides = [1, 1]} : vector<8x32xf32> to vector<8x8xf32>
    %305 = vector.extract_strided_slice %242 {offsets = [0, 16], sizes = [6, 8], strides = [1, 1]} : vector<6x32xf32> to vector<6x8xf32>
    %306 = vector.extract_strided_slice %249 {offsets = [0, 16], sizes = [6, 8], strides = [1, 1]} : vector<6x32xf32> to vector<6x8xf32>
    %307 = arith.truncf %304 : vector<8x8xf32> to vector<8x8xbf16>
    %308 = arith.truncf %305 : vector<6x8xf32> to vector<6x8xbf16>
    %cst_115 = arith.constant dense<0.000000e+00> : vector<8x6xf32>
    %309 = tpu.matmul %307, %308, %cst_115 {dimension_numbers = #tpu.dot_dimension_numbers<[1], [1], [0], [0], [0, 0, 1, 0], [], []>} : vector<8x8xbf16>, vector<6x8xbf16>, vector<8x6xf32> -> vector<8x6xf32>
    %cst_116 = arith.constant 0.353553385 : f32
    %310 = vector.broadcast %cst_116 : f32 to vector<8x6xf32>
    %311 = arith.mulf %309, %310 : vector<8x6xf32>
    %cst_117 = arith.constant 5.000000e-01 : f32
    %312 = vector.broadcast %cst_117 : f32 to vector<1x6xf32>
    %313 = arith.cmpf ogt, %34, %312 : vector<1x6xf32>
    %cst_118 = arith.constant -1.000000e+04 : f32
    %314 = vector.shape_cast %313 : vector<1x6xi1> to vector<1x6xi1>
    %315 = vector.broadcast %314 : vector<1x6xi1> to vector<8x6xi1>
    %316 = vector.broadcast %cst_118 : f32 to vector<8x6xf32>
    %317 = arith.select %315, %316, %311 : vector<8x6xi1>, vector<8x6xf32>
    %cst_119 = arith.constant dense<0xFF800000> : vector<8xf32>
    %318 = vector.multi_reduction <maximumf>, %317, %cst_119 [1] : vector<8x6xf32> to vector<8xf32>
    %319 = vector.shape_cast %318 : vector<8xf32> to vector<8x1xf32>
    %320 = vector.broadcast %319 : vector<8x1xf32> to vector<8x6xf32>
    %321 = arith.subf %317, %320 : vector<8x6xf32>
    %322 = math.exp %321 : vector<8x6xf32>
    %cst_120 = arith.constant dense<0.000000e+00> : vector<8xf32>
    %323 = vector.multi_reduction <add>, %322, %cst_120 [1] : vector<8x6xf32> to vector<8xf32>
    %324 = vector.shape_cast %323 : vector<8xf32> to vector<8x1xf32>
    %325 = tpu.reciprocal %324 {approx = true} : vector<8x1xf32> -> vector<8x1xf32>
    %326 = vector.broadcast %325 : vector<8x1xf32> to vector<8x6xf32>
    %327 = arith.mulf %322, %326 : vector<8x6xf32>
    %328 = arith.truncf %327 : vector<8x6xf32> to vector<8x6xbf16>
    %329 = arith.truncf %306 : vector<6x8xf32> to vector<6x8xbf16>
    %cst_121 = arith.constant dense<0.000000e+00> : vector<8x8xf32>
    %330 = tpu.matmul %328, %329, %cst_121 {dimension_numbers = #tpu.dot_dimension_numbers<[1], [0], [0], [1], [0, 0, 1, 1], [], []>} : vector<8x6xbf16>, vector<6x8xbf16>, vector<8x8xf32> -> vector<8x8xf32>
    %331 = vector.extract_strided_slice %30 {offsets = [0, 24], sizes = [8, 8], strides = [1, 1]} : vector<8x32xf32> to vector<8x8xf32>
    %332 = vector.extract_strided_slice %242 {offsets = [0, 24], sizes = [6, 8], strides = [1, 1]} : vector<6x32xf32> to vector<6x8xf32>
    %333 = vector.extract_strided_slice %249 {offsets = [0, 24], sizes = [6, 8], strides = [1, 1]} : vector<6x32xf32> to vector<6x8xf32>
    %334 = arith.truncf %331 : vector<8x8xf32> to vector<8x8xbf16>
    %335 = arith.truncf %332 : vector<6x8xf32> to vector<6x8xbf16>
    %cst_122 = arith.constant dense<0.000000e+00> : vector<8x6xf32>
    %336 = tpu.matmul %334, %335, %cst_122 {dimension_numbers = #tpu.dot_dimension_numbers<[1], [1], [0], [0], [0, 0, 1, 0], [], []>} : vector<8x8xbf16>, vector<6x8xbf16>, vector<8x6xf32> -> vector<8x6xf32>
    %cst_123 = arith.constant 0.353553385 : f32
    %337 = vector.broadcast %cst_123 : f32 to vector<8x6xf32>
    %338 = arith.mulf %336, %337 : vector<8x6xf32>
    %cst_124 = arith.constant 5.000000e-01 : f32
    %339 = vector.broadcast %cst_124 : f32 to vector<1x6xf32>
    %340 = arith.cmpf ogt, %34, %339 : vector<1x6xf32>
    %cst_125 = arith.constant -1.000000e+04 : f32
    %341 = vector.shape_cast %340 : vector<1x6xi1> to vector<1x6xi1>
    %342 = vector.broadcast %341 : vector<1x6xi1> to vector<8x6xi1>
    %343 = vector.broadcast %cst_125 : f32 to vector<8x6xf32>
    %344 = arith.select %342, %343, %338 : vector<8x6xi1>, vector<8x6xf32>
    %cst_126 = arith.constant dense<0xFF800000> : vector<8xf32>
    %345 = vector.multi_reduction <maximumf>, %344, %cst_126 [1] : vector<8x6xf32> to vector<8xf32>
    %346 = vector.shape_cast %345 : vector<8xf32> to vector<8x1xf32>
    %347 = vector.broadcast %346 : vector<8x1xf32> to vector<8x6xf32>
    %348 = arith.subf %344, %347 : vector<8x6xf32>
    %349 = math.exp %348 : vector<8x6xf32>
    %cst_127 = arith.constant dense<0.000000e+00> : vector<8xf32>
    %350 = vector.multi_reduction <add>, %349, %cst_127 [1] : vector<8x6xf32> to vector<8xf32>
    %351 = vector.shape_cast %350 : vector<8xf32> to vector<8x1xf32>
    %352 = tpu.reciprocal %351 {approx = true} : vector<8x1xf32> -> vector<8x1xf32>
    %353 = vector.broadcast %352 : vector<8x1xf32> to vector<8x6xf32>
    %354 = arith.mulf %349, %353 : vector<8x6xf32>
    %355 = arith.truncf %354 : vector<8x6xf32> to vector<8x6xbf16>
    %356 = arith.truncf %333 : vector<6x8xf32> to vector<6x8xbf16>
    %cst_128 = arith.constant dense<0.000000e+00> : vector<8x8xf32>
    %357 = tpu.matmul %355, %356, %cst_128 {dimension_numbers = #tpu.dot_dimension_numbers<[1], [0], [0], [1], [0, 0, 1, 1], [], []>} : vector<8x6xbf16>, vector<6x8xbf16>, vector<8x8xf32> -> vector<8x8xf32>
    %358 = tpu.concatenate %276, %303, %330, %357 in 1 : vector<8x8xf32>, vector<8x8xf32>, vector<8x8xf32>, vector<8x8xf32> -> vector<8x32xf32>
    %c0_129 = arith.constant 0 : index
    %c0_130 = arith.constant 0 : index
    %359 = vector.load %arg12[%c0_129, %c0_130] : memref<32x32xf32, #tpu.memory_space<vmem>>, vector<32x32xf32>
    %360 = arith.truncf %358 : vector<8x32xf32> to vector<8x32xbf16>
    %361 = arith.truncf %359 : vector<32x32xf32> to vector<32x32xbf16>
    %cst_131 = arith.constant dense<0.000000e+00> : vector<8x32xf32>
    %362 = tpu.matmul %360, %361, %cst_131 {dimension_numbers = #tpu.dot_dimension_numbers<[1], [0], [0], [1], [0, 0, 1, 1], [], []>} : vector<8x32xbf16>, vector<32x32xbf16>, vector<8x32xf32> -> vector<8x32xf32>
    %c0_132 = arith.constant 0 : index
    %c0_133 = arith.constant 0 : index
    %363 = vector.load %arg13[%c0_132, %c0_133] : memref<1x32xf32, #tpu.memory_space<vmem>>, vector<1x32xf32>
    %364 = vector.broadcast %363 : vector<1x32xf32> to vector<8x32xf32>
    %365 = arith.addf %362, %364 : vector<8x32xf32>
    %c0_134 = arith.constant 0 : index
    %c0_135 = arith.constant 0 : index
    %366 = vector.load %arg16[%c0_134, %c0_135] : memref<64x32xf32, #tpu.memory_space<vmem>>, vector<64x32xf32>
    %367 = vector.extract_strided_slice %366 {offsets = [0, 0], sizes = [32, 32], strides = [1, 1]} : vector<64x32xf32> to vector<32x32xf32>
    %368 = arith.truncf %1 : vector<8x32xf32> to vector<8x32xbf16>
    %369 = arith.truncf %367 : vector<32x32xf32> to vector<32x32xbf16>
    %cst_136 = arith.constant dense<0.000000e+00> : vector<8x32xf32>
    %370 = tpu.matmul %368, %369, %cst_136 {dimension_numbers = #tpu.dot_dimension_numbers<[1], [0], [0], [1], [0, 0, 1, 1], [], []>} : vector<8x32xbf16>, vector<32x32xbf16>, vector<8x32xf32> -> vector<8x32xf32>
    %371 = vector.extract_strided_slice %366 {offsets = [32, 0], sizes = [32, 32], strides = [1, 1]} : vector<64x32xf32> to vector<32x32xf32>
    %372 = arith.truncf %365 : vector<8x32xf32> to vector<8x32xbf16>
    %373 = arith.truncf %371 : vector<32x32xf32> to vector<32x32xbf16>
    %cst_137 = arith.constant dense<0.000000e+00> : vector<8x32xf32>
    %374 = tpu.matmul %372, %373, %cst_137 {dimension_numbers = #tpu.dot_dimension_numbers<[1], [0], [0], [1], [0, 0, 1, 1], [], []>} : vector<8x32xbf16>, vector<32x32xbf16>, vector<8x32xf32> -> vector<8x32xf32>
    %375 = arith.addf %370, %374 : vector<8x32xf32>
    %c0_138 = arith.constant 0 : index
    %c0_139 = arith.constant 0 : index
    %376 = vector.load %arg17[%c0_138, %c0_139] : memref<1x32xf32, #tpu.memory_space<vmem>>, vector<1x32xf32>
    %377 = vector.broadcast %376 : vector<1x32xf32> to vector<8x32xf32>
    %378 = arith.addf %375, %377 : vector<8x32xf32>
    %379 = arith.negf %378 : vector<8x32xf32>
    %380 = math.exp %379 : vector<8x32xf32>
    %cst_140 = arith.constant 1.000000e+00 : f32
    %381 = vector.broadcast %cst_140 : f32 to vector<8x32xf32>
    %382 = arith.addf %381, %380 : vector<8x32xf32>
    %383 = arith.divf %381, %382 : vector<8x32xf32>
    %384 = arith.mulf %383, %1 : vector<8x32xf32>
    %cst_141 = arith.constant 1.000000e+00 : f32
    %385 = vector.broadcast %cst_141 : f32 to vector<8x32xf32>
    %386 = arith.subf %385, %383 : vector<8x32xf32>
    %387 = arith.mulf %386, %365 : vector<8x32xf32>
    %388 = arith.addf %384, %387 : vector<8x32xf32>
    %389 = arith.addf %211, %388 : vector<8x32xf32>
    %cst_142 = arith.constant 0.707106769 : f32
    %390 = vector.broadcast %cst_142 : f32 to vector<8x32xf32>
    %391 = arith.mulf %389, %390 : vector<8x32xf32>
    %c0_143 = arith.constant 0 : index
    %c0_144 = arith.constant 0 : index
    %c0_145 = arith.constant 0 : index
    %392 = vector.load %arg18[%c0_143, %c0_144, %c0_145] : memref<1x8x32xf32, #tpu.memory_space<vmem>>, vector<1x8x32xf32>
    %393 = vector.shape_cast %392 : vector<1x8x32xf32> to vector<8x32xf32>
    %394 = vector.shape_cast %391 : vector<8x32xf32> to vector<1x8x32xf32>
    tpu.vector_store %arg18[%c0_143, %c0_144, %c0_145], %394 {strides = array<i32>} : memref<1x8x32xf32, #tpu.memory_space<vmem>>, vector<1x8x32xf32>,
    return
  }
  func.func @transform_0(%arg0: i32) -> (i32, i32, i32) {
    %c0_i32 = arith.constant 0 : i32
    %c0_i32_0 = arith.constant 0 : i32
    %c0_i32_1 = arith.constant 0 : i32
    return %arg0, %c0_i32, %c0_i32_0 : i32, i32, i32
  }
  func.func @transform_1(%arg0: i32) -> (i32, i32, i32, i32) {
    %c0_i32 = arith.constant 0 : i32
    %c0_i32_0 = arith.constant 0 : i32
    %c0_i32_1 = arith.constant 0 : i32
    %c0_i32_2 = arith.constant 0 : i32
    return %arg0, %c0_i32, %c0_i32_0, %c0_i32_1 : i32, i32, i32, i32
  }
  func.func @transform_2(%arg0: i32) -> (i32, i32, i32) {
    %c0_i32 = arith.constant 0 : i32
    %c0_i32_0 = arith.constant 0 : i32
    %c0_i32_1 = arith.constant 0 : i32
    return %arg0, %c0_i32, %c0_i32_0 : i32, i32, i32
  }
  func.func @transform_3(%arg0: i32) -> (i32, i32) {
    %c0_i32 = arith.constant 0 : i32
    %c0_i32_0 = arith.constant 0 : i32
    %c0_i32_1 = arith.constant 0 : i32
    return %c0_i32, %c0_i32_0 : i32, i32
  }
  func.func @transform_4(%arg0: i32) -> (i32, i32) {
    %c0_i32 = arith.constant 0 : i32
    %c0_i32_0 = arith.constant 0 : i32
    %c0_i32_1 = arith.constant 0 : i32
    return %c0_i32, %c0_i32_0 : i32, i32
  }
  func.func @transform_5(%arg0: i32) -> (i32, i32) {
    %c0_i32 = arith.constant 0 : i32
    %c0_i32_0 = arith.constant 0 : i32
    %c0_i32_1 = arith.constant 0 : i32
    return %c0_i32, %c0_i32_0 : i32, i32
  }
  func.func @transform_6(%arg0: i32) -> (i32, i32) {
    %c0_i32 = arith.constant 0 : i32
    %c0_i32_0 = arith.constant 0 : i32
    %c0_i32_1 = arith.constant 0 : i32
    return %c0_i32, %c0_i32_0 : i32, i32
  }
  func.func @transform_7(%arg0: i32) -> (i32, i32) {
    %c0_i32 = arith.constant 0 : i32
    %c0_i32_0 = arith.constant 0 : i32
    %c0_i32_1 = arith.constant 0 : i32
    return %c0_i32, %c0_i32_0 : i32, i32
  }
  func.func @transform_8(%arg0: i32) -> (i32, i32) {
    %c0_i32 = arith.constant 0 : i32
    %c0_i32_0 = arith.constant 0 : i32
    %c0_i32_1 = arith.constant 0 : i32
    return %c0_i32, %c0_i32_0 : i32, i32
  }
  func.func @transform_9(%arg0: i32) -> (i32, i32) {
    %c0_i32 = arith.constant 0 : i32
    %c0_i32_0 = arith.constant 0 : i32
    %c0_i32_1 = arith.constant 0 : i32
    return %c0_i32, %c0_i32_0 : i32, i32
  }
  func.func @transform_10(%arg0: i32) -> (i32, i32) {
    %c0_i32 = arith.constant 0 : i32
    %c0_i32_0 = arith.constant 0 : i32
    %c0_i32_1 = arith.constant 0 : i32
    return %c0_i32, %c0_i32_0 : i32, i32
  }
  func.func @transform_11(%arg0: i32) -> (i32, i32) {
    %c0_i32 = arith.constant 0 : i32
    %c0_i32_0 = arith.constant 0 : i32
    %c0_i32_1 = arith.constant 0 : i32
    return %c0_i32, %c0_i32_0 : i32, i32
  }
  func.func @transform_12(%arg0: i32) -> (i32, i32) {
    %c0_i32 = arith.constant 0 : i32
    %c0_i32_0 = arith.constant 0 : i32
    %c0_i32_1 = arith.constant 0 : i32
    return %c0_i32, %c0_i32_0 : i32, i32
  }
  func.func @transform_13(%arg0: i32) -> (i32, i32) {
    %c0_i32 = arith.constant 0 : i32
    %c0_i32_0 = arith.constant 0 : i32
    %c0_i32_1 = arith.constant 0 : i32
    return %c0_i32, %c0_i32_0 : i32, i32
  }
  func.func @transform_14(%arg0: i32) -> (i32, i32) {
    %c0_i32 = arith.constant 0 : i32
    %c0_i32_0 = arith.constant 0 : i32
    %c0_i32_1 = arith.constant 0 : i32
    return %c0_i32, %c0_i32_0 : i32, i32
  }
  func.func @transform_15(%arg0: i32) -> (i32, i32) {
    %c0_i32 = arith.constant 0 : i32
    %c0_i32_0 = arith.constant 0 : i32
    %c0_i32_1 = arith.constant 0 : i32
    return %c0_i32, %c0_i32_0 : i32, i32
  }
  func.func @transform_16(%arg0: i32) -> (i32, i32) {
    %c0_i32 = arith.constant 0 : i32
    %c0_i32_0 = arith.constant 0 : i32
    %c0_i32_1 = arith.constant 0 : i32
    return %c0_i32, %c0_i32_0 : i32, i32
  }
  func.func @transform_17(%arg0: i32) -> (i32, i32, i32) {
    %c0_i32 = arith.constant 0 : i32
    %c0_i32_0 = arith.constant 0 : i32
    %c0_i32_1 = arith.constant 0 : i32
    return %arg0, %c0_i32, %c0_i32_0 : i32, i32, i32
  }
}

</mosaic_0001>

<bundles_post_ra>
// kernel: block_forward.4
= control target key start
LH: loop header
LB: loop body
LE: loop exit
PB: predicated region body
PF: predicated region fallthrough
CT: control target
= control target key end

     0   :  { %v303_v0 = vmov 0.0   ;;  %vm304_vm0 = vmmov 0   ;;  %vm50_vm1 = vcmask 261120   ;;  %s305_s26 = smov 96   ;;  %vm172_vm2 = vcmask 257024   ;;  %s531_s1 = inlined_call_operand.vmem [shape: f32[32,64], index: 1, kind: input, shape index: {}]   ;;  %s532_s0 = inlined_call_operand.vmem [shape: f32[100,32], index: 0, kind: input, shape index: {}]   ;;  %s533_s2 = inlined_call_operand.vmem [shape: f32[1,64], index: 2, kind: input, shape index: {}]   ;;  %s534_s3 = inlined_call_operand.vmem [shape: f32[100,32], index: 3, kind: output, shape index: {0}]   ;;  %s535_s4 = inlined_call_operand.vmem [shape: f32[100,32], index: 4, kind: output, shape index: {1}]  }
   0x1   :  { %264 = vmatprep.subr.bf16.mxu0 %v303_v0  ;;  %v30_v1 = vld [vmem:[%s531_s1] sm:$0xff]  ;;  %v31_v2 = vld [vmem:[%s531_s1 + $0x8] sm:$0xff]  ;;  %296 = vmatprep.subr.bf16.mxu1 %v303_v0  ;;  %v32_v3 = vld [vmem:[%s531_s1 + $0x10] sm:$0xff] }
   0x2   :  { %v41_v4 = vpack.c.bf16 %v31_v2, %v30_v1  ;;  %v33_v5 = vld [vmem:[%s531_s1 + $0x18] sm:$0xff]  ;;  %268 = vmatprep.mubr.msk.bf16.mxu0 %vm304_vm0, %v303_v0  ;;  %284 = vmatprep.mubr.msk.bf16.mxu1 %vm304_vm0, %v303_v0  ;;  %v17_v6 = vld [vmem:[%s532_s0] sm:$0xff]  ;;  %v18_v8 = vld [vmem:[%s532_s0 + $0x8] sm:$0xff] }
   0x3   :  { %v42_v7 = vpack.c.bf16 %v33_v5, %v32_v3  ;;  %v25_v9 = vld [vmem:[%s532_s0 + $0x40] sm:$0xff]  ;;  %v26_v10 = vld [vmem:[%s532_s0 + $0x48] sm:$0xff]  ;;  %v34_v11 = vpack.c.bf16 %v18_v8, %v17_v6  ;;  %v19_v13 = vld [vmem:[%s532_s0 + $0x10] sm:$0xff] }
   0x4   :  { %265 = vmatpush3.bf16.msra.mxu0 %v41_v4  ;;  %298 = vmatpush3.bf16.msra.mxu1 %v41_v4  ;;  %v38_v12 = vpack.c.bf16 %v26_v10, %v25_v9  ;;  %v20_v14 = vld [vmem:[%s532_s0 + $0x18] sm:$0xff]  ;;  %v27_v15 = vld [vmem:[%s532_s0 + $0x50] sm:$0xff]  ;;  %v21_v19 = vld [vmem:[%s532_s0 + $0x20] sm:$0xff] }
   0x5   :  { %266 = vmatprep.subr.bf16.mxu0 %v303_v0  ;;  %297 = vmatprep.subr.bf16.mxu1 %v303_v0  ;;  %v28_v16 = vld [vmem:[%s532_s0 + $0x58] sm:$0xff]  ;;  %v35_v17 = vpack.c.bf16 %v20_v14, %v19_v13  ;;  %v22_v20 = vld [vmem:[%s532_s0 + $0x28] sm:$0xff]  ;;  %v29_v21 = vld [vmem:[%s532_s0 + $0x60] sm:$0xf] }
   0x6   :  { %v39_v18 = vpack.c.bf16 %v28_v16, %v27_v15  ;;  %v36_v22 = vpack.c.bf16 %v22_v20, %v21_v19  ;;  %v40_v23 = vpack.c.bf16 %v29_v21, %v29_v21  ;;  %v23_v24 = vld [vmem:[%s532_s0 + $0x30] sm:$0xff]  ;;  %v24_v25 = vld [vmem:[%s532_s0 + $0x38] sm:$0xff]  ;;  %v399_v27 = vld [vmem:[%s533_s2] ss:$0 sm:$0xff] }
   0x7   :  { %v37_v26 = vpack.c.bf16 %v24_v25, %v23_v24 }
   0x8   :  { %267 = vmatpush3.bf16.msra.mxu0 %v42_v7  ;;  %299 = vmatpush3.bf16.msra.mxu1 %v42_v7 }
   0xb   :  { %269 = vmatmul.mubr.msk.bf16.vlgmr.msra.gmra.mrb[0].mxu0 %vm50_vm1, %v34_v11  ;;  %285 = vmatmul.mubr.msk.bf16.vlgmr.msra.gmra.mrb[0].mxu1 %vm50_vm1, %v38_v12 }
   0xc   :  { %272 = vmatprep.mubr.msk.bf16.mxu0 %vm304_vm0, %v303_v0  ;;  %288 = vmatprep.mubr.msk.bf16.mxu1 %vm304_vm0, %v303_v0 }
  0x13   :  { %273 = vmatmul.mubr.msk.bf16.gmra.mrb[4].mxu0 %vm50_vm1, %v35_v17  ;;  %289 = vmatmul.mubr.msk.bf16.gmra.mrb[4].mxu1 %vm50_vm1, %v39_v18 }
  0x14   :  { %276 = vmatprep.mubr.msk.bf16.mxu0 %vm304_vm0, %v303_v0  ;;  %292 = vmatprep.mubr.msk.bf16.mxu1 %vm304_vm0, %v303_v0 }
  0x1b   :  { %277 = vmatmul.mubr.msk.bf16.gmra.mrb[8].mxu0 %vm50_vm1, %v36_v22  ;;  %293 = vmatmul.mubr.msk.bf16.gmra.mrb[8].mxu1 %vm50_vm1, %v40_v23 }
  0x1c   :  { %280 = vmatprep.mubr.msk.bf16.mxu0 %vm304_vm0, %v303_v0 }
  0x23   :  { %281 = vmatmul.mubr.msk.bf16.gmra.mrb[12].mxu0 %vm50_vm1, %v37_v26 }
  0xde   :  { %v106_v28 = vpop.f32.mrb[0].mxu0  ;;  %v138_v29 = vpop.f32.mrb[0].mxu1 }
  0xdf   :  { %v107_v30 = vadd.f32 %v399_v27, %v106_v28  ;;  %v270_v31 = vpop.f32.mrb[1].mxu0  ;;  %v139_v32 = vadd.f32 %v399_v27, %v138_v29  ;;  %v286_v33 = vpop.f32.mrb[1].mxu1 }
  0xe0   :  { %v109_v34 = vpop.f32.mrb[2].mxu0  ;;  %v141_v35 = vpop.f32.mrb[2].mxu1 }
  0xe1   :  { %160 = vst.msk [vmem:[%s534_s3] sm:$0xff] %vm50_vm1, %v107_v30  ;;  %v110_v36 = vadd.f32 %v399_v27, %v109_v34  ;;  %168 = vst.msk [vmem:[%s534_s3 + $0x40] sm:$0xff] %vm50_vm1, %v139_v32  ;;  %187 = vrot.lane.b32.xlu0 %v107_v30, %s305_s26  ;;  %v271_v37 = vpop.f32.mrb[3].mxu0  ;;  %v142_v38 = vadd.f32 %v399_v27, %v141_v35  ;;  %v287_v39 = vpop.f32.mrb[3].mxu1 }
  0xe3   :  { %161 = vst.msk [vmem:[%s534_s3 + $0x8] sm:$0xff] %vm50_vm1, %v110_v36  ;;  %169 = vst.msk [vmem:[%s534_s3 + $0x48] sm:$0xff] %vm50_vm1, %v142_v38  ;;  %205 = vrot.lane.b32.xlu1 %v142_v38, %s305_s26 }
  0xe5   :  { %203 = vrot.lane.b32.xlu0 %v139_v32, %s305_s26 }
  0xe6   :  { %v114_v40 = vpop.f32.mrb[4].mxu0  ;;  %v146_v41 = vpop.f32.mrb[4].mxu1 }
  0xe7   :  { %v115_v42 = vadd.f32 %v399_v27, %v114_v40  ;;  %v274_v43 = vpop.f32.mrb[5].mxu0  ;;  %v147_v44 = vadd.f32 %v399_v27, %v146_v41  ;;  %v290_v45 = vpop.f32.mrb[5].mxu1 }
  0xe8   :  { %v117_v46 = vpop.f32.mrb[6].mxu0  ;;  %v149_v47 = vpop.f32.mrb[6].mxu1 }
  0xe9   :  { %162 = vst.msk [vmem:[%s534_s3 + $0x10] sm:$0xff] %vm50_vm1, %v115_v42  ;;  %v118_v48 = vadd.f32 %v399_v27, %v117_v46  ;;  %189 = vrot.lane.b32.xlu0 %v110_v36, %s305_s26  ;;  %191 = vrot.lane.b32.xlu1 %v115_v42, %s305_s26  ;;  %v275_v49 = vpop.f32.mrb[7].mxu0  ;;  %170 = vst.msk [vmem:[%s534_s3 + $0x50] sm:$0xff] %vm50_vm1, %v147_v44  ;;  %v150_v50 = vadd.f32 %v399_v27, %v149_v47  ;;  %v291_v51 = vpop.f32.mrb[7].mxu1 }
  0xeb   :  { %163 = vst.msk [vmem:[%s534_s3 + $0x18] sm:$0xff] %vm50_vm1, %v118_v48  ;;  %171 = vst.msk [vmem:[%s534_s3 + $0x58] sm:$0xff] %vm50_vm1, %v150_v50 }
  0xed   :  { %207 = vrot.lane.b32.xlu0 %v147_v44, %s305_s26  ;;  %193 = vrot.lane.b32.xlu1 %v118_v48, %s305_s26 }
  0xee   :  { %v122_v52 = vpop.f32.mrb[8].mxu0  ;;  %v154_v53 = vpop.f32.mrb[8].mxu1 }
  0xef   :  { %v123_v54 = vadd.f32 %v399_v27, %v122_v52  ;;  %v278_v55 = vpop.f32.mrb[9].mxu0  ;;  %v155_v56 = vadd.f32 %v399_v27, %v154_v53  ;;  %v294_v57 = vpop.f32.mrb[9].mxu1 }
  0xf0   :  { %v125_v58 = vpop.f32.mrb[10].mxu0  ;;  %v157_v59 = vpop.f32.mrb[10].mxu1 }
  0xf1   :  { %164 = vst.msk [vmem:[%s534_s3 + $0x20] sm:$0xff] %vm50_vm1, %v123_v54  ;;  %v126_v60 = vadd.f32 %v399_v27, %v125_v58  ;;  %195 = vrot.lane.b32.xlu0 %v123_v54, %s305_s26  ;;  %v279_v61 = vpop.f32.mrb[11].mxu0  ;;  %v295_v62 = vpop.f32.mrb[11].mxu1 }
  0xf2   :  { %173 = vst.msk [vmem:[%s534_s3 + $0x60] sm:$0xf] %vm172_vm2, %v155_v56 }
  0xf3   :  { %165 = vst.msk [vmem:[%s534_s3 + $0x28] sm:$0xff] %vm50_vm1, %v126_v60  ;;  %197 = vrot.lane.b32.xlu1 %v126_v60, %s305_s26 }
  0xf6   :  { %v130_v63 = vpop.f32.mrb[12].mxu0 }
  0xf7   :  { %v131_v0 = vadd.f32 %v399_v27, %v130_v63  ;;  %v282_v1 = vpop.f32.mrb[13].mxu0 }
  0xf8   :  { %v133_v2 = vpop.f32.mrb[14].mxu0 }
  0xf9   :  { %166 = vst.msk [vmem:[%s534_s3 + $0x30] sm:$0xff] %vm50_vm1, %v131_v0  ;;  %v134_v3 = vadd.f32 %v399_v27, %v133_v2  ;;  %199 = vrot.lane.b32.xlu0 %v131_v0, %s305_s26  ;;  %v283_v4 = vpop.f32.mrb[15].mxu0 }
  0xfb   :  { %167 = vst.msk [vmem:[%s534_s3 + $0x38] sm:$0xff] %vm50_vm1, %v134_v3  ;;  %201 = vrot.lane.b32.xlu1 %v134_v3, %s305_s26 }
  0xfd   :  { %211 = vrot.lane.b32.xlu0 %v155_v56, %s305_s26 }
  0xff   :  { %209 = vrot.lane.b32.xlu1 %v150_v50, %s305_s26 }
 0x153   :  { %v188_v5 = vpop.permute.xlu0 %187 }
 0x154   :  { %226 = vst.msk [vmem:[%s535_s4] sm:$0xff] %vm50_vm1, %v188_v5 }
 0x155   :  { %v206_v6 = vpop.permute.xlu1 %205 }
 0x156   :  { %235 = vst.msk [vmem:[%s535_s4 + $0x48] sm:$0xff] %vm50_vm1, %v206_v6 }
 0x157   :  { %v204_v7 = vpop.permute.xlu0 %203 }
 0x158   :  { %234 = vst.msk [vmem:[%s535_s4 + $0x40] sm:$0xff] %vm50_vm1, %v204_v7 }
 0x15b   :  { %v190_v8 = vpop.permute.xlu0 %189  ;;  %v192_v9 = vpop.permute.xlu1 %191 }
 0x15c   :  { %227 = vst.msk [vmem:[%s535_s4 + $0x8] sm:$0xff] %vm50_vm1, %v190_v8  ;;  %228 = vst.msk [vmem:[%s535_s4 + $0x10] sm:$0xff] %vm50_vm1, %v192_v9 }
 0x15f   :  { %v208_v10 = vpop.permute.xlu0 %207  ;;  %v194_v11 = vpop.permute.xlu1 %193 }
 0x160   :  { %236 = vst.msk [vmem:[%s535_s4 + $0x50] sm:$0xff] %vm50_vm1, %v208_v10  ;;  %229 = vst.msk [vmem:[%s535_s4 + $0x18] sm:$0xff] %vm50_vm1, %v194_v11 }
 0x163   :  { %v196_v12 = vpop.permute.xlu0 %195 }
 0x164   :  { %230 = vst.msk [vmem:[%s535_s4 + $0x20] sm:$0xff] %vm50_vm1, %v196_v12 }
 0x165   :  { %v198_v13 = vpop.permute.xlu1 %197 }
 0x166   :  { %231 = vst.msk [vmem:[%s535_s4 + $0x28] sm:$0xff] %vm50_vm1, %v198_v13 }
 0x16b   :  { %v200_v14 = vpop.permute.xlu0 %199 }
 0x16c   :  { %232 = vst.msk [vmem:[%s535_s4 + $0x30] sm:$0xff] %vm50_vm1, %v200_v14 }
 0x16d   :  { %v202_v15 = vpop.permute.xlu1 %201 }
 0x16e   :  { %233 = vst.msk [vmem:[%s535_s4 + $0x38] sm:$0xff] %vm50_vm1, %v202_v15 }
 0x16f   :  { %v212_v16 = vpop.permute.xlu0 %211 }
 0x170   :  { %238 = vst.msk [vmem:[%s535_s4 + $0x60] sm:$0xf] %vm172_vm2, %v212_v16 }
 0x171   :  { %v210_v17 = vpop.permute.xlu1 %209 }
 0x172   :  { %237 = vst.msk [vmem:[%s535_s4 + $0x58] sm:$0xff] %vm50_vm1, %v210_v17 }

// kernel: block_forward.5
= control target key start
LH: loop header
LB: loop body
LE: loop exit
PB: predicated region body
PF: predicated region fallthrough
CT: control target
= control target key end

     0   :  { %s2309_s17 = smov 0   ;;  %s2859_s0 = inlined_call_operand.vmem [shape: f32[2,8,32], index: 0, kind: input, shape index: {}]   ;;  %s2860_s1 = inlined_call_operand.vmem [shape: f32[1,32], index: 1, kind: input, shape index: {}]   ;;  %s2861_s2 = inlined_call_operand.vmem [shape: f32[1,32], index: 2, kind: input, shape index: {}]   ;;  %s2862_s3 = inlined_call_operand.vmem [shape: f32[32,96], index: 3, kind: input, shape index: {}]   ;;  %s2863_s4 = inlined_call_operand.vmem [shape: f32[1,96], index: 4, kind: input, shape index: {}]   ;;  %s2864_s5 = inlined_call_operand.vmem [shape: f32[100,32], index: 5, kind: input, shape index: {}]   ;;  %s2865_s6 = inlined_call_operand.vmem [shape: f32[100,32], index: 6, kind: input, shape index: {}]   ;;  %s2866_s7 = inlined_call_operand.vmem [shape: f32[64,32], index: 7, kind: input, shape index: {}]   ;;  %s2867_s8 = inlined_call_operand.vmem [shape: f32[1,32], index: 8, kind: input, shape index: {}]   ;;  %s2868_s9 = inlined_call_operand.vmem [shape: f32[32,32], index: 9, kind: input, shape index: {}]   ;;  %s2869_s10 = inlined_call_operand.vmem [shape: f32[1,32], index: 10, kind: input, shape index: {}]   ;;  %s2870_s11 = inlined_call_operand.vmem [shape: f32[2,8,32], index: 11, kind: output, shape index: {}]  }
   0x1 LB: > { %s1811_s18 = sadd.s32 4294967295, %s2231_s17   ;;  %p1815_p0 = scmp.ge.s32.totalorder %s2231_s17, 1  ;;  %s2231_s17 = sphi %s2309_s17, %s21_s17  }
   0x2   : > { %p336_p1 = scmp.lt.s32.totalorder %s2231_s17, 3 }
   0x4   : > { %p337_p2 = pnand %p1815_p0, %p336_p1 }
   0x5   : > { %p374_p3 = scmp.lt.s32.totalorder (!%p337_p2), %s1811_s18, 1  ;;  %vm386_vm0 = vcmask (!%p337_p2), 261120   ;;  %v415_v7 = vld [vmem:[%s2862_s3] sm:$0xff] (!%p337_p2)  ;;  %v416_v8 = vld [vmem:[%s2862_s3 + $0x8] sm:$0xff] (!%p337_p2)  ;;  %v417_v9 = vld [vmem:[%s2862_s3 + $0x10] sm:$0xff] (!%p337_p2)  ;;  %v2233_v10 = vmov (!%p337_p2), 0.0  }
   0x6   : > { %340 = sbr.rel (%p337_p2) target bundleno = 3867 (0xf1b), region = 64  ;;  %1938 = vmatprep.subr.bf16.mxu0 (!%p337_p2), %v2233_v10  ;;  %v420_v11 = vpack.c.bf16 (!%p337_p2), %v416_v8, %v415_v7  ;;  %v418_v12 = vld [vmem:[%s2862_s3 + $0x18] sm:$0xff] (!%p337_p2)  ;;  %vm2234_vm1 = vmmov (!%p337_p2), 0   ;;  %1946 = vmatprep.subr.bf16.mxu1 (!%p337_p2), %v2233_v10  ;;  %v1818_v18 = vld [vmem:[%s2860_s1] ss:$0 sm:$0xff] (!%p337_p2)  ;;  %s2235_s21 = smov (!%p337_p2), 80  }
   0x7   : > { %1942 = vmatprep.mubr.msk.bf16.mxu0 (!%p337_p2), %vm2234_vm1, %v2233_v10  ;;  %1948 = vmatprep.mubr.msk.bf16.mxu1 (!%p337_p2), %vm2234_vm1, %v2233_v10  ;;  %v421_v13 = vpack.c.bf16 (!%p337_p2), %v418_v12, %v417_v9  ;;  %v1819_v20 = vld [vmem:[%s2861_s2] ss:$0 sm:$0xff] (!%p337_p2)  ;;  %s2236_s23 = smov (!%p337_p2), 96   ;;  %s2237_s24 = smov (!%p337_p2), 88   ;;  %vm476_vm2 = vcmask (!%p337_p2), 64512   ;;  %v932_v41 = vld [vmem:[%s2864_s5 + $0x8] sm:$0xff] (!%p337_p2) }
   0x8   : > { %1939 = vmatpush3.bf16.msra.mxu0 (!%p337_p2), %v420_v11  ;;  %v1820_v24 = vld [vmem:[%s2863_s4] ss:$0 sm:$0xff] (!%p337_p2)  ;;  %s2238_s25 = smov (!%p337_p2), 120   ;;  %s2239_s26 = smov (!%p337_p2), 72   ;;  %v933_v46 = vld [vmem:[%s2864_s5 + $0x10] sm:$0xff] (!%p337_p2)  ;;  %v934_v47 = vld [vmem:[%s2864_s5 + $0x18] sm:$0xff] (!%p337_p2) }
   0x9   : > { %1940 = vmatprep.subr.bf16.mxu0 (!%p337_p2), %v2233_v10  ;;  %s2240_s27 = smov (!%p337_p2), 112   ;;  %s2241_s28 = smov (!%p337_p2), 104   ;;  %v931_v40 = vld [vmem:[%s2864_s5] sm:$0xff] (!%p337_p2)  ;;  %v2421_v48 = vpack.c.bf16 (!%p337_p2), %v934_v47, %v933_v46  ;;  %v936_v51 = vld [vmem:[%s2864_s5 + $0x28] sm:$0xff] (!%p337_p2)  ;;  %v937_v54 = vld [vmem:[%s2864_s5 + $0x30] sm:$0xff] (!%p337_p2)  ;;  %vm1025_vm3 = vcmask (!%p337_p2), 818176  }
   0xa   : > { %v2404_v43 = vpack.c.bf16 (!%p337_p2), %v932_v41, %v931_v40  ;;  %v935_v50 = vld [vmem:[%s2864_s5 + $0x20] sm:$0xff] (!%p337_p2)  ;;  %v938_v55 = vld [vmem:[%s2864_s5 + $0x38] sm:$0xff] (!%p337_p2)  ;;  %v940_v59 = vld [vmem:[%s2864_s5 + $0x48] sm:$0xff] (!%p337_p2)  ;;  %s2242_s12 = smov (!%p337_p2), 56   ;;  %s2243_s13 = smov (!%p337_p2), 64   ;;  %vm540_vm4 = vcmask (!%p337_p2), 1043456  }
   0xb   : > { %v968_v49 = vsel (!%p337_p2), %vm476_vm2, %v2421_v48, 0  ;;  %v2432_v52 = vpack.c.bf16 (!%p337_p2), %v936_v51, %v935_v50  ;;  %v2443_v56 = vpack.c.bf16 (!%p337_p2), %v938_v55, %v937_v54  ;;  %v939_v58 = vld [vmem:[%s2864_s5 + $0x40] sm:$0xff] (!%p337_p2)  ;;  %v941_v62 = vld [vmem:[%s2864_s5 + $0x50] sm:$0xff] (!%p337_p2)  ;;  %v942_v63 = vld [vmem:[%s2864_s5 + $0x58] sm:$0xff] (!%p337_p2)  ;;  %s2244_s14 = smov (!%p337_p2), 40   ;;  %s2245_s15 = smov (!%p337_p2), 48  }
   0xc   : > { %1941 = vmatpush3.bf16.msra.mxu0 (!%p337_p2), %v421_v13  ;;  %v965_v44 = vsel (!%p337_p2), %vm476_vm2, %v2404_v43, 0  ;;  %v2454_v60 = vpack.c.bf16 (!%p337_p2), %v940_v59, %v939_v58  ;;  %vm1048_vm5 = vcmask (!%p337_p2), 1041408   ;;  %vm929_vm6 = vcmask (!%p337_p2), 195584  }
   0xd   : > { %s2872_s18 = smov (!%p374_p3, %s1811_s18), 1  ;;  %1952 = vmatprep.subr.bf16.mxu0 %v2233_v10  ;;  %v971_v53 = vsel %vm476_vm2, %v2432_v52, 0  ;;  %v974_v57 = vsel %vm476_vm2, %v2443_v56, 0  ;;  %vm927_vm7 = vcmask 130048  }
   0xe   : > { %s1816_s19 = sshll.u32 %s2872_s18, 3  ;;  %v977_v61 = vsel %vm476_vm2, %v2454_v60, 0 }
   0xf   : > { %s2325_s22 = scalar_lea.vmem %s2859_s0, %s1816_s19 }
  0x10   : > { %v383_v0 = vld [vmem:[%s2325_s22] sm:$0xff] }
  0x11   : > { %v387_v1 = vsel %vm386_vm0, %v383_v0, 0.0 }
  0x12   : > { %388 = vadd.xlane.f32.xlu0 %v387_v1 }
  0x9f   : > { %v389_v2 = vpop.xlane.xlu0 %388 }
  0xa0   : > { %v391_v3 = vmul.f32 0.03125, %v389_v2  ;;  %v943_v2 = vld [vmem:[%s2864_s5 + $0x60] sm:$0xf] }
  0xa2   : > { %v392_v4 = vsub.f32 %v383_v0, %v391_v3  ;;  %v2465_v0 = vpack.c.bf16 %v942_v63, %v941_v62  ;;  %v2473_v3 = vpack.c.bf16 %v943_v2, %v943_v2  ;;  %v944_v2 = vld [vmem:[%s2865_s6] sm:$0xff] }
  0xa4   : > { %v393_v5 = vmul.f32 %v392_v4, %v392_v4  ;;  %v980_v1 = vsel %vm476_vm2, %v2465_v0, 0 }
  0xa6   : > { %v394_v6 = vsel %vm386_vm0, %v393_v5, 0.0 }
  0xa7   : > { %395 = vadd.xlane.f32.xlu0 %v394_v6 }
 0x134   : > { %v396_v14 = vpop.xlane.xlu0 %395 }
 0x135   : > { %v397_v15 = vmul.f32 0.03125, %v396_v14 }
 0x137   : > { %v398_v16 = vadd.f32 1e-05, %v397_v15 }
 0x139   : > { %2186 = vrsqrt.f32 %v398_v16 }
 0x143   : > { %v2187_v17 = vpop.eup %2186 }
 0x144   : > { %v400_v19 = vmul.f32 %v2187_v17, %v392_v4  ;;  %v983_v4 = vsel %vm476_vm2, %v2473_v3, 0 }
 0x146   : > { %v407_v21 = vmul.f32 %v1818_v18, %v400_v19 }
 0x148   : > { %v414_v22 = vadd.f32 %v1819_v20, %v407_v21 }
 0x14a   : > { %v419_v23 = vpack.c.bf16 %v414_v22, %v414_v22 }
 0x14c   : > { %1943 = vmatmul.mubr.msk.bf16.vlgmr.msra.gmra.mrb[0].mxu0 %vm386_vm0, %v419_v23 }
 0x14d   : > { %1954 = vmatprep.mubr.msk.bf16.mxu0 %vm2234_vm1, %v2233_v10 }
 0x21f   : > { %v466_v25 = vpop.f32.mrb[0].mxu0 }
 0x220   : > { %v467_v26 = vadd.f32 %v1820_v24, %v466_v25  ;;  %v1944_v27 = vpop.f32.mrb[1].mxu0 }
 0x221   : > { %v469_v28 = vpop.f32.mrb[2].mxu0 }
 0x222   : > { %v2362_v29 = vpack.c.bf16 %v467_v26, %v467_v26  ;;  %v1945_v30 = vpop.f32.mrb[3].mxu0 }
 0x224   : > { %696 = vrot.lane.b32.xlu0 %v2362_v29, %s2235_s21  ;;  %474 = vrot.lane.b32.xlu1 %v2362_v29, %s2236_s23  ;;  %s381_s23 = scalar_lea.vmem %s2870_s11, %s1816_s19 }
 0x228   : > { %586 = vrot.lane.b32.xlu1 %v2362_v29, %s2237_s24 }
 0x22c   : > { %584 = vrot.lane.b32.xlu1 %v2362_v29, %s2238_s25 }
 0x230   : > { %806 = vrot.lane.b32.xlu1 %v2362_v29, %s2239_s26 }
 0x234   : > { %694 = vrot.lane.b32.xlu1 %v2362_v29, %s2240_s27 }
 0x238   : > { %804 = vrot.lane.b32.xlu1 %v2362_v29, %s2241_s28 }
 0x296   : > { %v475_v31 = vpop.permute.xlu1 %474  ;;  %v697_v36 = vpop.permute.xlu0 %696 }
 0x297   : > { %v481_v32 = vsel %vm476_vm2, %v475_v31, 0  ;;  %v702_v37 = vsel %vm476_vm2, %v697_v36, 0 }
 0x298   : > { %1947 = vmatpush3.bf16.xpose.msra.mxu1 %v481_v32 }
 0x299   : > { %1958 = vmatprep.subr.bf16.mxu1 %v2233_v10 }
 0x29a   : > { %v587_v33 = vpop.permute.xlu1 %586 }
 0x29b   : > { %v592_v34 = vsel %vm476_vm2, %v587_v33, 0 }
 0x29e   : > { %v2382_v35 = vpop.permute.xlu1 %584 }
 0x29f   : > { %1949 = vmatmul.mubr.msk.bf16.vlgmr.msra.gmra.mrb[0].mxu1 %vm476_vm2, %v2362_v29 }
 0x2a0   : > { %1959 = vmatpush3.bf16.xpose.msra.mxu1 %v592_v34  ;;  %1960 = vmatprep.mubr.msk.bf16.mxu1 %vm2234_vm1, %v2233_v10 }
 0x2a1   : > { %1970 = vmatprep.subr.bf16.mxu1 %v2233_v10 }
 0x2a2   : > { %v807_v38 = vpop.permute.xlu1 %806 }
 0x2a3   : > { %v812_v42 = vsel %vm476_vm2, %v807_v38, 0 }
 0x2a6   : > { %v2390_v39 = vpop.permute.xlu1 %694 }
 0x2a7   : > { %1961 = vmatmul.mubr.msk.bf16.vlgmr.msra.gmra.mrb[4].mxu1 %vm476_vm2, %v2382_v35 }
 0x2a8   : > { %1971 = vmatpush3.bf16.xpose.msra.mxu1 %v702_v37  ;;  %1972 = vmatprep.mubr.msk.bf16.mxu1 %vm2234_vm1, %v2233_v10 }
 0x2a9   : > { %1982 = vmatprep.subr.bf16.mxu1 %v2233_v10 }
 0x2aa   : > { %v2408_v45 = vpop.permute.xlu1 %804 }
 0x2af   : > { %1973 = vmatmul.mubr.msk.bf16.vlgmr.msra.gmra.mrb[8].mxu1 %vm476_vm2, %v2390_v39 }
 0x2b0   : > { %1983 = vmatpush3.bf16.xpose.msra.mxu1 %v812_v42  ;;  %1984 = vmatprep.mubr.msk.bf16.mxu1 %vm2234_vm1, %v2233_v10 }
 0x2b1   : > { %1994 = vmatprep.subr.bf16.mxu1 %v2233_v10 }
 0x2b7   : > { %1985 = vmatmul.mubr.msk.bf16.vlgmr.msra.gmra.mrb[12].mxu1 %vm476_vm2, %v2408_v45 }
 0x2b8   : > { %1995 = vmatpush3.bf16.xpose.msra.mxu1 %v965_v44  ;;  %2008 = vmatprep.mubr.msk.bf16.mxu1 %vm2234_vm1, %v2233_v10 }
 0x2b9   : > { %1996 = vmatprep.subr.bf16.mxu1 %v2233_v10 }
 0x2c0   : > { %1997 = vmatpush3.bf16.xpose.msra.mxu1 %v968_v49 }
 0x2c1   : > { %1998 = vmatprep.subr.bf16.mxu1 %v2233_v10 }
 0x2c8   : > { %1999 = vmatpush3.bf16.xpose.msra.mxu1 %v971_v53 }
 0x2c9   : > { %2000 = vmatprep.subr.bf16.mxu1 %v2233_v10 }
 0x2d0   : > { %2001 = vmatpush3.bf16.xpose.msra.mxu1 %v974_v57 }
 0x2d1   : > { %2002 = vmatprep.subr.bf16.mxu1 %v2233_v10 }
 0x2d8   : > { %2003 = vmatpush3.bf16.xpose.msra.mxu1 %v977_v61 }
 0x2d9   : > { %2004 = vmatprep.subr.bf16.mxu1 %v2233_v10 }
 0x2e0   : > { %2005 = vmatpush3.bf16.xpose.msra.mxu1 %v980_v1 }
 0x2e1   : > { %2006 = vmatprep.subr.bf16.mxu1 %v2233_v10 }
 0x2e8   : > { %2007 = vmatpush3.bf16.xpose.msra.mxu1 %v983_v4  ;;  %v945_v4 = vld [vmem:[%s2865_s6 + $0x8] sm:$0xff] }
 0x2e9   : > { %2048 = vmatprep.subr.bf16.mxu1 %v2233_v10 }
 0x2ef   : > { %2009 = vmatmul.mubr.msk.bf16.vlgmr.msra.gmra.mrb[16].mxu1 %vm476_vm2, %v2362_v29 }
 0x2f0   : > { %2062 = vmatprep.mubr.msk.bf16.mxu1 %vm2234_vm1, %v2233_v10 }
 0x372   : > { %v517_v5 = vpop.f32.mrb[0].mxu1 }
 0x373   : > { %v1950_v6 = vpop.f32.mrb[1].mxu1  ;;  %v523_v7 = vsel %vm476_vm2, %v517_v5, -inf }
 0x374   : > { %524 = vmax.xlane.f32.xlu1 %v523_v7  ;;  %v520_v8 = vpop.f32.mrb[2].mxu1 }
 0x375   : > { %v1951_v9 = vpop.f32.mrb[3].mxu1 }
 0x37a   : > { %v628_v11 = vpop.f32.mrb[4].mxu1 }
 0x37b   : > { %v1962_v12 = vpop.f32.mrb[5].mxu1  ;;  %v634_v13 = vsel %vm476_vm2, %v628_v11, -inf }
 0x37c   : > { %635 = vmax.xlane.f32.xlu0 %v634_v13  ;;  %v631_v14 = vpop.f32.mrb[6].mxu1 }
 0x37d   : > { %v1963_v15 = vpop.f32.mrb[7].mxu1 }
 0x382   : > { %v738_v16 = vpop.f32.mrb[8].mxu1 }
 0x383   : > { %v1974_v17 = vpop.f32.mrb[9].mxu1  ;;  %v744_v18 = vsel %vm476_vm2, %v738_v16, -inf }
 0x384   : > { %745 = vmax.xlane.f32.xlu1 %v744_v18  ;;  %v741_v19 = vpop.f32.mrb[10].mxu1 }
 0x385   : > { %v1975_v20 = vpop.f32.mrb[11].mxu1 }
 0x38a   : > { %v848_v21 = vpop.f32.mrb[12].mxu1 }
 0x38b   : > { %v1986_v22 = vpop.f32.mrb[13].mxu1  ;;  %v854_v23 = vsel %vm476_vm2, %v848_v21, -inf }
 0x38c   : > { %855 = vmax.xlane.f32.xlu0 %v854_v23  ;;  %v851_v24 = vpop.f32.mrb[14].mxu1 }
 0x38d   : > { %v1987_v25 = vpop.f32.mrb[15].mxu1 }
 0x3c2   : > { %v1019_v26 = vpop.f32.mrb[16].mxu1 }
 0x3c3   : > { %v2010_v27 = vpop.f32.mrb[17].mxu1  ;;  %v1026_v28 = vsel %vm1025_vm3, %v1019_v26, -inf }
 0x3c4   : > { %1027 = vmax.xlane.f32.xlu1 %v1026_v28  ;;  %v1022_v30 = vpop.f32.mrb[18].mxu1 }
 0x3c5   : > { %v2011_v31 = vpop.f32.mrb[19].mxu1 }
 0x3c6   : > { %v946_v31 = vld [vmem:[%s2865_s6 + $0x10] sm:$0xff] }
 0x401   : > { %v525_v32 = vpop.xlane.xlu1 %524 }
 0x402   : > { %v526_v33 = vsub.f32 %v517_v5, %v525_v32  ;;  %v2522_v5 = vpack.c.bf16 %v945_v4, %v944_v2  ;;  %v947_v32 = vld [vmem:[%s2865_s6 + $0x18] sm:$0xff] }
 0x404   : > { %v527_v34 = vmul.f32 1.442695, %v526_v33  ;;  %v2552_v33 = vpack.c.bf16 %v947_v32, %v946_v31 }
 0x406   : > { %2188 = vpow2.f32 %v527_v34  ;;  %v948_v34 = vld [vmem:[%s2865_s6 + $0x20] sm:$0xff] }
 0x409   : > { %v636_v36 = vpop.xlane.xlu0 %635 }
 0x40a   : > { %v637_v37 = vsub.f32 %v628_v11, %v636_v36  ;;  %v949_v36 = vld [vmem:[%s2865_s6 + $0x28] sm:$0xff] }
 0x40c   : > { %v638_v38 = vmul.f32 1.442695, %v637_v37  ;;  %v2564_v37 = vpack.c.bf16 %v949_v36, %v948_v34 }
 0x40e   : > { %2190 = vpow2.f32 %v638_v38  ;;  %v950_v38 = vld [vmem:[%s2865_s6 + $0x30] sm:$0xff] }
 0x410   : > { %v2189_v40 = vpop.eup %2188 }
 0x411   : > { %v746_v41 = vpop.xlane.xlu1 %745  ;;  %v529_v42 = vsel %vm476_vm2, %v2189_v40, 0.0 }
 0x412   : > { %v747_v44 = vsub.f32 %v738_v16, %v746_v41  ;;  %530 = vadd.xlane.f32.xlu0 %v529_v42  ;;  %v952_v42 = vld [vmem:[%s2865_s6 + $0x40] sm:$0xff] }
 0x414   : > { %v748_v46 = vmul.f32 1.442695, %v747_v44  ;;  %v953_v44 = vld [vmem:[%s2865_s6 + $0x48] sm:$0xff] }
 0x416   : > { %2192 = vpow2.f32 %v748_v46  ;;  %v2584_v46 = vpack.c.bf16 %v953_v44, %v952_v42 }
 0x418   : > { %v2191_v47 = vpop.eup %2190 }
 0x419   : > { %v640_v49 = vsel %vm476_vm2, %v2191_v47, 0.0  ;;  %v856_v53 = vpop.xlane.xlu0 %855 }
 0x41a   : > { %641 = vadd.xlane.f32.xlu1 %v640_v49  ;;  %v857_v54 = vsub.f32 %v848_v21, %v856_v53  ;;  %v955_v49 = vld [vmem:[%s2865_s6 + $0x58] sm:$0xff] }
 0x41c   : > { %v858_v55 = vmul.f32 1.442695, %v857_v54 }
 0x41e   : > { %2194 = vpow2.f32 %v858_v55 }
 0x420   : > { %v2489_v50 = vpop.eup %2192 }
 0x421   : > { %v750_v51 = vsel %vm476_vm2, %v2489_v50, 0.0 }
 0x422   : > { %751 = vadd.xlane.f32.xlu0 %v750_v51 }
 0x428   : > { %v2195_v57 = vpop.eup %2194 }
 0x429   : > { %v860_v58 = vsel %vm476_vm2, %v2195_v57, 0.0 }
 0x42b   : > { %646 = vrot.lane.b32.xlu1 %v2362_v29, %s2242_s12 }
 0x438   : > { %535 = vrot.lane.b32.xlu0 %v2362_v29, %s2243_s13  ;;  %s2248_s13 = smov 24  }
 0x43c   : > { %866 = vrot.lane.b32.xlu0 %v2362_v29, %s2244_s14 }
 0x440   : > { %1099 = vrot.lane.b32.xlu0 %v2404_v43, %s2238_s25 }
 0x444   : > { %1101 = vrot.lane.b32.xlu0 %v2421_v48, %s2238_s25 }
 0x448   : > { %1103 = vrot.lane.b32.xlu0 %v2432_v52, %s2238_s25 }
 0x44c   : > { %1105 = vrot.lane.b32.xlu0 %v2443_v56, %s2238_s25 }
 0x44f   : > { %861 = vadd.xlane.f32.xlu1 %v860_v58 }
 0x450   : > { %1107 = vrot.lane.b32.xlu0 %v2454_v60, %s2238_s25 }
 0x451   : > { %v1028_v59 = vpop.xlane.xlu1 %1027 }
 0x452   : > { %v1029_v61 = vsub.f32 %v1019_v26, %v1028_v59 }
 0x454   : > { %1109 = vrot.lane.b32.xlu0 %v2465_v0, %s2238_s25  ;;  %v1030_v62 = vmul.f32 1.442695, %v1029_v61 }
 0x456   : > { %2196 = vpow2.f32 %v1030_v62 }
 0x458   : > { %1111 = vrot.lane.b32.xlu0 %v2473_v3, %s2238_s25 }
 0x460   : > { %756 = vrot.lane.b32.xlu1 %v2362_v29, %s2245_s15  ;;  %v2512_v63 = vpop.eup %2196 }
 0x461   : > { %v1032_v1 = vsel %vm1025_vm3, %v2512_v63, 0.0 }
 0x484   : > { %1033 = vadd.xlane.f32.xlu1 %v1032_v1 }
 0x495   : > { %1193 = vrot.lane.b32.xlu1 %v2522_v5, %s2238_s25 }
 0x49f   : > { %v531_v29 = vpop.xlane.xlu0 %530 }
 0x4a0   : > { %2198 = vrcp.f32 %v531_v29 }
 0x4a7   : > { %v642_v6 = vpop.xlane.xlu1 %641 }
 0x4a8   : > { %2200 = vrcp.f32 %v642_v6 }
 0x4aa   : > { %v2199_v7 = vpop.eup %2198 }
 0x4ab   : > { %v533_v9 = vmul.f32 %v2199_v7, %v2189_v40  ;;  %v647_v13 = vpop.permute.xlu1 %646  ;;  %v951_v40 = vld [vmem:[%s2865_s6 + $0x38] sm:$0xff] }
 0x4ac   : > { %v652_v16 = vsel %vm540_vm4, %v647_v13, 0  ;;  %v2574_v41 = vpack.c.bf16 %v951_v40, %v950_v38 }
 0x4ad   : > { %v534_v14 = vpack.c.bf16 %v533_v9, %v533_v9 }
 0x4af   : > { %v752_v8 = vpop.xlane.xlu0 %751 }
 0x4b0   : > { %2202 = vrcp.f32 %v752_v8 }
 0x4b2   : > { %v2201_v15 = vpop.eup %2200 }
 0x4b3   : > { %v536_v11 = vpop.permute.xlu0 %535  ;;  %v644_v17 = vmul.f32 %v2201_v15, %v2191_v47  ;;  %v954_v47 = vld [vmem:[%s2865_s6 + $0x50] sm:$0xff] }
 0x4b4   : > { %v542_v12 = vsel %vm540_vm4, %v536_v11, 0  ;;  %v2597_v51 = vpack.c.bf16 %v955_v49, %v954_v47 }
 0x4b5   : > { %1953 = vmatpush3.bf16.msra.mxu0 %v542_v12  ;;  %v645_v18 = vpack.c.bf16 %v644_v17, %v644_v17 }
 0x4b6   : > { %1964 = vmatprep.subr.bf16.mxu0 %v2233_v10 }
 0x4b7   : > { %v867_v24 = vpop.permute.xlu0 %866 }
 0x4b8   : > { %1955 = vmatmul.mubr.msk.bf16.vlgmr.msra.gmra.mrb[4].mxu0 %vm476_vm2, %v534_v14  ;;  %v872_v26 = vsel %vm540_vm4, %v867_v24, 0 }
 0x4b9   : > { %1965 = vmatpush3.bf16.msra.mxu0 %v652_v16  ;;  %1966 = vmatprep.mubr.msk.bf16.mxu0 %vm2234_vm1, %v2233_v10 }
 0x4ba   : > { %1976 = vmatprep.subr.bf16.mxu0 %v2233_v10  ;;  %v2203_v19 = vpop.eup %2202 }
 0x4bb   : > { %v754_v21 = vmul.f32 %v2203_v19, %v2489_v50  ;;  %v956_v50 = vld [vmem:[%s2865_s6 + $0x60] sm:$0xf]  ;;  %v1100_v58 = vpop.permute.xlu0 %1099 }
 0x4bc   : > { %v2600_v53 = vpack.c.bf16 %v956_v50, %v956_v50  ;;  %v1114_v61 = vsel %vm476_vm2, %v1100_v58, 0 }
 0x4bd   : > { %v755_v25 = vpack.c.bf16 %v754_v21, %v754_v21 }
 0x4be   : > { %v1050_v54 = vsel %vm1048_vm5, %v2600_v53, 0 }
 0x4bf   : > { %v1102_v1 = vpop.permute.xlu0 %1101 }
 0x4c0   : > { %1967 = vmatmul.mubr.msk.bf16.vlgmr.msra.gmra.mrb[8].mxu0 %vm476_vm2, %v645_v18  ;;  %v1117_v2 = vsel %vm476_vm2, %v1102_v1, 0 }
 0x4c1   : > { %1978 = vmatprep.mubr.msk.bf16.mxu0 %vm2234_vm1, %v2233_v10 }
 0x4c3   : > { %v1104_v4 = vpop.permute.xlu0 %1103 }
 0x4c7   : > { %v1106_v29 = vpop.permute.xlu0 %1105 }
 0x4c8   : > { %v1123_v6 = vsel %vm476_vm2, %v1106_v29, 0 }
 0x4cb   : > { %v1108_v7 = vpop.permute.xlu0 %1107 }
 0x4cc   : > { %v1126_v8 = vsel %vm476_vm2, %v1108_v7, 0 }
 0x4cf   : > { %v1110_v9 = vpop.permute.xlu0 %1109 }
 0x4d0   : > { %v1129_v11 = vsel %vm476_vm2, %v1110_v9, 0 }
 0x4d3   : > { %v1112_v12 = vpop.permute.xlu0 %1111 }
 0x4d4   : > { %v1132_v13 = vsel %vm476_vm2, %v1112_v12, 0 }
 0x4dc   : > { %v862_v20 = vpop.xlane.xlu1 %861 }
 0x4dd   : > { %2204 = vrcp.f32 %v862_v20 }
 0x4e0   : > { %v757_v22 = vpop.permute.xlu1 %756 }
 0x4e1   : > { %v762_v23 = vsel %vm540_vm4, %v757_v22, 0 }
 0x4e2   : > { %1977 = vmatpush3.bf16.msra.mxu0 %v762_v23 }
 0x4e3   : > { %1988 = vmatprep.subr.bf16.mxu0 %v2233_v10 }
 0x4e5   : > { %1979 = vmatmul.mubr.msk.bf16.vlgmr.msra.gmra.mrb[12].mxu0 %vm476_vm2, %v755_v25 }
 0x4e6   : > { %1989 = vmatpush3.bf16.msra.mxu0 %v872_v26  ;;  %1990 = vmatprep.mubr.msk.bf16.mxu0 %vm2234_vm1, %v2233_v10 }
 0x4e7   : > { %v2205_v27 = vpop.eup %2204  ;;  %2012 = vmatprep.subr.bf16.mxu0 %v2233_v10 }
 0x4e8   : > { %v864_v28 = vmul.f32 %v2205_v27, %v2195_v57 }
 0x4ea   : > { %v865_v30 = vpack.c.bf16 %v864_v28, %v864_v28 }
 0x4ed   : > { %1991 = vmatmul.mubr.msk.bf16.vlgmr.msra.gmra.mrb[16].mxu0 %vm476_vm2, %v865_v30 }
 0x4ee   : > { %2013 = vmatpush3.bf16.msra.mxu0 %v2522_v5  ;;  %2026 = vmatprep.mubr.msk.bf16.mxu0 %vm2234_vm1, %v2233_v10 }
 0x4ef   : > { %2014 = vmatprep.subr.bf16.mxu0 %v2233_v10 }
 0x4f2   : > { %2015 = vmatpush3.bf16.msra.mxu0 %v2552_v33 }
 0x4f3   : > { %2016 = vmatprep.subr.bf16.mxu0 %v2233_v10 }
 0x4f6   : > { %2017 = vmatpush3.bf16.msra.mxu0 %v2564_v37 }
 0x4f7   : > { %2018 = vmatprep.subr.bf16.mxu0 %v2233_v10 }
 0x4fa   : > { %2019 = vmatpush3.bf16.msra.mxu0 %v2574_v41 }
 0x4fb   : > { %2020 = vmatprep.subr.bf16.mxu0 %v2233_v10 }
 0x4fe   : > { %2021 = vmatpush3.bf16.msra.mxu0 %v2584_v46 }
 0x4ff   : > { %2022 = vmatprep.subr.bf16.mxu0 %v2233_v10 }
 0x502   : > { %2023 = vmatpush3.bf16.msra.mxu0 %v2597_v51 }
 0x503   : > { %2024 = vmatprep.subr.bf16.mxu0 %v2233_v10 }
 0x506   : > { %2025 = vmatpush3.bf16.msra.mxu0 %v1050_v54 }
 0x507   : > { %2030 = vmatprep.subr.bf16.mxu0 %v2233_v10 }
 0x511   : > { %v1034_v55 = vpop.xlane.xlu1 %1033 }
 0x512   : > { %2206 = vrcp.f32 %v1034_v55 }
 0x515   : > { %v1194_v47 = vpop.permute.xlu1 %1193 }
 0x516   : > { %2049 = vmatpush3.bf16.msra.mxu1 %v1194_v47 }
 0x517   : > { %2050 = vmatprep.subr.bf16.mxu1 %v2233_v10 }
 0x51c   : > { %v2207_v57 = vpop.eup %2206 }
 0x51d   : > { %v1036_v59 = vmul.f32 %v2207_v57, %v2512_v63  ;;  %v1120_v63 = vsel %vm476_vm2, %v1104_v4, 0 }
 0x51f   : > { %v1037_v62 = vpack.c.bf16 %v1036_v59, %v1036_v59 }
 0x521   : > { %2027 = vmatmul.mubr.msk.bf16.vlgmr.msra.gmra.mrb[20].mxu0 %vm1025_vm3, %v1037_v62 }
 0x522   : > { %2031 = vmatpush3.bf16.xpose.msra.mxu0 %v1114_v61  ;;  %2044 = vmatprep.mubr.msk.bf16.mxu0 %vm2234_vm1, %v2233_v10 }
 0x523   : > { %2032 = vmatprep.subr.bf16.mxu0 %v2233_v10 }
 0x52a   : > { %2033 = vmatpush3.bf16.xpose.msra.mxu0 %v1117_v2 }
 0x52b   : > { %2034 = vmatprep.subr.bf16.mxu0 %v2233_v10 }
 0x532   : > { %2035 = vmatpush3.bf16.xpose.msra.mxu0 %v1120_v63 }
 0x533   : > { %2036 = vmatprep.subr.bf16.mxu0 %v2233_v10 }
 0x53a   : > { %2037 = vmatpush3.bf16.xpose.msra.mxu0 %v1123_v6 }
 0x53b   : > { %2038 = vmatprep.subr.bf16.mxu0 %v2233_v10 }
 0x542   : > { %2039 = vmatpush3.bf16.xpose.msra.mxu0 %v1126_v8 }
 0x543   : > { %2040 = vmatprep.subr.bf16.mxu0 %v2233_v10 }
 0x54a   : > { %2041 = vmatpush3.bf16.xpose.msra.mxu0 %v1129_v11 }
 0x54b   : > { %2042 = vmatprep.subr.bf16.mxu0 %v2233_v10 }
 0x552   : > { %2043 = vmatpush3.bf16.xpose.msra.mxu0 %v1132_v13 }
 0x553   : > { %2084 = vmatprep.subr.bf16.mxu0 %v2233_v10 }
 0x559   : > { %2045 = vmatmul.mubr.msk.bf16.vlgmr.msra.gmra.mrb[24].mxu0 %vm476_vm2, %v2382_v35 }
 0x55a   : > { %2098 = vmatprep.mubr.msk.bf16.mxu0 %vm2234_vm1, %v2233_v10 }
 0x58b   : > { %v2629_v14 = vpop.f32.mrb[4].mxu0 }
 0x58c   : > { %v1956_v15 = vpop.f32.mrb[5].mxu0 }
 0x58d   : > { %v581_v16 = vpop.f32.mrb[6].mxu0 }
 0x58e   : > { %v1957_v17 = vpop.f32.mrb[7].mxu0 }
 0x593   : > { %v2631_v18 = vpop.f32.mrb[8].mxu0 }
 0x594   : > { %v1968_v19 = vpop.f32.mrb[9].mxu0 }
 0x595   : > { %v691_v20 = vpop.f32.mrb[10].mxu0 }
 0x596   : > { %v1969_v21 = vpop.f32.mrb[11].mxu0 }
 0x5b8   : > { %v2633_v22 = vpop.f32.mrb[12].mxu0 }
 0x5b9   : > { %v1980_v23 = vpop.f32.mrb[13].mxu0 }
 0x5ba   : > { %v801_v24 = vpop.f32.mrb[14].mxu0 }
 0x5bb   : > { %v1981_v25 = vpop.f32.mrb[15].mxu0 }
 0x5c0   : > { %v2635_v26 = vpop.f32.mrb[16].mxu0 }
 0x5c1   : > { %v1992_v35 = vpop.f32.mrb[17].mxu0 }
 0x5c2   : > { %v911_v27 = vpop.f32.mrb[18].mxu0 }
 0x5c3   : > { %v1993_v28 = vpop.f32.mrb[19].mxu0 }
 0x5f4   : > { %v2637_v30 = vpop.f32.mrb[20].mxu0 }
 0x5f5   : > { %v2028_v31 = vpop.f32.mrb[21].mxu0 }
 0x5f6   : > { %v1089_v32 = vpop.f32.mrb[22].mxu0 }
 0x5f7   : > { %v2029_v34 = vpop.f32.mrb[23].mxu0 }
 0x62c   : > { %v1168_v36 = vpop.f32.mrb[24].mxu0 }
 0x62d   : > { %v2046_v38 = vpop.f32.mrb[25].mxu0  ;;  %v1174_v40 = vsel %vm1025_vm3, %v1168_v36, -inf }
 0x62e   : > { %1175 = vmax.xlane.f32.xlu0 %v1174_v40  ;;  %v1171_v42 = vpop.f32.mrb[26].mxu0 }
 0x62f   : > { %v2047_v44 = vpop.f32.mrb[27].mxu0 }
 0x644   : > { %1195 = vrot.lane.b32.xlu0 %v2552_v33, %s2238_s25 }
 0x648   : > { %1197 = vrot.lane.b32.xlu0 %v2564_v37, %s2238_s25 }
 0x64c   : > { %1199 = vrot.lane.b32.xlu0 %v2574_v41, %s2238_s25 }
 0x650   : > { %1203 = vrot.lane.b32.xlu0 %v2597_v51, %s2238_s25 }
 0x654   : > { %1205 = vrot.lane.b32.xlu0 %v2600_v53, %s2238_s25 }
 0x658   : > { %1259 = vrot.lane.b32.xlu0 %v2404_v43, %s2240_s27 }
 0x65c   : > { %1261 = vrot.lane.b32.xlu0 %v2421_v48, %s2240_s27 }
 0x660   : > { %1265 = vrot.lane.b32.xlu0 %v2443_v56, %s2240_s27 }
 0x664   : > { %1269 = vrot.lane.b32.xlu0 %v2465_v0, %s2240_s27 }
 0x6bb   : > { %v1176_v49 = vpop.xlane.xlu0 %1175 }
 0x6bc   : > { %v1177_v50 = vsub.f32 %v1168_v36, %v1176_v49 }
 0x6be   : > { %v1178_v54 = vmul.f32 1.442695, %v1177_v50 }
 0x6bf   : > { %v1196_v55 = vpop.permute.xlu0 %1195 }
 0x6c0   : > { %2208 = vpow2.f32 %v1178_v54  ;;  %2051 = vmatpush3.bf16.msra.mxu1 %v1196_v55 }
 0x6c1   : > { %2052 = vmatprep.subr.bf16.mxu1 %v2233_v10 }
 0x6c3   : > { %v1198_v57 = vpop.permute.xlu0 %1197 }
 0x6c4   : > { %2053 = vmatpush3.bf16.msra.mxu1 %v1198_v57 }
 0x6c5   : > { %2054 = vmatprep.subr.bf16.mxu1 %v2233_v10 }
 0x6c7   : > { %v1200_v61 = vpop.permute.xlu0 %1199 }
 0x6c8   : > { %2055 = vmatpush3.bf16.msra.mxu1 %v1200_v61 }
 0x6c9   : > { %2056 = vmatprep.subr.bf16.mxu1 %v2233_v10 }
 0x6ca   : > { %v2209_v58 = vpop.eup %2208 }
 0x6cb   : > { %v1180_v59 = vsel %vm1025_vm3, %v2209_v58, 0.0  ;;  %v1204_v1 = vpop.permute.xlu0 %1203 }
 0x6cc   : > { %1181 = vadd.xlane.f32.xlu1 %v1180_v59 }
 0x6cf   : > { %v1206_v4 = vpop.permute.xlu0 %1205 }
 0x6d0   : > { %v1217_v63 = vsel %vm1048_vm5, %v1206_v4, 0 }
 0x6d3   : > { %v1260_v8 = vpop.permute.xlu0 %1259 }
 0x6d4   : > { %v1274_v9 = vsel %vm476_vm2, %v1260_v8, 0 }
 0x6d7   : > { %v1262_v11 = vpop.permute.xlu0 %1261 }
 0x6d8   : > { %v1277_v12 = vsel %vm476_vm2, %v1262_v11, 0 }
 0x6db   : > { %v1266_v16 = vpop.permute.xlu0 %1265 }
 0x6dc   : > { %v1283_v17 = vsel %vm476_vm2, %v1266_v16, 0 }
 0x6dd   : > { %1201 = vrot.lane.b32.xlu1 %v2584_v46, %s2238_s25  ;;  %s2246_s25 = smov 8  }
 0x6df   : > { %v1270_v21 = vpop.permute.xlu0 %1269 }
 0x6e0   : > { %v1289_v23 = vsel %vm476_vm2, %v1270_v21, 0 }
 0x6e1   : > { %1263 = vrot.lane.b32.xlu1 %v2432_v52, %s2240_s27 }
 0x6e5   : > { %1267 = vrot.lane.b32.xlu1 %v2454_v60, %s2240_s27 }
 0x6e9   : > { %1271 = vrot.lane.b32.xlu1 %v2473_v3, %s2240_s27 }
 0x6ed   : > { %1346 = vrot.lane.b32.xlu1 %v2522_v5, %s2240_s27 }
 0x6f1   : > { %1350 = vrot.lane.b32.xlu1 %v2564_v37, %s2240_s27 }
 0x6f5   : > { %1356 = vrot.lane.b32.xlu1 %v2597_v51, %s2240_s27 }
 0x759   : > { %v1182_v62 = vpop.xlane.xlu1 %1181 }
 0x75a   : > { %2210 = vrcp.f32 %v1182_v62 }
 0x75d   : > { %v1202_v2 = vpop.permute.xlu1 %1201 }
 0x75e   : > { %2057 = vmatpush3.bf16.msra.mxu1 %v1202_v2 }
 0x75f   : > { %2058 = vmatprep.subr.bf16.mxu1 %v2233_v10 }
 0x761   : > { %v1264_v13 = vpop.permute.xlu1 %1263 }
 0x762   : > { %2059 = vmatpush3.bf16.msra.mxu1 %v1204_v1  ;;  %v1280_v15 = vsel %vm476_vm2, %v1264_v13, 0 }
 0x763   : > { %2060 = vmatprep.subr.bf16.mxu1 %v2233_v10 }
 0x764   : > { %v2211_v29 = vpop.eup %2210 }
 0x765   : > { %v1184_v6 = vmul.f32 %v2211_v29, %v2209_v58  ;;  %v1268_v19 = vpop.permute.xlu1 %1267 }
 0x766   : > { %2061 = vmatpush3.bf16.msra.mxu1 %v1217_v63  ;;  %v1286_v20 = vsel %vm476_vm2, %v1268_v19, 0 }
 0x767   : > { %v1185_v7 = vpack.c.bf16 %v1184_v6, %v1184_v6  ;;  %2066 = vmatprep.subr.bf16.mxu1 %v2233_v10 }
 0x769   : > { %2063 = vmatmul.mubr.msk.bf16.vlgmr.msra.gmra.mrb[20].mxu1 %vm1025_vm3, %v1185_v7  ;;  %v1272_v24 = vpop.permute.xlu1 %1271 }
 0x76a   : > { %2080 = vmatprep.mubr.msk.bf16.mxu1 %vm2234_vm1, %v2233_v10  ;;  %v1292_v25 = vsel %vm476_vm2, %v1272_v24, 0 }
 0x76f   : > { %2067 = vmatpush3.bf16.xpose.msra.mxu1 %v1274_v9 }
 0x770   : > { %2068 = vmatprep.subr.bf16.mxu1 %v2233_v10 }
 0x777   : > { %2069 = vmatpush3.bf16.xpose.msra.mxu1 %v1277_v12 }
 0x778   : > { %2070 = vmatprep.subr.bf16.mxu1 %v2233_v10 }
 0x77f   : > { %2071 = vmatpush3.bf16.xpose.msra.mxu1 %v1280_v15 }
 0x780   : > { %2072 = vmatprep.subr.bf16.mxu1 %v2233_v10 }
 0x787   : > { %2073 = vmatpush3.bf16.xpose.msra.mxu1 %v1283_v17 }
 0x788   : > { %2074 = vmatprep.subr.bf16.mxu1 %v2233_v10 }
 0x78f   : > { %2075 = vmatpush3.bf16.xpose.msra.mxu1 %v1286_v20 }
 0x790   : > { %2076 = vmatprep.subr.bf16.mxu1 %v2233_v10 }
 0x797   : > { %2077 = vmatpush3.bf16.xpose.msra.mxu1 %v1289_v23 }
 0x798   : > { %2078 = vmatprep.subr.bf16.mxu1 %v2233_v10 }
 0x79f   : > { %2079 = vmatpush3.bf16.xpose.msra.mxu1 %v1292_v25 }
 0x7a0   : > { %2120 = vmatprep.subr.bf16.mxu1 %v2233_v10 }
 0x7a6   : > { %2081 = vmatmul.mubr.msk.bf16.vlgmr.msra.gmra.mrb[24].mxu1 %vm476_vm2, %v2390_v39  ;;  %v1347_v39 = vpop.permute.xlu1 %1346 }
 0x7a7   : > { %2134 = vmatprep.mubr.msk.bf16.mxu1 %vm2234_vm1, %v2233_v10  ;;  %2085 = vmatpush3.bf16.msra.mxu0 %v1347_v39 }
 0x7a8   : > { %2086 = vmatprep.subr.bf16.mxu0 %v2233_v10 }
 0x7aa   : > { %v1351_v50 = vpop.permute.xlu1 %1350 }
 0x7ae   : > { %v1357_v55 = vpop.permute.xlu1 %1356 }
 0x83c   : > { %v2702_v35 = vpop.f32.mrb[20].mxu1 }
 0x83d   : > { %v2064_v27 = vpop.f32.mrb[21].mxu1 }
 0x83e   : > { %v1256_v28 = vpop.f32.mrb[22].mxu1 }
 0x83f   : > { %v2065_v31 = vpop.f32.mrb[23].mxu1  ;;  %v1580_v28 = vld [vmem:[%s2866_s7] sm:$0xff] }
 0x840   : > { %v1581_v31 = vld [vmem:[%s2866_s7 + $0x8] sm:$0xff] }
 0x879   : > { %v1328_v32 = vpop.f32.mrb[24].mxu1 }
 0x87a   : > { %v2082_v34 = vpop.f32.mrb[25].mxu1  ;;  %v1334_v36 = vsel %vm1025_vm3, %v1328_v32, -inf }
 0x87b   : > { %1335 = vmax.xlane.f32.xlu0 %v1334_v36  ;;  %v1331_v38 = vpop.f32.mrb[26].mxu1 }
 0x87c   : > { %v2083_v40 = vpop.f32.mrb[27].mxu1 }
 0x891   : > { %1348 = vrot.lane.b32.xlu0 %v2552_v33, %s2240_s27 }
 0x895   : > { %1352 = vrot.lane.b32.xlu0 %v2574_v41, %s2240_s27 }
 0x899   : > { %1354 = vrot.lane.b32.xlu0 %v2584_v46, %s2240_s27 }
 0x89d   : > { %1358 = vrot.lane.b32.xlu0 %v2600_v53, %s2240_s27  ;;  %s2247_s27 = smov 16  }
 0x8a1   : > { %1414 = vrot.lane.b32.xlu0 %v2421_v48, %s2241_s28 }
 0x8a5   : > { %1418 = vrot.lane.b32.xlu0 %v2443_v56, %s2241_s28 }
 0x8a9   : > { %1422 = vrot.lane.b32.xlu0 %v2465_v0, %s2241_s28 }
 0x908   : > { %v1336_v42 = vpop.xlane.xlu0 %1335 }
 0x909   : > { %v1337_v44 = vsub.f32 %v1328_v32, %v1336_v42  ;;  %v1589_v32 = vpack.c.bf16 %v1581_v31, %v1580_v28  ;;  %v1843_v28 = vld [vmem:[%s2869_s10] ss:$0 sm:$0xff] }
 0x90a   : > { %v2224_v31 = vld [vmem:[%s2325_s22] sm:$0xff] }
 0x90b   : > { %v1338_v47 = vmul.f32 1.442695, %v1337_v44 }
 0x90c   : > { %v1349_v49 = vpop.permute.xlu0 %1348 }
 0x90d   : > { %2212 = vpow2.f32 %v1338_v47  ;;  %2087 = vmatpush3.bf16.msra.mxu0 %v1349_v49 }
 0x90e   : > { %2088 = vmatprep.subr.bf16.mxu0 %v2233_v10 }
 0x910   : > { %v1353_v48 = vpop.permute.xlu0 %1352 }
 0x911   : > { %2089 = vmatpush3.bf16.msra.mxu0 %v1351_v50 }
 0x912   : > { %2090 = vmatprep.subr.bf16.mxu0 %v2233_v10 }
 0x914   : > { %v1355_v56 = vpop.permute.xlu0 %1354 }
 0x915   : > { %2091 = vmatpush3.bf16.msra.mxu0 %v1353_v48 }
 0x916   : > { %2092 = vmatprep.subr.bf16.mxu0 %v2233_v10 }
 0x917   : > { %v2213_v0 = vpop.eup %2212 }
 0x918   : > { %v1340_v54 = vsel %vm1025_vm3, %v2213_v0, 0.0  ;;  %v1359_v57 = vpop.permute.xlu0 %1358 }
 0x919   : > { %1341 = vadd.xlane.f32.xlu1 %v1340_v54  ;;  %2093 = vmatpush3.bf16.msra.mxu0 %v1355_v56  ;;  %v1370_v58 = vsel %vm1048_vm5, %v1359_v57, 0  ;;  %v1584_v54 = vld [vmem:[%s2866_s7 + $0x20] sm:$0xff]  ;;  %v1586_v57 = vld [vmem:[%s2866_s7 + $0x30] sm:$0xff] }
 0x91a   : > { %2094 = vmatprep.subr.bf16.mxu0 %v2233_v10 }
 0x91d   : > { %2095 = vmatpush3.bf16.msra.mxu0 %v1357_v55 }
 0x91e   : > { %2096 = vmatprep.subr.bf16.mxu0 %v2233_v10 }
 0x921   : > { %2097 = vmatpush3.bf16.msra.mxu0 %v1370_v58  ;;  %v1587_v58 = vld [vmem:[%s2866_s7 + $0x38] sm:$0xff] }
 0x922   : > { %2102 = vmatprep.subr.bf16.mxu0 %v2233_v10 }
 0x92a   : > { %1412 = vrot.lane.b32.xlu1 %v2404_v43, %s2241_s28 }
 0x92e   : > { %1416 = vrot.lane.b32.xlu1 %v2432_v52, %s2241_s28 }
 0x932   : > { %1420 = vrot.lane.b32.xlu1 %v2454_v60, %s2241_s28  ;;  %v1415_v60 = vpop.permute.xlu0 %1414 }
 0x936   : > { %1424 = vrot.lane.b32.xlu1 %v2473_v3, %s2241_s28  ;;  %v1430_v3 = vsel %vm476_vm2, %v1415_v60, 0  ;;  %v1419_v2 = vpop.permute.xlu0 %1418 }
 0x937   : > { %v1436_v4 = vsel %vm476_vm2, %v1419_v2, 0 }
 0x93a   : > { %1501 = vrot.lane.b32.xlu1 %v2552_v33, %s2241_s28  ;;  %v1423_v6 = vpop.permute.xlu0 %1422 }
 0x93b   : > { %v1442_v7 = vsel %vm476_vm2, %v1423_v6, 0 }
 0x93e   : > { %1505 = vrot.lane.b32.xlu1 %v2574_v41, %s2241_s28 }
 0x9a6   : > { %v1342_v43 = vpop.xlane.xlu1 %1341 }
 0x9a7   : > { %2214 = vrcp.f32 %v1342_v43  ;;  %v1593_v43 = vpack.c.bf16 %v1587_v58, %v1586_v57 }
 0x9aa   : > { %v1413_v61 = vpop.permute.xlu1 %1412 }
 0x9ab   : > { %v1427_v52 = vsel %vm476_vm2, %v1413_v61, 0 }
 0x9ae   : > { %v1417_v33 = vpop.permute.xlu1 %1416 }
 0x9af   : > { %v1433_v41 = vsel %vm476_vm2, %v1417_v33, 0 }
 0x9b1   : > { %v2215_v59 = vpop.eup %2214 }
 0x9b2   : > { %v1344_v62 = vmul.f32 %v2215_v59, %v2213_v0  ;;  %v1421_v63 = vpop.permute.xlu1 %1420 }
 0x9b3   : > { %v1439_v29 = vsel %vm476_vm2, %v1421_v63, 0 }
 0x9b4   : > { %v1345_v1 = vpack.c.bf16 %v1344_v62, %v1344_v62 }
 0x9b6   : > { %2099 = vmatmul.mubr.msk.bf16.vlgmr.msra.gmra.mrb[28].mxu0 %vm1025_vm3, %v1345_v1  ;;  %v1425_v8 = vpop.permute.xlu1 %1424 }
 0x9b7   : > { %2103 = vmatpush3.bf16.xpose.msra.mxu0 %v1427_v52  ;;  %2116 = vmatprep.mubr.msk.bf16.mxu0 %vm2234_vm1, %v2233_v10  ;;  %v1445_v9 = vsel %vm476_vm2, %v1425_v8, 0  ;;  %v1698_v8 = vld [vmem:[%s2868_s9] sm:$0xff] }
 0x9b8   : > { %2104 = vmatprep.subr.bf16.mxu0 %v2233_v10 }
 0x9bf   : > { %2105 = vmatpush3.bf16.xpose.msra.mxu0 %v1430_v3 }
 0x9c0   : > { %2106 = vmatprep.subr.bf16.mxu0 %v2233_v10 }
 0x9c7   : > { %2107 = vmatpush3.bf16.xpose.msra.mxu0 %v1433_v41 }
 0x9c8   : > { %2108 = vmatprep.subr.bf16.mxu0 %v2233_v10 }
 0x9cf   : > { %2109 = vmatpush3.bf16.xpose.msra.mxu0 %v1436_v4 }
 0x9d0   : > { %2110 = vmatprep.subr.bf16.mxu0 %v2233_v10 }
 0x9d7   : > { %2111 = vmatpush3.bf16.xpose.msra.mxu0 %v1439_v29 }
 0x9d8   : > { %2112 = vmatprep.subr.bf16.mxu0 %v2233_v10 }
 0x9df   : > { %2113 = vmatpush3.bf16.xpose.msra.mxu0 %v1442_v7 }
 0x9e0   : > { %2114 = vmatprep.subr.bf16.mxu0 %v2233_v10 }
 0x9e7   : > { %2115 = vmatpush3.bf16.xpose.msra.mxu0 %v1445_v9  ;;  %v1699_v9 = vld [vmem:[%s2868_s9 + $0x8] sm:$0xff] }
 0x9e8   : > { %2146 = vmatprep.subr.bf16.mxu0 %v2233_v10 }
 0x9ee   : > { %2117 = vmatmul.mubr.msk.bf16.vlgmr.msra.gmra.mrb[32].mxu0 %vm476_vm2, %v2408_v45 }
 0x9ef   : > { %2150 = vmatprep.mubr.msk.bf16.mxu0 %vm2234_vm1, %v2233_v10  ;;  %2147 = vmatpush3.bf16.msra.mxu0 %v1589_v32 }
 0x9f0   : > { %2148 = vmatprep.subr.bf16.mxu0 %v2233_v10 }
 0xa89   : > { %v1406_v11 = vpop.f32.mrb[28].mxu0 }
 0xa8a   : > { %v2100_v12 = vpop.f32.mrb[29].mxu0 }
 0xa8b   : > { %v1409_v13 = vpop.f32.mrb[30].mxu0  ;;  %v1701_v12 = vld [vmem:[%s2868_s9 + $0x18] sm:$0xff] }
 0xa8c   : > { %v2101_v15 = vpop.f32.mrb[31].mxu0 }
 0xac1   : > { %v1481_v16 = vpop.f32.mrb[32].mxu0 }
 0xac2   : > { %v2118_v17 = vpop.f32.mrb[33].mxu0  ;;  %v1487_v19 = vsel %vm1025_vm3, %v1481_v16, -inf }
 0xac3   : > { %1488 = vmax.xlane.f32.xlu0 %v1487_v19  ;;  %v1484_v20 = vpop.f32.mrb[34].mxu0 }
 0xac4   : > { %v2119_v21 = vpop.f32.mrb[35].mxu0 }
 0xad9   : > { %1499 = vrot.lane.b32.xlu0 %v2522_v5, %s2241_s28  ;;  %v1502_v5 = vpop.permute.xlu1 %1501 }
 0xadd   : > { %1503 = vrot.lane.b32.xlu0 %v2564_v37, %s2241_s28 }
 0xae1   : > { %1507 = vrot.lane.b32.xlu0 %v2584_v46, %s2241_s28  ;;  %v1506_v46 = vpop.permute.xlu1 %1505 }
 0xae5   : > { %1511 = vrot.lane.b32.xlu0 %v2600_v53, %s2241_s28 }
 0xae9   : > { %1566 = vrot.lane.b32.xlu0 %v2702_v35, %s2246_s25 }
 0xaed   : > { %1570 = vrot.lane.b32.xlu0 %v1406_v11, %s2247_s27  ;;  %v1703_v11 = vpack.c.bf16 %v1699_v9, %v1698_v8 }
 0xb50   : > { %v1489_v45 = vpop.xlane.xlu0 %1488 }
 0xb51   : > { %v1490_v23 = vsub.f32 %v1481_v16, %v1489_v45  ;;  %v1840_v16 = vld [vmem:[%s2867_s8] ss:$0 sm:$0xff] }
 0xb53   : > { %v1491_v24 = vmul.f32 1.442695, %v1490_v23 }
 0xb54   : > { %v1500_v25 = vpop.permute.xlu0 %1499 }
 0xb55   : > { %2216 = vpow2.f32 %v1491_v24  ;;  %2121 = vmatpush3.bf16.msra.mxu1 %v1500_v25 }
 0xb56   : > { %2122 = vmatprep.subr.bf16.mxu1 %v2233_v10 }
 0xb58   : > { %v1504_v37 = vpop.permute.xlu0 %1503 }
 0xb59   : > { %2123 = vmatpush3.bf16.msra.mxu1 %v1502_v5 }
 0xb5a   : > { %2124 = vmatprep.subr.bf16.mxu1 %v2233_v10 }
 0xb5c   : > { %v1508_v27 = vpop.permute.xlu0 %1507 }
 0xb5d   : > { %2125 = vmatpush3.bf16.msra.mxu1 %v1504_v37 }
 0xb5e   : > { %2126 = vmatprep.subr.bf16.mxu1 %v2233_v10 }
 0xb5f   : > { %v2217_v53 = vpop.eup %2216 }
 0xb60   : > { %v1493_v35 = vsel %vm1025_vm3, %v2217_v53, 0.0  ;;  %v1512_v38 = vpop.permute.xlu0 %1511 }
 0xb61   : > { %1494 = vadd.xlane.f32.xlu1 %v1493_v35  ;;  %2127 = vmatpush3.bf16.msra.mxu1 %v1506_v46  ;;  %v1523_v40 = vsel %vm1048_vm5, %v1512_v38, 0 }
 0xb62   : > { %2128 = vmatprep.subr.bf16.mxu1 %v2233_v10 }
 0xb64   : > { %v1567_v41 = vpop.permute.xlu0 %1566 }
 0xb65   : > { %2129 = vmatpush3.bf16.msra.mxu1 %v1508_v27  ;;  %v1577_v4 = vsel %vm476_vm2, %v2637_v30, %v1567_v41  ;;  %v1700_v30 = vld [vmem:[%s2868_s9 + $0x10] sm:$0xff] }
 0xb66   : > { %2130 = vmatprep.subr.bf16.mxu1 %v2233_v10  ;;  %v1704_v13 = vpack.c.bf16 %v1701_v12, %v1700_v30 }
 0xb68   : > { %v1571_v2 = vpop.permute.xlu0 %1570 }
 0xb69   : > { %v1578_v63 = vsel %vm927_vm7, %v1577_v4, %v1571_v2 }
 0xb72   : > { %1509 = vrot.lane.b32.xlu1 %v2597_v51, %s2241_s28  ;;  %v1582_v51 = vld [vmem:[%s2866_s7 + $0x10] sm:$0xff] }
 0xb76   : > { %915 = vrot.lane.b32.xlu1 %v2631_v18, %s2246_s25  ;;  %v1583_v18 = vld [vmem:[%s2866_s7 + $0x18] sm:$0xff] }
 0xb77   : > { %v1590_v34 = vpack.c.bf16 %v1583_v18, %v1582_v51 }
 0xb79   : > { %2149 = vmatpush3.bf16.msra.mxu0 %v1590_v34 }
 0xb7a   : > { %919 = vrot.lane.b32.xlu1 %v2633_v22, %s2247_s27 }
 0xb7e   : > { %923 = vrot.lane.b32.xlu1 %v2635_v26, %s2248_s13 }
 0xbee   : > { %v1495_v36 = vpop.xlane.xlu1 %1494 }
 0xbef   : > { %2218 = vrcp.f32 %v1495_v36 }
 0xbf2   : > { %v1510_v22 = vpop.permute.xlu1 %1509 }
 0xbf3   : > { %2131 = vmatpush3.bf16.msra.mxu1 %v1510_v22 }
 0xbf4   : > { %2132 = vmatprep.subr.bf16.mxu1 %v2233_v10 }
 0xbf6   : > { %v916_v39 = vpop.permute.xlu1 %915 }
 0xbf7   : > { %2133 = vmatpush3.bf16.msra.mxu1 %v1523_v40  ;;  %v926_v26 = vsel %vm476_vm2, %v2629_v14, %v916_v39  ;;  %v1585_v14 = vld [vmem:[%s2866_s7 + $0x28] sm:$0xff] }
 0xbf8   : > { %2138 = vmatprep.subr.bf16.mxu1 %v2233_v10  ;;  %v1592_v55 = vpack.c.bf16 %v1585_v14, %v1584_v54 }
 0xbf9   : > { %v2219_v42 = vpop.eup %2218 }
 0xbfa   : > { %v1497_v44 = vmul.f32 %v2219_v42, %v2217_v53  ;;  %v920_v47 = vpop.permute.xlu1 %919 }
 0xbfb   : > { %v928_v50 = vsel %vm927_vm7, %v926_v26, %v920_v47 }
 0xbfc   : > { %v1498_v49 = vpack.c.bf16 %v1497_v44, %v1497_v44 }
 0xbfe   : > { %v924_v48 = vpop.permute.xlu1 %923  ;;  %2135 = vmatmul.mubr.msk.bf16.vlgmr.msra.gmra.mrb[28].mxu1 %vm1025_vm3, %v1498_v49 }
 0xbff   : > { %v930_v56 = vsel %vm929_vm6, %v928_v50, %v924_v48  ;;  %2142 = vmatprep.mubr.msk.bf16.mxu1 %vm2234_vm1, %v2233_v10  ;;  %2139 = vmatpush3.bf16.msra.mxu1 %v1592_v55 }
 0xc00   : > { %v1588_v0 = vpack.c.bf16 %v930_v56, %v930_v56  ;;  %2140 = vmatprep.subr.bf16.mxu1 %v2233_v10 }
 0xc02   : > { %2151 = vmatmul.mubr.msk.bf16.vlgmr.msra.gmra.mrb[36].mxu0 %vm386_vm0, %v1588_v0 }
 0xc03   : > { %2141 = vmatpush3.bf16.msra.mxu1 %v1593_v43 }
 0xc04   : > { %2154 = vmatprep.subr.bf16.mxu1 %v2233_v10 }
 0xcd1   : > { %v1559_v59 = vpop.f32.mrb[28].mxu1 }
 0xcd2   : > { %1574 = vrot.lane.b32.xlu0 %v1559_v59, %s2248_s13  ;;  %v2136_v61 = vpop.f32.mrb[29].mxu1 }
 0xcd3   : > { %v1562_v62 = vpop.f32.mrb[30].mxu1 }
 0xcd4   : > { %v2137_v52 = vpop.f32.mrb[31].mxu1 }
 0xcd5   : > { %v1674_v1 = vpop.f32.mrb[36].mxu0 }
 0xcd6   : > { %v2152_v60 = vpop.f32.mrb[37].mxu0 }
 0xcd7   : > { %v1677_v3 = vpop.f32.mrb[38].mxu0 }
 0xcd8   : > { %v2153_v33 = vpop.f32.mrb[39].mxu0 }
 0xd44   : > { %v1575_v29 = vpop.permute.xlu0 %1574 }
 0xd45   : > { %v1579_v6 = vsel %vm929_vm6, %v1578_v63, %v1575_v29 }
 0xd46   : > { %v1591_v7 = vpack.c.bf16 %v1579_v6, %v1579_v6 }
 0xd48   : > { %2143 = vmatmul.mubr.msk.bf16.vlgmr.msra.gmra.mrb[32].mxu1 %vm386_vm0, %v1591_v7 }
 0xd49   : > { %2158 = vmatprep.mubr.msk.bf16.mxu1 %vm2234_vm1, %v2233_v10  ;;  %2155 = vmatpush3.bf16.msra.mxu1 %v1703_v11 }
 0xd4a   : > { %2156 = vmatprep.subr.bf16.mxu1 %v2233_v10 }
 0xd4d   : > { %2157 = vmatpush3.bf16.msra.mxu1 %v1704_v13 }
 0xe1b   : > { %v1631_v15 = vpop.f32.mrb[32].mxu1 }
 0xe1c   : > { %v1675_v17 = vadd.f32 %v1674_v1, %v1631_v15  ;;  %v2144_v19 = vpop.f32.mrb[33].mxu1 }
 0xe1d   : > { %v1634_v20 = vpop.f32.mrb[34].mxu1 }
 0xe1e   : > { %v1687_v21 = vadd.f32 %v1840_v16, %v1675_v17  ;;  %v2145_v45 = vpop.f32.mrb[35].mxu1 }
 0xe20   : > { %v1841_v23 = vmul.f32 -1.442695, %v1687_v21 }
 0xe22   : > { %2220 = vpow2.f32 %v1841_v23 }
 0xe2c   : > { %v2221_v24 = vpop.eup %2220 }
 0xe2d   : > { %v1691_v25 = vadd.f32 1.0, %v2221_v24 }
 0xe2f   : > { %2222 = vrcp.f32 %v1691_v25 }
 0xe39   : > { %v2223_v5 = vpop.eup %2222 }
 0xe3a   : > { %v1695_v10 = vsub.f32 1.0, %v2223_v5  ;;  %v1694_v37 = vmul.f32 %v2223_v5, %v930_v56 }
 0xe3c   : > { %v1696_v46 = vmul.f32 %v1695_v10, %v1579_v6 }
 0xe3e   : > { %v1697_v53 = vadd.f32 %v1696_v46, %v1694_v37 }
 0xe40   : > { %v1702_v35 = vpack.c.bf16 %v1697_v53, %v1697_v53 }
 0xe42   : > { %2159 = vmatmul.mubr.msk.bf16.vlgmr.msra.gmra.mrb[36].mxu1 %vm386_vm0, %v1702_v35 }
 0xf15   : > { %v1742_v27 = vpop.f32.mrb[36].mxu1 }
 0xf16   : > { %v1748_v32 = vadd.f32 %v2224_v31, %v1742_v27  ;;  %v2160_v51 = vpop.f32.mrb[37].mxu1 }
 0xf17   : > { %v1745_v18 = vpop.f32.mrb[38].mxu1 }
 0xf18   : > { %v1756_v34 = vadd.f32 %v1843_v28, %v1748_v32  ;;  %v2161_v36 = vpop.f32.mrb[39].mxu1 }
 0xf1a   : > { %1757 = vst.msk [vmem:[%s381_s23] sm:$0xff] %vm386_vm0, %v1756_v34 }
 0xf1b PF: > { %s21_s17 = sadd.s32 1, %s2231_s17  }
 0xf1c   : > { %p18_p4 = scmp.ge.s32.totalorder %s21_s17, 4  }
 0xf1e   :  { %20 = sbr.rel (!%p18_p4) target bundleno = 1 (0x1), region = 94 }

// kernel: block_forward.7
= control target key start
LH: loop header
LB: loop body
LE: loop exit
PB: predicated region body
PF: predicated region fallthrough
CT: control target
= control target key end

     0   :  { %12 = vsyncpa [#allocation3], 0  ;;  %s909_s0 = inlined_call_operand.vmem [shape: f32[2,8,32], index: 0, kind: input, shape index: {}]   ;;  %s910_s1 = inlined_call_operand.vmem [shape: f32[1,32], index: 1, kind: input, shape index: {}]   ;;  %s911_s2 = inlined_call_operand.vmem [shape: f32[1,32], index: 2, kind: input, shape index: {}]   ;;  %s912_s3 = inlined_call_operand.vmem [shape: f32[32,128], index: 3, kind: input, shape index: {}]   ;;  %s913_s4 = inlined_call_operand.vmem [shape: f32[1,128], index: 4, kind: input, shape index: {}]   ;;  %s914_s5 = inlined_call_operand.vmem [shape: f32[128,32], index: 5, kind: input, shape index: {}]   ;;  %s915_s6 = inlined_call_operand.vmem [shape: f32[1,32], index: 6, kind: input, shape index: {}]   ;;  %s916_s7 = inlined_call_operand.hbm [shape: f32[2,8,32], index: 7, kind: output, shape index: {}]  }
   0x1   :  { %14 = vsyncpa [#allocation3 + $0x1], 0  ;;  %s728_s24 = smov 0   ;;  %s730_s25 = smov 0  }
   0x2   :  { %s732_s26 = smov 0   ;;  %s734_s27 = smov 0  }
   0x3 LB: > { %s749_s28 = sadd.s32 4294967295, %s683_s27   ;;  %s521_s29 = sadd.s32 4294967294, %s683_s27   ;;  %s683_s27 = sphi %s734_s27, %s922_s27   ;;  %s679_s26 = sphi %s732_s26, %s921_s26   ;;  %s675_s25 = sphi %s730_s25, %s920_s25   ;;  %s671_s24 = sphi %s728_s24, %s919_s24  }
   0x4   : > { %s753_s30 = sadd.s32 1, %s683_s27   ;;  %s179_s8 = sadd.s32 1, %s679_s26 }
   0x5   : > { %s176_s9 = ssub.s32 %s683_s27, %s753_s30  ;;  %p189_p0 = scmp.ne.s32.totalorder %s679_s26, %s675_s25 }
   0x6   : > { %p177_p1 = scmp.eq.s32.totalorder %s176_s9, 0  ;;  %p190_p2 = scmp.eq.s32.totalorder %s749_s28, 1 }
   0x7   : > { %p195_p3 = scmp.ne.s32.totalorder %s675_s25, %s671_s24  ;;  %p196_p4 = scmp.eq.s32.totalorder %s521_s29, 1 }
   0x8   : > { %s764_s10 = scalar_select %p177_p1, %s679_s26, %s179_s8  }
   0x9   : > { %p766_p5 = por %p190_p2, %p189_p0  ;;  %p770_p6 = por %p196_p4, %p195_p3 }
   0xa   : > { %p524_p7 = scmp.ge.s32.totalorder %s683_s27, 1  ;;  %p239_p8 = scmp.lt.s32.totalorder %s683_s27, 3 }
   0xc   : > { %p240_p9 = pnand %p524_p7, %p239_p8 }
   0xd   : > { %p270_p10 = scmp.lt.s32.totalorder (!%p240_p9), %s749_s28, 1  ;;  %vm278_vm0 = vcmask (!%p240_p9), 261120   ;;  %v307_v7 = vld [vmem:[%s912_s3] sm:$0xff] (!%p240_p9)  ;;  %v308_v8 = vld [vmem:[%s912_s3 + $0x8] sm:$0xff] (!%p240_p9)  ;;  %v685_v10 = vmov (!%p240_p9), 0.0   ;;  %v309_v11 = vld [vmem:[%s912_s3 + $0x10] sm:$0xff] (!%p240_p9) }
   0xe   : > { %243 = sbr.rel (%p240_p9) target bundleno = 812 (0x32c), region = 48  ;;  %v312_v9 = vpack.c.bf16 (!%p240_p9), %v308_v8, %v307_v7  ;;  %548 = vmatprep.subr.bf16.mxu0 (!%p240_p9), %v685_v10  ;;  %v310_v12 = vld [vmem:[%s912_s3 + $0x18] sm:$0xff] (!%p240_p9)  ;;  %556 = vmatprep.subr.bf16.mxu1 (!%p240_p9), %v685_v10  ;;  %vm686_vm1 = vmmov (!%p240_p9), 0   ;;  %v373_v14 = vld [vmem:[%s914_s5] sm:$0xff] (!%p240_p9)  ;;  %v374_v15 = vld [vmem:[%s914_s5 + $0x8] sm:$0xff] (!%p240_p9)  ;;  %s267_s22 = sand.u32 (!%p240_p9), 1, %s675_s25  }
   0xf   : > { %v313_v13 = vpack.c.bf16 (!%p240_p9), %v310_v12, %v309_v11  ;;  %552 = vmatprep.mubr.msk.bf16.mxu0 (!%p240_p9), %vm686_vm1, %v685_v10  ;;  %572 = vmatprep.mubr.msk.bf16.mxu1 (!%p240_p9), %vm686_vm1, %v685_v10  ;;  %v390_v16 = vpack.c.bf16 (!%p240_p9), %v374_v15, %v373_v14  ;;  %v527_v21 = vld [vmem:[%s910_s1] ss:$0 sm:$0xff] (!%p240_p9)  ;;  %v375_v27 = vld [vmem:[%s914_s5 + $0x10] sm:$0xff] (!%p240_p9)  ;;  %v376_v28 = vld [vmem:[%s914_s5 + $0x18] sm:$0xff] (!%p240_p9)  ;;  %s525_s23 = sshll.u32 (!%p240_p9), %s267_s22, 3  ;;  %s533_s9 = sshll.u32 (!%p240_p9), %s749_s28, 7 }
  0x10   : > { %549 = vmatpush3.bf16.msra.mxu0 (!%p240_p9), %v312_v9  ;;  %v528_v23 = vld [vmem:[%s911_s2] ss:$0 sm:$0xff] (!%p240_p9)  ;;  %v391_v29 = vpack.c.bf16 (!%p240_p9), %v376_v28, %v375_v27  ;;  %v378_v31 = vld [vmem:[%s914_s5 + $0x28] sm:$0xff] (!%p240_p9)  ;;  %v379_v33 = vld [vmem:[%s914_s5 + $0x30] sm:$0xff] (!%p240_p9)  ;;  %s687_s19 = smov (!%p240_p9), [#allocation2]  }
  0x11   : > { %550 = vmatprep.subr.bf16.mxu0 (!%p240_p9), %v685_v10  ;;  %557 = vmatpush3.bf16.msra.mxu1 (!%p240_p9), %v390_v16  ;;  %v377_v30 = vld [vmem:[%s914_s5 + $0x20] sm:$0xff] (!%p240_p9)  ;;  %v380_v34 = vld [vmem:[%s914_s5 + $0x38] sm:$0xff] (!%p240_p9)  ;;  %v382_v37 = vld [vmem:[%s914_s5 + $0x48] sm:$0xff] (!%p240_p9)  ;;  %s625_s20 = sshll.u32 (!%p240_p9), %s687_s19, 4  ;;  %s626_s20 = int_to_ptr.vmem [resolvable:$false] %s625_s20 }
  0x12   : > { %558 = vmatprep.subr.bf16.mxu1 (!%p240_p9), %v685_v10  ;;  %v392_v32 = vpack.c.bf16 (!%p240_p9), %v378_v31, %v377_v30  ;;  %v393_v35 = vpack.c.bf16 (!%p240_p9), %v380_v34, %v379_v33  ;;  %v381_v36 = vld [vmem:[%s914_s5 + $0x40] sm:$0xff] (!%p240_p9)  ;;  %v383_v39 = vld [vmem:[%s914_s5 + $0x50] sm:$0xff] (!%p240_p9)  ;;  %v384_v40 = vld [vmem:[%s914_s5 + $0x58] sm:$0xff] (!%p240_p9)  ;;  %s627_s21 = scalar_lea.vmem (!%p240_p9), %s626_s20, 256 }
  0x13   : > { %v394_v38 = vpack.c.bf16 (!%p240_p9), %v382_v37, %v381_v36  ;;  %v395_v41 = vpack.c.bf16 (!%p240_p9), %v384_v40, %v383_v39  ;;  %v385_v42 = vld [vmem:[%s914_s5 + $0x60] sm:$0xff] (!%p240_p9)  ;;  %v386_v43 = vld [vmem:[%s914_s5 + $0x68] sm:$0xff] (!%p240_p9)  ;;  %v387_v45 = vld [vmem:[%s914_s5 + $0x70] sm:$0xff] (!%p240_p9) }
  0x14   : > { %551 = vmatpush3.bf16.msra.mxu0 (!%p240_p9), %v313_v13  ;;  %v396_v44 = vpack.c.bf16 (!%p240_p9), %v386_v43, %v385_v42  ;;  %v388_v46 = vld [vmem:[%s914_s5 + $0x78] sm:$0xff] (!%p240_p9)  ;;  %v529_v48 = vld [vmem:[%s913_s4] ss:$0 sm:$0xff] (!%p240_p9) }
  0x15   : > { %s271_s13 = scalar_select %p270_p10, %s749_s28, 1  ;;  %559 = vmatpush3.bf16.msra.mxu1 %v391_v29  ;;  %v397_v47 = vpack.c.bf16 %v388_v46, %v387_v45 }
  0x16   : > { %560 = vmatprep.subr.bf16.mxu1 %v685_v10  ;;  %s449_s28 = scalar_lea.sflag [#allocation3], %s267_s22 }
  0x17   : > { %s526_s14 = sshll.u32 %s271_s13, 3  ;;  %s269_s13 = scalar_lea.vmem [#allocation2], %s525_s23 }
  0x18   : > { %s273_s17 = scalar_lea.vmem %s909_s0, %s526_s14  ;;  %s462_s14 = sshll.u32 %s269_s13, 4  ;;  %s868_s14 = int_to_ptr.vmem [resolvable:$true] %s462_s14 }
  0x19   : > { %v781_v0 = vld [vmem:[%s273_s17] sm:$0xff]  ;;  %561 = vmatpush3.bf16.msra.mxu1 %v392_v32  ;;  %s866_s17 = scalar_lea.hbm %s916_s7, %s533_s9  ;;  %s621_s18 = scalar_lea.vmem %s868_s14, 128 }
  0x1a   : > { %v279_v1 = vsel %vm278_vm0, %v781_v0, 0.0  ;;  %562 = vmatprep.subr.bf16.mxu1 %v685_v10  ;;  %p622_p11 = scmp.ne.s32.totalorder %s868_s14, %s621_s18  ;;  %p628_p0 = scmp.lt.s32.totalorder %s868_s14, %s626_s20 }
  0x1b   : > { %280 = vadd.xlane.f32.xlu0 %v279_v1  ;;  %p629_p1 = scmp.lt.s32.totalorder %s627_s21, %s621_s18 }
  0x1c   : > { %p623_p12 = pnand %p622_p11, %p766_p5 }
  0x1d   : > { %563 = vmatpush3.bf16.msra.mxu1 %v393_v35  ;;  %p630_p2 = por %p629_p1, %p628_p0 }
  0x1e   : > { %564 = vmatprep.subr.bf16.mxu1 %v685_v10  ;;  %p624_p13 = pneg %p623_p12 }
  0x20   : > { %p631_p3 = pnand %p630_p2, %p624_p13 }
  0x21   : > { %565 = vmatpush3.bf16.msra.mxu1 %v394_v38 }
  0x22   : > { %566 = vmatprep.subr.bf16.mxu1 %v685_v10 }
  0x25   : > { %567 = vmatpush3.bf16.msra.mxu1 %v395_v41 }
  0x26   : > { %568 = vmatprep.subr.bf16.mxu1 %v685_v10 }
  0x29   : > { %569 = vmatpush3.bf16.msra.mxu1 %v396_v44 }
  0x2a   : > { %570 = vmatprep.subr.bf16.mxu1 %v685_v10 }
  0x2d   : > { %571 = vmatpush3.bf16.msra.mxu1 %v397_v47 }
  0xa8   : > { %v281_v2 = vpop.xlane.xlu0 %280 }
  0xa9   : > { %v283_v3 = vmul.f32 0.03125, %v281_v2  ;;  %v531_v2 = vld [vmem:[%s915_s6] ss:$0 sm:$0xff] }
  0xab   : > { %v284_v4 = vsub.f32 %v781_v0, %v283_v3 }
  0xad   : > { %v285_v5 = vmul.f32 %v284_v4, %v284_v4 }
  0xaf   : > { %v286_v6 = vsel %vm278_vm0, %v285_v5, 0.0 }
  0xb0   : > { %287 = vadd.xlane.f32.xlu0 %v286_v6 }
 0x13d   : > { %v288_v17 = vpop.xlane.xlu0 %287 }
 0x13e   : > { %v289_v18 = vmul.f32 0.03125, %v288_v17 }
 0x140   : > { %v290_v19 = vadd.f32 1e-05, %v289_v18 }
 0x142   : > { %617 = vrsqrt.f32 %v290_v19 }
 0x14c   : > { %v618_v20 = vpop.eup %617 }
 0x14d   : > { %v292_v22 = vmul.f32 %v618_v20, %v284_v4 }
 0x14f   : > { %v299_v24 = vmul.f32 %v527_v21, %v292_v22 }
 0x151   : > { %v306_v25 = vadd.f32 %v528_v23, %v299_v24 }
 0x153   : > { %v311_v26 = vpack.c.bf16 %v306_v25, %v306_v25 }
 0x155   : > { %553 = vmatmul.mubr.msk.bf16.vlgmr.msra.gmra.mrb[0].mxu0 %vm278_vm0, %v311_v26 }
 0x228   : > { %v358_v49 = vpop.f32.mrb[0].mxu0 }
 0x229   : > { %v359_v50 = vadd.f32 %v529_v48, %v358_v49  ;;  %v554_v51 = vpop.f32.mrb[1].mxu0 }
 0x22a   : > { %v361_v52 = vpop.f32.mrb[2].mxu0 }
 0x22b   : > { %v365_v53 = vmul.f32 0.044715, %v359_v50  ;;  %v555_v54 = vpop.f32.mrb[3].mxu0  ;;  %v364_v60 = vmul.f32 0.5, %v359_v50 }
 0x22d   : > { %v366_v55 = vmul.f32 %v365_v53, %v359_v50 }
 0x22f   : > { %v367_v56 = vmul.f32 %v366_v55, %v359_v50 }
 0x231   : > { %v368_v57 = vadd.f32 %v367_v56, %v359_v50 }
 0x233   : > { %v369_v58 = vmul.f32 0.7978846, %v368_v57 }
 0x235   : > { %619 = vtanh.f32 %v369_v58 }
 0x23f   : > { %v620_v59 = vpop.eup %619 }
 0x240   : > { %v371_v61 = vadd.f32 1.0, %v620_v59 }
 0x242   : > { %v372_v62 = vmul.f32 %v371_v61, %v364_v60 }
 0x244   : > { %v389_v63 = vpack.c.bf16 %v372_v62, %v372_v62 }
 0x246   : > { %573 = vmatmul.mubr.bf16.vlgmr.msra.gmra.mrb[0].mxu1 %v389_v63 }
 0x319   : > { %v432_v1 = vpop.f32.mrb[0].mxu1 }
 0x31a   : > { %v438_v3 = vadd.f32 %v432_v1, %v781_v0  ;;  %v574_v4 = vpop.f32.mrb[1].mxu1 }
 0x31b   : > { %v435_v5 = vpop.f32.mrb[2].mxu1 }
 0x31c   : > { %v446_v6 = vadd.f32 %v531_v2, %v438_v3  ;;  %v575_v7 = vpop.f32.mrb[3].mxu1 }
 0x31e   : > { %447 = vst.msk [vmem:[%s269_s13] sm:$0xff] %vm278_vm0, %v446_v6 }
 0x31f   : > { %634 = shalt.err (!%p631_p3)
}
 0x320   : > { %s635_s22 = scalar_lea.hbm %s866_s17, 128  ;;  %s639_s8 = scalar_lea.hbm %s916_s7, 256 }
 0x321   : > { %p636_p4 = scmp.ne.s32.totalorder %s866_s17, %s635_s22  ;;  %p640_p9 = scmp.lt.u32.totalorder %s866_s17, %s916_s7 }
 0x322   : > { %p641_p10 = scmp.lt.u32.totalorder %s639_s8, %s635_s22  ;;  %p643_p12 = scmp.lt.u32.totalorder %s635_s22, %s866_s17 }
 0x323   : > { %p637_p7 = pnand %p636_p4, %p766_p5 }
 0x324   : > { %p642_p11 = por %p641_p10, %p640_p9 }
 0x325   : > { %p638_p8 = pneg %p637_p7 }
 0x326   : > { %p644_p13 = por %p643_p12, %p642_p11 }
 0x328   : > { %p645_p0 = pnand %p644_p13, %p638_p8 }
 0x32a   : > { %648 = shalt.err (!%p645_p0)
}
 0x32b   : > { %576 = dma.vmem_to_hbm [thread:$0]  (%p766_p5), %s868_s14, 128, %s866_s17, %s449_s28  }
 0x32c PF: > { %p582_p1 = scmp.ge.s32.totalorder %s683_s27, 2  ;;  %s474_s15 = sand.u32 1, %s671_s24  }
 0x32d   : > { %s475_s16 = scalar_lea.sflag [#allocation3], %s474_s15 }
 0x32e   : > { %p579_p2 = pnand %p582_p1, %p770_p6 }
 0x330   : > { %666 = dma.done.wait (!%p579_p2), %s475_s16, 128  }
 0x331   : > { %668 = vsyncadd (!%p579_p2), %s475_s16, 4294967168  ;;  %p17_p3 = scmp.ge.s32.totalorder %s753_s30, 4   ;;  %s919_s24 = smov %s675_s25 }
 0x332   : > { %s920_s25 = smov %s679_s26  ;;  %s921_s26 = smov %s764_s10 }
 0x333   : > { %s922_s27 = smov %s753_s30  ;;  %19 = sbr.rel (!%p17_p3) target bundleno = 3 (0x3), region = 83 }
 0x33a   :  { %480 = vsyncpa [#allocation3], 1 }
 0x33b   :  { %482 = vsyncpa [#allocation3 + $0x1], 1 }

// kernel: block_forward.6
= control target key start
LH: loop header
LB: loop body
LE: loop exit
PB: predicated region body
PF: predicated region fallthrough
CT: control target
= control target key end

     0   :  { %s2693_s24 = smov 0   ;;  %s3152_s0 = inlined_call_operand.vmem [shape: f32[2,8,32], index: 0, kind: input, shape index: {}]   ;;  %s3153_s1 = inlined_call_operand.vmem [shape: f32[2,2,6,32], index: 1, kind: input, shape index: {}]   ;;  %s3154_s2 = inlined_call_operand.vmem [shape: f32[2,1,6], index: 2, kind: input, shape index: {}]   ;;  %s3155_s3 = inlined_call_operand.vmem [shape: f32[1,32], index: 3, kind: input, shape index: {}]   ;;  %s3156_s4 = inlined_call_operand.vmem [shape: f32[1,32], index: 4, kind: input, shape index: {}]   ;;  %s3157_s5 = inlined_call_operand.vmem [shape: f32[32,32], index: 5, kind: input, shape index: {}]   ;;  %s3158_s6 = inlined_call_operand.vmem [shape: f32[1,32], index: 6, kind: input, shape index: {}]   ;;  %s3159_s7 = inlined_call_operand.vmem [shape: f32[32,32], index: 7, kind: input, shape index: {}]   ;;  %s3160_s8 = inlined_call_operand.vmem [shape: f32[1,32], index: 8, kind: input, shape index: {}]   ;;  %s3161_s9 = inlined_call_operand.vmem [shape: f32[32,32], index: 9, kind: input, shape index: {}]   ;;  %s3162_s10 = inlined_call_operand.vmem [shape: f32[1,32], index: 10, kind: input, shape index: {}]   ;;  %s3163_s11 = inlined_call_operand.vmem [shape: f32[32,32], index: 11, kind: input, shape index: {}]   ;;  %s3164_s12 = inlined_call_operand.vmem [shape: f32[1,32], index: 12, kind: input, shape index: {}]   ;;  %s3165_s13 = inlined_call_operand.vmem [shape: f32[64,32], index: 13, kind: input, shape index: {}]   ;;  %s3166_s14 = inlined_call_operand.vmem [shape: f32[1,32], index: 14, kind: input, shape index: {}]   ;;  %s3167_s15 = inlined_call_operand.vmem [shape: f32[64,32], index: 15, kind: input, shape index: {}]   ;;  %s3168_s16 = inlined_call_operand.vmem [shape: f32[1,32], index: 16, kind: input, shape index: {}]   ;;  %s3169_s17 = inlined_call_operand.vmem [shape: f32[2,8,32], index: 17, kind: output, shape index: {}]  }
   0x1   :  { %3173 = sst [smem:[#allocation2_spill]] %s3152_s0 }
   0x2   :  { %3174 = sst [smem:[#allocation3_spill]] %s3153_s1 }
   0x3 LB: > { %s2224_s25 = sadd.s32 4294967295, %s2592_s24   ;;  %p2228_p0 = scmp.ge.s32.totalorder %s2592_s24, 1  ;;  %s2592_s24 = sphi %s2693_s24, %s27_s24  }
   0x4   : > { %p504_p1 = scmp.lt.s32.totalorder %s2592_s24, 3 }
   0x6   : > { %p505_p2 = pnand %p2228_p0, %p504_p1 }
   0x7   : > { %p562_p3 = scmp.lt.s32.totalorder (!%p505_p2), %s2224_s25, 1  ;;  %vm671_vm0 = vcmask (!%p505_p2), 259072   ;;  %s3175_s29 = sld [smem:[#allocation3_spill]] (!%p505_p2)  ;;  %vm582_vm1 = vcmask (!%p505_p2), 261120   ;;  %v687_v14 = vld [vmem:[%s3159_s7] sm:$0xff] (!%p505_p2)  ;;  %v688_v15 = vld [vmem:[%s3159_s7 + $0x8] sm:$0xff] (!%p505_p2) }
   0x8   : > { %508 = sbr.rel (%p505_p2) target bundleno = 3497 (0xda9), region = 88  ;;  %s3176_s1 = sld [smem:[#allocation2_spill]] (!%p505_p2)  ;;  %v611_v16 = vld [vmem:[%s3157_s5] sm:$0xff] (!%p505_p2)  ;;  %v2594_v17 = vmov (!%p505_p2), 0.0   ;;  %v2737_v18 = vpack.c.bf16 (!%p505_p2), %v688_v15, %v687_v14  ;;  %v612_v19 = vld [vmem:[%s3157_s5 + $0x8] sm:$0xff] (!%p505_p2)  ;;  %v689_v20 = vld [vmem:[%s3159_s7 + $0x10] sm:$0xff] (!%p505_p2) }
   0x9   : > { %2346 = vmatprep.subr.bf16.mxu1 (!%p505_p2), %v2594_v17  ;;  %2338 = vmatprep.subr.bf16.mxu0 (!%p505_p2), %v2594_v17  ;;  %v690_v21 = vld [vmem:[%s3159_s7 + $0x18] sm:$0xff] (!%p505_p2)  ;;  %v616_v22 = vpack.c.bf16 (!%p505_p2), %v612_v19, %v611_v16  ;;  %vm2595_vm2 = vmmov (!%p505_p2), 0   ;;  %v613_v24 = vld [vmem:[%s3157_s5 + $0x10] sm:$0xff] (!%p505_p2)  ;;  %v2770_v34 = vld [vmem:[%s3155_s3] ss:$0 sm:$0xff] (!%p505_p2)  ;;  %vm799_vm3 = vcmask (!%p505_p2), 64512  }
   0xa   : > { %2350 = vmatprep.mubr.msk.bf16.mxu1 (!%p505_p2), %vm2595_vm2, %v2594_v17  ;;  %2342 = vmatprep.mubr.msk.bf16.mxu0 (!%p505_p2), %vm2595_vm2, %v2594_v17  ;;  %v2754_v23 = vpack.c.bf16 (!%p505_p2), %v690_v21, %v689_v20  ;;  %v614_v25 = vld [vmem:[%s3157_s5 + $0x18] sm:$0xff] (!%p505_p2)  ;;  %v2775_v36 = vld [vmem:[%s3156_s4] ss:$0 sm:$0xff] (!%p505_p2)  ;;  %v745_v44 = vld [vmem:[%s3161_s9 + $0x8] sm:$0xff] (!%p505_p2)  ;;  %s2596_s23 = smov (!%p505_p2), 120   ;;  %vm872_vm4 = vcmask (!%p505_p2), 1042432  }
   0xb   : > { %2347 = vmatpush3.bf16.msra.mxu1 (!%p505_p2), %v2737_v18  ;;  %2339 = vmatpush3.bf16.msra.mxu0 (!%p505_p2), %v616_v22  ;;  %v617_v26 = vpack.c.bf16 (!%p505_p2), %v614_v25, %v613_v24  ;;  %v744_v43 = vld [vmem:[%s3161_s9] sm:$0xff] (!%p505_p2)  ;;  %v746_v48 = vld [vmem:[%s3161_s9 + $0x10] sm:$0xff] (!%p505_p2)  ;;  %v747_v49 = vld [vmem:[%s3161_s9 + $0x18] sm:$0xff] (!%p505_p2)  ;;  %v849_v22 = vlaneseq (!%p505_p2)  ;;  %vm855_vm7 = vcmask (!%p505_p2), 48128   ;;  %s2600_s18 = smov (!%p505_p2), 8   ;;  %s3172_s19 = smov (!%p505_p2), 16  }
   0xc   : > { %2348 = vmatprep.subr.bf16.mxu1 (!%p505_p2), %v2594_v17  ;;  %2340 = vmatprep.subr.bf16.mxu0 (!%p505_p2), %v2594_v17  ;;  %v2788_v46 = vpack.c.bf16 (!%p505_p2), %v745_v44, %v744_v43  ;;  %v2800_v50 = vpack.c.bf16 (!%p505_p2), %v747_v49, %v746_v48  ;;  %v2813_v51 = vld [vmem:[%s3160_s8] ss:$0 sm:$0xff] (!%p505_p2)  ;;  %s3171_s28 = smov (!%p505_p2), 24   ;;  %vm1268_vm8 = vcmask (!%p505_p2), 130048   ;;  %vm1270_vm9 = vcmask (!%p505_p2), 195584  }
   0xd   : > { %v2235_v56 = vld [vmem:[%s3158_s6] ss:$0 sm:$0xff] (!%p505_p2)  ;;  %v850_v25 = vshrl.u32 (!%p505_p2), %v849_v22, 7 }
   0xf   : > { %s3181_s25 = smov (!%p562_p3, %s2224_s25), 1  ;;  %2349 = vmatpush3.bf16.msra.mxu1 %v2754_v23  ;;  %2341 = vmatpush3.bf16.msra.mxu0 %v617_v26  ;;  %v851_v26 = vsub.s32 0, %v850_v25 }
  0x10   : > { %s2272_s26 = sshll.u32 %s3181_s25, 4  ;;  %s3170_s30 = sshll.u32 %s3181_s25, 3  ;;  %2362 = vmatprep.subr.bf16.mxu1 %v2594_v17  ;;  %2354 = vmatprep.subr.bf16.mxu0 %v2594_v17 }
  0x11   : > { %s2707_s0 = scalar_lea.vmem %s3175_s29, %s2272_s26  ;;  %s2716_s20 = scalar_lea.vmem %s3176_s1, %s3170_s30 }
  0x12   : > { %v668_v0 = vld [vmem:[%s2707_s0] sm:$0x3f]  ;;  %s2597_s26 = smov 104   ;;  %s2598_s29 = smov 112  }
  0x13   : > { %v672_v1 = vsel %vm671_vm0, %v668_v0, 0.0  ;;  %v2720_v2 = vld [vmem:[%s2716_s20] sm:$0xff]  ;;  %s573_s1 = scalar_lea.vmem %s3154_s2, %s3181_s25  ;;  %s3179_s30 = sshll.u32 %s3181_s25, 3 }
  0x14   : > { %673 = vadd.xlane.f32.xlu0 %v672_v1  ;;  %v583_v3 = vsel %vm582_vm1, %v2720_v2, 0.0  ;;  %v670_v24 = vld [vmem:[%s573_s1] sm:$0x1] }
  0x15   : > { %vm847_vm5 = vcmp.gt.f32.partialorder %v670_v24, 0.5 }
  0x18   : > { %584 = vadd.xlane.f32.xlu0 %v583_v3  ;;  %v2830_v3 = vld [vmem:[%s3162_s10] ss:$0 sm:$0xff] }
  0xa1   : > { %v674_v4 = vpop.xlane.xlu0 %673 }
  0xa2   : > { %v675_v5 = vmul.f32 0.03125, %v674_v4 }
  0xa4   : > { %v676_v6 = vsub.f32 %v668_v0, %v675_v5 }
  0xa5   : > { %v585_v7 = vpop.xlane.xlu0 %584 }
  0xa6   : > { %v587_v8 = vmul.f32 0.03125, %v585_v7  ;;  %v677_v9 = vmul.f32 %v676_v6, %v676_v6 }
  0xa8   : > { %v588_v10 = vsub.f32 %v2720_v2, %v587_v8  ;;  %v678_v11 = vsel %vm671_vm0, %v677_v9, 0.0 }
  0xa9   : > { %679 = vadd.xlane.f32.xlu1 %v678_v11 }
  0xaa   : > { %v589_v12 = vmul.f32 %v588_v10, %v588_v10 }
  0xac   : > { %v590_v13 = vsel %vm582_vm1, %v589_v12, 0.0 }
  0xad   : > { %591 = vadd.xlane.f32.xlu1 %v590_v13 }
 0x136   : > { %v680_v27 = vpop.xlane.xlu1 %679 }
 0x137   : > { %v681_v28 = vmul.f32 0.03125, %v680_v27  ;;  %v2599_v27 = vmov 0  }
 0x139   : > { %v682_v29 = vadd.f32 1e-05, %v681_v28  ;;  %v848_v28 = vsel %vm847_vm5, 1, %v2599_v27 }
 0x13a   : > { %v592_v30 = vpop.xlane.xlu1 %591 }
 0x13b   : > { %2539 = vrsqrt.f32 %v682_v29  ;;  %v593_v31 = vmul.f32 0.03125, %v592_v30  ;;  %v2875_v29 = vrot.slane %v848_v28, %v851_v26 }
 0x13d   : > { %v594_v32 = vadd.f32 1e-05, %v593_v31  ;;  %vm853_vm6 = vcmp.eq.s32.totalorder %v2875_v29, 1 }
 0x13f   : > { %2541 = vrsqrt.f32 %v594_v32 }
 0x145   : > { %v2540_v33 = vpop.eup %2539 }
 0x146   : > { %v684_v35 = vmul.f32 %v2540_v33, %v676_v6 }
 0x148   : > { %v685_v37 = vmul.f32 %v2770_v34, %v684_v35 }
 0x149   : > { %v2542_v38 = vpop.eup %2541 }
 0x14a   : > { %v686_v39 = vadd.f32 %v2775_v36, %v685_v37  ;;  %v596_v40 = vmul.f32 %v2542_v38, %v588_v10 }
 0x14c   : > { %v691_v41 = vpack.c.bf16 %v686_v39, %v686_v39  ;;  %v603_v42 = vmul.f32 %v2770_v34, %v596_v40 }
 0x14e   : > { %2351 = vmatmul.mubr.msk.bf16.vlgmr.msra.gmra.mrb[0].mxu1 %vm582_vm1, %v691_v41  ;;  %v610_v45 = vadd.f32 %v2775_v36, %v603_v42 }
 0x14f   : > { %2364 = vmatprep.mubr.msk.bf16.mxu1 %vm2595_vm2, %v2594_v17 }
 0x150   : > { %v615_v47 = vpack.c.bf16 %v610_v45, %v610_v45 }
 0x152   : > { %2343 = vmatmul.mubr.msk.bf16.vlgmr.msra.gmra.mrb[0].mxu0 %vm582_vm1, %v615_v47 }
 0x153   : > { %2355 = vmatpush3.bf16.msra.mxu0 %v2788_v46  ;;  %2358 = vmatprep.mubr.msk.bf16.mxu0 %vm2595_vm2, %v2594_v17 }
 0x154   : > { %2356 = vmatprep.subr.bf16.mxu0 %v2594_v17 }
 0x157   : > { %2357 = vmatpush3.bf16.msra.mxu0 %v2800_v50 }
 0x158   : > { %2368 = vmatprep.subr.bf16.mxu0 %v2594_v17 }
 0x15a   : > { %2359 = vmatmul.mubr.msk.bf16.vlgmr.msra.gmra.mrb[4].mxu0 %vm582_vm1, %v691_v41 }
 0x15b   : > { %2370 = vmatprep.mubr.msk.bf16.mxu0 %vm2595_vm2, %v2594_v17 }
 0x221   : > { %v738_v52 = vpop.f32.mrb[0].mxu1 }
 0x222   : > { %v739_v53 = vadd.f32 %v2813_v51, %v738_v52  ;;  %v2352_v54 = vpop.f32.mrb[1].mxu1 }
 0x223   : > { %v741_v55 = vpop.f32.mrb[2].mxu1 }
 0x224   : > { %v798_v57 = vpack.c.bf16 %v739_v53, %v739_v53  ;;  %v2353_v58 = vpop.f32.mrb[3].mxu1 }
 0x225   : > { %v662_v59 = vpop.f32.mrb[0].mxu0 }
 0x226   : > { %v663_v60 = vadd.f32 %v2235_v56, %v662_v59  ;;  %920 = vrot.lane.b32.xlu0 %v798_v57, %s2596_s23  ;;  %v2344_v61 = vpop.f32.mrb[1].mxu0  ;;  %v804_v62 = vsel %vm799_vm3, %v798_v57, 0 }
 0x227   : > { %v665_v63 = vpop.f32.mrb[2].mxu0  ;;  %2363 = vmatpush3.bf16.xpose.msra.mxu1 %v804_v62 }
 0x228   : > { %v2821_v0 = vpack.c.bf16 %v663_v60, %v663_v60  ;;  %v2345_v1 = vpop.f32.mrb[3].mxu0  ;;  %2374 = vmatprep.subr.bf16.mxu1 %v2594_v17 }
 0x22a   : > { %1145 = vrot.lane.b32.xlu0 %v798_v57, %s2597_s26  ;;  %917 = vrot.lane.b32.xlu1 %v2821_v0, %s2596_s23 }
 0x22d   : > { %v791_v4 = vpop.f32.mrb[4].mxu0 }
 0x22e   : > { %v792_v5 = vadd.f32 %v2830_v3, %v791_v4  ;;  %1033 = vrot.lane.b32.xlu1 %v798_v57, %s2598_s29  ;;  %v2360_v6 = vpop.f32.mrb[5].mxu0  ;;  %2365 = vmatmul.mubr.msk.bf16.vlgmr.msra.gmra.mrb[4].mxu1 %vm799_vm3, %v2821_v0 }
 0x22f   : > { %v794_v7 = vpop.f32.mrb[6].mxu0  ;;  %2376 = vmatprep.mubr.msk.bf16.mxu1 %vm2595_vm2, %v2594_v17 }
 0x230   : > { %v2838_v8 = vpack.c.bf16 %v792_v5, %v792_v5  ;;  %v2361_v9 = vpop.f32.mrb[7].mxu0 }
 0x232   : > { %1031 = vrot.lane.b32.xlu1 %v2821_v0, %s2598_s29  ;;  %v874_v10 = vsel %vm872_vm4, %v2838_v8, 0 }
 0x233   : > { %2369 = vmatpush3.bf16.msra.mxu0 %v874_v10 }
 0x234   : > { %2380 = vmatprep.subr.bf16.mxu0 %v2594_v17 }
 0x236   : > { %1143 = vrot.lane.b32.xlu1 %v2821_v0, %s2597_s26 }
 0x298   : > { %v921_v11 = vpop.permute.xlu0 %920 }
 0x299   : > { %v926_v12 = vsel %vm799_vm3, %v921_v11, 0 }
 0x29a   : > { %2375 = vmatpush3.bf16.xpose.msra.mxu1 %v926_v12 }
 0x29b   : > { %2386 = vmatprep.subr.bf16.mxu1 %v2594_v17 }
 0x29c   : > { %v2849_v13 = vpop.permute.xlu1 %917  ;;  %v1146_v16 = vpop.permute.xlu0 %1145 }
 0x29d   : > { %v1151_v20 = vsel %vm799_vm3, %v1146_v16, 0 }
 0x2a0   : > { %v1034_v14 = vpop.permute.xlu1 %1033 }
 0x2a1   : > { %v1039_v15 = vsel %vm799_vm3, %v1034_v14, 0  ;;  %2377 = vmatmul.mubr.msk.bf16.vlgmr.msra.gmra.mrb[8].mxu1 %vm799_vm3, %v2849_v13 }
 0x2a2   : > { %2387 = vmatpush3.bf16.xpose.msra.mxu1 %v1039_v15  ;;  %2388 = vmatprep.mubr.msk.bf16.mxu1 %vm2595_vm2, %v2594_v17 }
 0x2a3   : > { %2398 = vmatprep.subr.bf16.mxu1 %v2594_v17 }
 0x2a4   : > { %v2857_v19 = vpop.permute.xlu1 %1031 }
 0x2a8   : > { %v2865_v21 = vpop.permute.xlu1 %1143 }
 0x2a9   : > { %2389 = vmatmul.mubr.msk.bf16.vlgmr.msra.gmra.mrb[12].mxu1 %vm799_vm3, %v2857_v19 }
 0x2aa   : > { %2399 = vmatpush3.bf16.xpose.msra.mxu1 %v1151_v20  ;;  %2400 = vmatprep.mubr.msk.bf16.mxu1 %vm2595_vm2, %v2594_v17 }
 0x2ab   : > { %2410 = vmatprep.subr.bf16.mxu1 %v2594_v17 }
 0x2b1   : > { %2401 = vmatmul.mubr.msk.bf16.vlgmr.msra.gmra.mrb[16].mxu1 %vm799_vm3, %v2865_v21 }
 0x2b2   : > { %2414 = vmatprep.mubr.msk.bf16.mxu1 %vm2595_vm2, %v2594_v17 }
 0x301   : > { %v840_v30 = vpop.f32.mrb[4].mxu1 }
 0x302   : > { %v846_v31 = vmul.f32 0.35355338, %v840_v30  ;;  %v2366_v32 = vpop.f32.mrb[5].mxu1 }
 0x303   : > { %v843_v33 = vpop.f32.mrb[6].mxu1 }
 0x304   : > { %v2367_v35 = vpop.f32.mrb[7].mxu1  ;;  %v854_v37 = vsel %vm853_vm6, -10000.0, %v846_v31 }
 0x305   : > { %v856_v38 = vsel %vm855_vm7, %v854_v37, -inf }
 0x306   : > { %857 = vmax.xlane.f32.xlu0 %v856_v38 }
 0x374   : > { %v962_v39 = vpop.f32.mrb[8].mxu1 }
 0x375   : > { %v968_v40 = vmul.f32 0.35355338, %v962_v39  ;;  %v2378_v41 = vpop.f32.mrb[9].mxu1 }
 0x376   : > { %v965_v42 = vpop.f32.mrb[10].mxu1 }
 0x377   : > { %v2379_v43 = vpop.f32.mrb[11].mxu1  ;;  %v969_v44 = vsel %vm853_vm6, -10000.0, %v968_v40 }
 0x378   : > { %v970_v45 = vsel %vm855_vm7, %v969_v44, -inf }
 0x379   : > { %971 = vmax.xlane.f32.xlu1 %v970_v45 }
 0x37c   : > { %v1075_v47 = vpop.f32.mrb[12].mxu1 }
 0x37d   : > { %v1081_v48 = vmul.f32 0.35355338, %v1075_v47  ;;  %v2390_v49 = vpop.f32.mrb[13].mxu1 }
 0x37e   : > { %v1078_v52 = vpop.f32.mrb[14].mxu1 }
 0x37f   : > { %v2391_v53 = vpop.f32.mrb[15].mxu1  ;;  %v1082_v54 = vsel %vm853_vm6, -10000.0, %v1081_v48 }
 0x380   : > { %v1083_v55 = vsel %vm855_vm7, %v1082_v54, -inf }
 0x381   : > { %1084 = vmax.xlane.f32.xlu0 %v1083_v55 }
 0x384   : > { %v1187_v56 = vpop.f32.mrb[16].mxu1 }
 0x385   : > { %v1193_v57 = vmul.f32 0.35355338, %v1187_v56  ;;  %v2402_v58 = vpop.f32.mrb[17].mxu1 }
 0x386   : > { %v1190_v59 = vpop.f32.mrb[18].mxu1 }
 0x387   : > { %v2403_v60 = vpop.f32.mrb[19].mxu1  ;;  %v1194_v61 = vsel %vm853_vm6, -10000.0, %v1193_v57 }
 0x388   : > { %v1195_v62 = vsel %vm855_vm7, %v1194_v61, -inf  ;;  %v1272_v60 = vld [vmem:[%s3163_s11] sm:$0xff] }
 0x389   : > { %1196 = vmax.xlane.f32.xlu0 %v1195_v62 }
 0x393   : > { %v858_v63 = vpop.xlane.xlu0 %857 }
 0x394   : > { %v859_v1 = vsub.f32 %v854_v37, %v858_v63 }
 0x396   : > { %v860_v4 = vmul.f32 1.442695, %v859_v1 }
 0x398   : > { %2543 = vpow2.f32 %v860_v4 }
 0x3a2   : > { %v2544_v5 = vpop.eup %2543 }
 0x3a3   : > { %v862_v6 = vsel %vm855_vm7, %v2544_v5, 0.0 }
 0x3a4   : > { %863 = vadd.xlane.f32.xlu0 %v862_v6 }
 0x406   : > { %v972_v7 = vpop.xlane.xlu1 %971 }
 0x407   : > { %v973_v9 = vsub.f32 %v969_v44, %v972_v7 }
 0x409   : > { %v974_v10 = vmul.f32 1.442695, %v973_v9 }
 0x40b   : > { %2545 = vpow2.f32 %v974_v10 }
 0x40e   : > { %v1085_v11 = vpop.xlane.xlu0 %1084 }
 0x40f   : > { %v1086_v12 = vsub.f32 %v1082_v54, %v1085_v11  ;;  %v669_v11 = vld [vmem:[%s2707_s0 + $0x8] sm:$0x3f]  ;;  %s3177_s0 = smov 16  }
 0x411   : > { %v1087_v14 = vmul.f32 1.442695, %v1086_v12  ;;  %v1447_v12 = vsel %vm671_vm0, %v669_v11, 0.0 }
 0x413   : > { %2547 = vpow2.f32 %v1087_v14  ;;  %v1274_v14 = vld [vmem:[%s3163_s11 + $0x10] sm:$0xff] }
 0x415   : > { %v2546_v15 = vpop.eup %2545 }
 0x416   : > { %v976_v16 = vsel %vm855_vm7, %v2546_v15, 0.0  ;;  %v1197_v24 = vpop.xlane.xlu0 %1196 }
 0x417   : > { %977 = vadd.xlane.f32.xlu1 %v976_v16  ;;  %v1198_v26 = vsub.f32 %v1194_v61, %v1197_v24  ;;  %v1273_v61 = vld [vmem:[%s3163_s11 + $0x8] sm:$0xff] }
 0x418   : > { %v2924_v62 = vpack.c.bf16 %v1273_v61, %v1272_v60  ;;  %v2998_v61 = vld [vmem:[%s3164_s12] ss:$0 sm:$0xff] }
 0x419   : > { %v1199_v27 = vmul.f32 1.442695, %v1198_v26 }
 0x41a   : > { %2411 = vmatpush3.bf16.msra.mxu1 %v2924_v62 }
 0x41b   : > { %2412 = vmatprep.subr.bf16.mxu1 %v2594_v17 }
 0x41d   : > { %v2548_v20 = vpop.eup %2547 }
 0x41e   : > { %v1089_v22 = vsel %vm855_vm7, %v2548_v20, 0.0 }
 0x41f   : > { %1090 = vadd.xlane.f32.xlu0 %v1089_v22 }
 0x428   : > { %1095 = vrot.lane.b32.xlu1 %v2838_v8, %s2598_s29 }
 0x431   : > { %v864_v25 = vpop.xlane.xlu0 %863 }
 0x432   : > { %2549 = vrcp.f32 %v864_v25 }
 0x433   : > { %2551 = vpow2.f32 %v1199_v27 }
 0x435   : > { %983 = vrot.lane.b32.xlu0 %v2838_v8, %s2596_s23 }
 0x43c   : > { %v2550_v28 = vpop.eup %2549 }
 0x43d   : > { %v866_v30 = vmul.f32 %v2550_v28, %v2544_v5  ;;  %v2552_v32 = vpop.eup %2551 }
 0x43e   : > { %v1201_v33 = vsel %vm855_vm7, %v2552_v32, 0.0 }
 0x43f   : > { %v867_v31 = vpack.c.bf16 %v866_v30, %v866_v30 }
 0x441   : > { %2371 = vmatmul.mubr.msk.bf16.vlgmr.msra.gmra.mrb[8].mxu0 %vm855_vm7, %v867_v31 }
 0x442   : > { %2382 = vmatprep.mubr.msk.bf16.mxu0 %vm2595_vm2, %v2594_v17 }
 0x44c   : > { %1202 = vadd.xlane.f32.xlu1 %v1201_v33 }
 0x45d   : > { %1207 = vrot.lane.b32.xlu1 %v2838_v8, %s2597_s26 }
 0x4a4   : > { %v978_v35 = vpop.xlane.xlu1 %977 }
 0x4a5   : > { %2553 = vrcp.f32 %v978_v35 }
 0x4a8   : > { %v1096_v42 = vpop.permute.xlu1 %1095 }
 0x4a9   : > { %v1101_v44 = vsel %vm872_vm4, %v1096_v42, 0  ;;  %v1330_v42 = vld [vmem:[%s3165_s13 + $0x8] sm:$0xff] }
 0x4ac   : > { %v1091_v37 = vpop.xlane.xlu0 %1090 }
 0x4ad   : > { %2555 = vrcp.f32 %v1091_v37 }
 0x4af   : > { %v2554_v38 = vpop.eup %2553 }
 0x4b0   : > { %v980_v39 = vmul.f32 %v2554_v38, %v2546_v15  ;;  %v984_v40 = vpop.permute.xlu0 %983  ;;  %v1275_v15 = vld [vmem:[%s3163_s11 + $0x18] sm:$0xff] }
 0x4b1   : > { %v989_v41 = vsel %vm872_vm4, %v984_v40, 0  ;;  %v2938_v16 = vpack.c.bf16 %v1275_v15, %v1274_v14 }
 0x4b2   : > { %2381 = vmatpush3.bf16.msra.mxu0 %v989_v41  ;;  %v981_v43 = vpack.c.bf16 %v980_v39, %v980_v39  ;;  %v1329_v41 = vld [vmem:[%s3165_s13] sm:$0xff] }
 0x4b3   : > { %2392 = vmatprep.subr.bf16.mxu0 %v2594_v17  ;;  %2413 = vmatpush3.bf16.msra.mxu1 %v2938_v16 }
 0x4b4   : > { %2426 = vmatprep.subr.bf16.mxu1 %v2594_v17 }
 0x4b5   : > { %2383 = vmatmul.mubr.msk.bf16.vlgmr.msra.gmra.mrb[12].mxu0 %vm855_vm7, %v981_v43  ;;  %v1338_v43 = vpack.c.bf16 %v1330_v42, %v1329_v41 }
 0x4b6   : > { %2393 = vmatpush3.bf16.msra.mxu0 %v1101_v44  ;;  %2394 = vmatprep.mubr.msk.bf16.mxu0 %vm2595_vm2, %v2594_v17  ;;  %v1331_v44 = vld [vmem:[%s3165_s13 + $0x10] sm:$0xff] }
 0x4b7   : > { %v2556_v8 = vpop.eup %2555  ;;  %2404 = vmatprep.subr.bf16.mxu0 %v2594_v17 }
 0x4b8   : > { %v1093_v45 = vmul.f32 %v2556_v8, %v2548_v20  ;;  %v1332_v8 = vld [vmem:[%s3165_s13 + $0x18] sm:$0xff] }
 0x4ba   : > { %v1094_v47 = vpack.c.bf16 %v1093_v45, %v1093_v45  ;;  %v1339_v45 = vpack.c.bf16 %v1332_v8, %v1331_v44 }
 0x4bd   : > { %2395 = vmatmul.mubr.msk.bf16.vlgmr.msra.gmra.mrb[16].mxu0 %vm855_vm7, %v1094_v47  ;;  %v2965_v47 = vpack.c.bf16 %v2720_v2, %v2720_v2  ;;  %v1333_v2 = vld [vmem:[%s3165_s13 + $0x20] sm:$0xff] }
 0x4be   : > { %2406 = vmatprep.mubr.msk.bf16.mxu0 %vm2595_vm2, %v2594_v17 }
 0x4d9   : > { %v1203_v48 = vpop.xlane.xlu1 %1202 }
 0x4da   : > { %2557 = vrcp.f32 %v1203_v48  ;;  %v1334_v48 = vld [vmem:[%s3165_s13 + $0x28] sm:$0xff] }
 0x4dd   : > { %v1208_v49 = vpop.permute.xlu1 %1207 }
 0x4de   : > { %v1213_v52 = vsel %vm872_vm4, %v1208_v49, 0  ;;  %v1341_v49 = vpack.c.bf16 %v1334_v48, %v1333_v2 }
 0x4df   : > { %2405 = vmatpush3.bf16.msra.mxu0 %v1213_v52 }
 0x4e0   : > { %2418 = vmatprep.subr.bf16.mxu0 %v2594_v17 }
 0x4e4   : > { %v2558_v53 = vpop.eup %2557 }
 0x4e5   : > { %v1205_v54 = vmul.f32 %v2558_v53, %v2552_v32 }
 0x4e7   : > { %v1206_v55 = vpack.c.bf16 %v1205_v54, %v1205_v54 }
 0x4e9   : > { %2407 = vmatmul.mubr.msk.bf16.vlgmr.msra.gmra.mrb[20].mxu0 %vm855_vm7, %v1206_v55 }
 0x4ea   : > { %2422 = vmatprep.mubr.msk.bf16.mxu0 %vm2595_vm2, %v2594_v17  ;;  %2419 = vmatpush3.bf16.msra.mxu0 %v1341_v49 }
 0x4eb   : > { %2420 = vmatprep.subr.bf16.mxu0 %v2594_v17 }
 0x514   : > { %v910_v56 = vpop.f32.mrb[8].mxu0 }
 0x515   : > { %v2372_v57 = vpop.f32.mrb[9].mxu0 }
 0x516   : > { %v913_v58 = vpop.f32.mrb[10].mxu0 }
 0x517   : > { %v2373_v59 = vpop.f32.mrb[11].mxu0 }
 0x588   : > { %v1025_v63 = vpop.f32.mrb[12].mxu0 }
 0x589   : > { %1256 = vrot.lane.b32.xlu1 %v1025_v63, %s2600_s18  ;;  %v2384_v1 = vpop.f32.mrb[13].mxu0 }
 0x58a   : > { %v1028_v4 = vpop.f32.mrb[14].mxu0 }
 0x58b   : > { %v2385_v5 = vpop.f32.mrb[15].mxu0 }
 0x590   : > { %v1137_v6 = vpop.f32.mrb[16].mxu0 }
 0x591   : > { %1260 = vrot.lane.b32.xlu0 %v1137_v6, %s3172_s19  ;;  %v2396_v7 = vpop.f32.mrb[17].mxu0 }
 0x592   : > { %v1140_v9 = vpop.f32.mrb[18].mxu0 }
 0x593   : > { %v2397_v10 = vpop.f32.mrb[19].mxu0 }
 0x5b0   : > { %1448 = vadd.xlane.f32.xlu0 %v1447_v12 }
 0x5bc   : > { %v1249_v20 = vpop.f32.mrb[20].mxu0 }
 0x5bd   : > { %1264 = vrot.lane.b32.xlu1 %v1249_v20, %s3171_s28  ;;  %v2408_v22 = vpop.f32.mrb[21].mxu0 }
 0x5be   : > { %v1252_v24 = vpop.f32.mrb[22].mxu0 }
 0x5bf   : > { %v2409_v25 = vpop.f32.mrb[23].mxu0 }
 0x5fb   : > { %v1257_v26 = vpop.permute.xlu1 %1256 }
 0x5fc   : > { %v1267_v28 = vsel %vm799_vm3, %v910_v56, %v1257_v26 }
 0x603   : > { %v1261_v27 = vpop.permute.xlu0 %1260 }
 0x604   : > { %v1269_v30 = vsel %vm1268_vm8, %v1267_v28, %v1261_v27 }
 0x62f   : > { %v1265_v31 = vpop.permute.xlu1 %1264 }
 0x630   : > { %v1271_v32 = vsel %vm1270_vm9, %v1269_v30, %v1265_v31 }
 0x631   : > { %v1276_v33 = vpack.c.bf16 %v1271_v32, %v1271_v32 }
 0x633   : > { %2415 = vmatmul.mubr.msk.bf16.vlgmr.msra.gmra.mrb[20].mxu1 %vm582_vm1, %v1276_v33 }
 0x634   : > { %2430 = vmatprep.mubr.msk.bf16.mxu1 %vm2595_vm2, %v2594_v17  ;;  %2427 = vmatpush3.bf16.msra.mxu1 %v1338_v43 }
 0x635   : > { %2428 = vmatprep.subr.bf16.mxu1 %v2594_v17 }
 0x638   : > { %2429 = vmatpush3.bf16.msra.mxu1 %v1339_v45 }
 0x639   : > { %2442 = vmatprep.subr.bf16.mxu1 %v2594_v17 }
 0x63b   : > { %2431 = vmatmul.mubr.msk.bf16.vlgmr.msra.gmra.mrb[24].mxu1 %vm582_vm1, %v2965_v47 }
 0x63c   : > { %2443 = vmatpush3.bf16.msra.mxu1 %v2788_v46  ;;  %2446 = vmatprep.mubr.msk.bf16.mxu1 %vm2595_vm2, %v2594_v17  ;;  %v1335_v46 = vld [vmem:[%s3165_s13 + $0x30] sm:$0xff] }
 0x63d   : > { %v1449_v35 = vpop.xlane.xlu0 %1448  ;;  %2444 = vmatprep.subr.bf16.mxu1 %v2594_v17 }
 0x63e   : > { %v1450_v37 = vmul.f32 0.03125, %v1449_v35 }
 0x640   : > { %v1451_v38 = vsub.f32 %v669_v11, %v1450_v37  ;;  %2445 = vmatpush3.bf16.msra.mxu1 %v2800_v50  ;;  %v1336_v50 = vld [vmem:[%s3165_s13 + $0x38] sm:$0xff] }
 0x641   : > { %2456 = vmatprep.subr.bf16.mxu1 %v2594_v17  ;;  %v1342_v52 = vpack.c.bf16 %v1336_v50, %v1335_v46 }
 0x642   : > { %v1452_v39 = vmul.f32 %v1451_v38, %v1451_v38 }
 0x643   : > { %2421 = vmatpush3.bf16.msra.mxu0 %v1342_v52 }
 0x644   : > { %v1453_v40 = vsel %vm671_vm0, %v1452_v39, 0.0  ;;  %2434 = vmatprep.subr.bf16.mxu0 %v2594_v17 }
 0x645   : > { %1454 = vadd.xlane.f32.xlu1 %v1453_v40 }
 0x6d2   : > { %v1455_v53 = vpop.xlane.xlu1 %1454 }
 0x6d3   : > { %v1456_v54 = vmul.f32 0.03125, %v1455_v53 }
 0x6d5   : > { %v1457_v55 = vadd.f32 1e-05, %v1456_v54 }
 0x6d7   : > { %2559 = vrsqrt.f32 %v1457_v55 }
 0x6e1   : > { %v2560_v56 = vpop.eup %2559 }
 0x6e2   : > { %v1459_v57 = vmul.f32 %v2560_v56, %v1451_v38 }
 0x6e4   : > { %v1460_v58 = vmul.f32 %v2770_v34, %v1459_v57 }
 0x6e6   : > { %v1461_v59 = vadd.f32 %v2775_v36, %v1460_v58 }
 0x6e8   : > { %v1462_v60 = vpack.c.bf16 %v1461_v59, %v1461_v59 }
 0x6ea   : > { %2447 = vmatmul.mubr.msk.bf16.vlgmr.msra.gmra.mrb[28].mxu1 %vm582_vm1, %v1462_v60 }
 0x6eb   : > { %2458 = vmatprep.mubr.msk.bf16.mxu1 %vm2595_vm2, %v2594_v17 }
 0x706   : > { %v1323_v63 = vpop.f32.mrb[20].mxu1 }
 0x707   : > { %v3001_v1 = vadd.f32 %v2998_v61, %v1323_v63  ;;  %v2416_v4 = vpop.f32.mrb[21].mxu1 }
 0x708   : > { %v1326_v5 = vpop.f32.mrb[22].mxu1 }
 0x709   : > { %v1340_v34 = vpack.c.bf16 %v3001_v1, %v3001_v1  ;;  %v2417_v36 = vpop.f32.mrb[23].mxu1 }
 0x70b   : > { %2423 = vmatmul.mubr.msk.bf16.vlgmr.msra.gmra.mrb[24].mxu0 %vm582_vm1, %v1340_v34 }
 0x70c   : > { %2435 = vmatpush3.bf16.msra.mxu0 %v2737_v18  ;;  %2438 = vmatprep.mubr.msk.bf16.mxu0 %vm2595_vm2, %v2594_v17 }
 0x70d   : > { %2436 = vmatprep.subr.bf16.mxu0 %v2594_v17 }
 0x70e   : > { %v1423_v6 = vpop.f32.mrb[24].mxu1 }
 0x70f   : > { %v2432_v7 = vpop.f32.mrb[25].mxu1 }
 0x710   : > { %2437 = vmatpush3.bf16.msra.mxu0 %v2754_v23  ;;  %v1426_v9 = vpop.f32.mrb[26].mxu1 }
 0x711   : > { %2450 = vmatprep.subr.bf16.mxu0 %v2594_v17  ;;  %v2433_v10 = vpop.f32.mrb[27].mxu1 }
 0x713   : > { %2439 = vmatmul.mubr.msk.bf16.vlgmr.msra.gmra.mrb[28].mxu0 %vm582_vm1, %v1462_v60 }
 0x714   : > { %2452 = vmatprep.mubr.msk.bf16.mxu0 %vm2595_vm2, %v2594_v17 }
 0x7bd   : > { %v1540_v11 = vpop.f32.mrb[28].mxu1 }
 0x7be   : > { %v1541_v18 = vadd.f32 %v2830_v3, %v1540_v11  ;;  %v2448_v12 = vpop.f32.mrb[29].mxu1 }
 0x7bf   : > { %v1543_v14 = vpop.f32.mrb[30].mxu1 }
 0x7c0   : > { %v3016_v15 = vpack.c.bf16 %v1541_v18, %v1541_v18  ;;  %v2449_v20 = vpop.f32.mrb[31].mxu1 }
 0x7c2   : > { %v1609_v23 = vsel %vm872_vm4, %v3016_v15, 0 }
 0x7c3   : > { %2457 = vmatpush3.bf16.msra.mxu1 %v1609_v23 }
 0x7c4   : > { %2468 = vmatprep.subr.bf16.mxu1 %v2594_v17 }
 0x7de   : > { %v1380_v22 = vpop.f32.mrb[24].mxu0 }
 0x7df   : > { %v3021_v24 = vadd.f32 %v1423_v6, %v1380_v22  ;;  %v2424_v25 = vpop.f32.mrb[25].mxu0 }
 0x7e0   : > { %v1383_v26 = vpop.f32.mrb[26].mxu0 }
 0x7e1   : > { %v2425_v27 = vpop.f32.mrb[27].mxu0 }
 0x7e6   : > { %v1500_v28 = vpop.f32.mrb[28].mxu0 }
 0x7e7   : > { %v1501_v3 = vadd.f32 %v2813_v51, %v1500_v28  ;;  %v2440_v30 = vpop.f32.mrb[29].mxu0 }
 0x7e8   : > { %v1503_v31 = vpop.f32.mrb[30].mxu0 }
 0x7e9   : > { %v1546_v32 = vpack.c.bf16 %v1501_v3, %v1501_v3  ;;  %v2441_v33 = vpop.f32.mrb[31].mxu0 }
 0x7eb   : > { %1760 = vrot.lane.b32.xlu1 %v1546_v32, %s2598_s29  ;;  %1652 = vrot.lane.b32.xlu0 %v1546_v32, %s2596_s23  ;;  %v1548_v35 = vsel %vm799_vm3, %v1546_v32, 0 }
 0x7ec   : > { %2451 = vmatpush3.bf16.xpose.msra.mxu0 %v1548_v35 }
 0x7ed   : > { %2462 = vmatprep.subr.bf16.mxu0 %v2594_v17 }
 0x7ef   : > { %1867 = vrot.lane.b32.xlu0 %v1546_v32, %s2597_s26 }
 0x7f3   : > { %2453 = vmatmul.mubr.msk.bf16.vlgmr.msra.gmra.mrb[32].mxu0 %vm799_vm3, %v2821_v0 }
 0x7f4   : > { %2464 = vmatprep.mubr.msk.bf16.mxu0 %vm2595_vm2, %v2594_v17 }
 0x85d   : > { %v1653_v51 = vpop.permute.xlu0 %1652  ;;  %v1761_v38 = vpop.permute.xlu1 %1760 }
 0x85e   : > { %v1655_v37 = vsel %vm799_vm3, %v1653_v51, 0  ;;  %v1763_v39 = vsel %vm799_vm3, %v1761_v38, 0 }
 0x85f   : > { %2463 = vmatpush3.bf16.xpose.msra.mxu0 %v1655_v37 }
 0x860   : > { %2474 = vmatprep.subr.bf16.mxu0 %v2594_v17 }
 0x861   : > { %v1868_v0 = vpop.permute.xlu0 %1867 }
 0x862   : > { %v1870_v40 = vsel %vm799_vm3, %v1868_v0, 0 }
 0x866   : > { %2465 = vmatmul.mubr.msk.bf16.vlgmr.msra.gmra.mrb[36].mxu0 %vm799_vm3, %v2849_v13 }
 0x867   : > { %2475 = vmatpush3.bf16.xpose.msra.mxu0 %v1763_v39  ;;  %2476 = vmatprep.mubr.msk.bf16.mxu0 %vm2595_vm2, %v2594_v17 }
 0x868   : > { %2486 = vmatprep.subr.bf16.mxu0 %v2594_v17 }
 0x86e   : > { %2477 = vmatmul.mubr.msk.bf16.vlgmr.msra.gmra.mrb[40].mxu0 %vm799_vm3, %v2857_v19 }
 0x86f   : > { %2487 = vmatpush3.bf16.xpose.msra.mxu0 %v1870_v40  ;;  %2488 = vmatprep.mubr.msk.bf16.mxu0 %vm2595_vm2, %v2594_v17 }
 0x870   : > { %2498 = vmatprep.subr.bf16.mxu0 %v2594_v17 }
 0x876   : > { %2489 = vmatmul.mubr.msk.bf16.vlgmr.msra.gmra.mrb[44].mxu0 %vm799_vm3, %v2865_v21 }
 0x877   : > { %2499 = vmatpush3.bf16.msra.mxu0 %v2924_v62  ;;  %2502 = vmatprep.mubr.msk.bf16.mxu0 %vm2595_vm2, %v2594_v17 }
 0x878   : > { %2500 = vmatprep.subr.bf16.mxu0 %v2594_v17 }
 0x87b   : > { %2501 = vmatpush3.bf16.msra.mxu0 %v2938_v16 }
 0x87c   : > { %2514 = vmatprep.subr.bf16.mxu0 %v2594_v17 }
 0x8c6   : > { %v1584_v13 = vpop.f32.mrb[32].mxu0 }
 0x8c7   : > { %v1590_v19 = vmul.f32 0.35355338, %v1584_v13  ;;  %v2454_v41 = vpop.f32.mrb[33].mxu0 }
 0x8c8   : > { %v1587_v42 = vpop.f32.mrb[34].mxu0 }
 0x8c9   : > { %v2455_v43 = vpop.f32.mrb[35].mxu0  ;;  %v1591_v44 = vsel %vm853_vm6, -10000.0, %v1590_v19 }
 0x8ca   : > { %v1592_v21 = vsel %vm855_vm7, %v1591_v44, -inf }
 0x8cb   : > { %1593 = vmax.xlane.f32.xlu1 %v1592_v21 }
 0x939   : > { %v1691_v62 = vpop.f32.mrb[36].mxu0 }
 0x93a   : > { %v1697_v8 = vmul.f32 0.35355338, %v1691_v62  ;;  %v2466_v45 = vpop.f32.mrb[37].mxu0 }
 0x93b   : > { %v1694_v2 = vpop.f32.mrb[38].mxu0 }
 0x93c   : > { %v2467_v48 = vpop.f32.mrb[39].mxu0  ;;  %v1698_v16 = vsel %vm853_vm6, -10000.0, %v1697_v8 }
 0x93d   : > { %v1699_v49 = vsel %vm855_vm7, %v1698_v16, -inf }
 0x93e   : > { %1700 = vmax.xlane.f32.xlu0 %v1699_v49 }
 0x941   : > { %v1799_v46 = vpop.f32.mrb[40].mxu0 }
 0x942   : > { %v1805_v50 = vmul.f32 0.35355338, %v1799_v46  ;;  %v2478_v52 = vpop.f32.mrb[41].mxu0 }
 0x943   : > { %v1802_v53 = vpop.f32.mrb[42].mxu0 }
 0x944   : > { %v2479_v54 = vpop.f32.mrb[43].mxu0  ;;  %v1806_v55 = vsel %vm853_vm6, -10000.0, %v1805_v50 }
 0x945   : > { %v1807_v56 = vsel %vm855_vm7, %v1806_v55, -inf }
 0x946   : > { %1808 = vmax.xlane.f32.xlu0 %v1807_v56  ;;  %v2038_v56 = vld [vmem:[%s3167_s15 + $0x28] sm:$0xff] }
 0x949   : > { %v1906_v57 = vpop.f32.mrb[44].mxu0 }
 0x94a   : > { %v1912_v58 = vmul.f32 0.35355338, %v1906_v57  ;;  %v2490_v59 = vpop.f32.mrb[45].mxu0 }
 0x94b   : > { %v1909_v60 = vpop.f32.mrb[46].mxu0 }
 0x94c   : > { %v2491_v63 = vpop.f32.mrb[47].mxu0  ;;  %v1913_v4 = vsel %vm853_vm6, -10000.0, %v1912_v58 }
 0x94d   : > { %v1914_v5 = vsel %vm855_vm7, %v1913_v4, -inf }
 0x94e   : > { %1915 = vmax.xlane.f32.xlu0 %v1914_v5 }
 0x958   : > { %v1594_v34 = vpop.xlane.xlu1 %1593 }
 0x959   : > { %v1595_v36 = vsub.f32 %v1591_v44, %v1594_v34 }
 0x95b   : > { %v1596_v6 = vmul.f32 1.442695, %v1595_v36 }
 0x95d   : > { %2561 = vpow2.f32 %v1596_v6 }
 0x967   : > { %v2562_v7 = vpop.eup %2561 }
 0x968   : > { %v1598_v9 = vsel %vm855_vm7, %v2562_v7, 0.0 }
 0x969   : > { %1599 = vadd.xlane.f32.xlu1 %v1598_v9  ;;  %v2033_v9 = vld [vmem:[%s3167_s15] sm:$0xff] }
 0x97a   : > { %1712 = vrot.lane.b32.xlu1 %v3016_v15, %s2596_s23 }
 0x9cb   : > { %v1701_v10 = vpop.xlane.xlu0 %1700 }
 0x9cc   : > { %v1702_v11 = vsub.f32 %v1698_v16, %v1701_v10  ;;  %v2034_v10 = vld [vmem:[%s3167_s15 + $0x8] sm:$0xff] }
 0x9ce   : > { %v1703_v18 = vmul.f32 1.442695, %v1702_v11 }
 0x9d0   : > { %2563 = vpow2.f32 %v1703_v18 }
 0x9d3   : > { %v1809_v29 = vpop.xlane.xlu0 %1808 }
 0x9d4   : > { %v1810_v12 = vsub.f32 %v1806_v55, %v1809_v29  ;;  %v2037_v55 = vld [vmem:[%s3167_s15 + $0x20] sm:$0xff] }
 0x9d5   : > { %v2044_v58 = vpack.c.bf16 %v2038_v56, %v2037_v55 }
 0x9d6   : > { %v1811_v14 = vmul.f32 1.442695, %v1810_v12 }
 0x9d8   : > { %2565 = vpow2.f32 %v1811_v14  ;;  %v2041_v14 = vpack.c.bf16 %v2034_v10, %v2033_v9 }
 0x9da   : > { %v2564_v20 = vpop.eup %2563 }
 0x9db   : > { %v1916_v23 = vpop.xlane.xlu0 %1915  ;;  %v1705_v22 = vsel %vm855_vm7, %v2564_v20, 0.0 }
 0x9dc   : > { %v1917_v25 = vsub.f32 %v1913_v4, %v1916_v23  ;;  %1706 = vadd.xlane.f32.xlu0 %v1705_v22  ;;  %v2035_v23 = vld [vmem:[%s3167_s15 + $0x10] sm:$0xff]  ;;  %v2036_v22 = vld [vmem:[%s3167_s15 + $0x18] sm:$0xff] }
 0x9de   : > { %v1918_v26 = vmul.f32 1.442695, %v1917_v25  ;;  %v2042_v25 = vpack.c.bf16 %v2036_v22, %v2035_v23 }
 0x9e0   : > { %2567 = vpow2.f32 %v1918_v26  ;;  %v2039_v26 = vld [vmem:[%s3167_s15 + $0x30] sm:$0xff] }
 0x9e2   : > { %v2566_v27 = vpop.eup %2565 }
 0x9e3   : > { %v1813_v28 = vsel %vm855_vm7, %v2566_v27, 0.0 }
 0x9e4   : > { %1814 = vadd.xlane.f32.xlu1 %v1813_v28 }
 0x9ea   : > { %v2568_v3 = vpop.eup %2567 }
 0x9eb   : > { %v1920_v30 = vsel %vm855_vm7, %v2568_v3, 0.0 }
 0x9ec   : > { %1921 = vadd.xlane.f32.xlu0 %v1920_v30 }
 0x9f5   : > { %1926 = vrot.lane.b32.xlu1 %v3016_v15, %s2597_s26  ;;  %s577_s26 = scalar_lea.vmem %s3169_s17, %s3179_s30 }
 0x9f6   : > { %v1600_v31 = vpop.xlane.xlu1 %1599 }
 0x9f7   : > { %2569 = vrcp.f32 %v1600_v31 }
 0x9fa   : > { %v1713_v35 = vpop.permute.xlu1 %1712 }
 0x9fb   : > { %v1718_v37 = vsel %vm872_vm4, %v1713_v35, 0 }
 0xa01   : > { %v2570_v32 = vpop.eup %2569 }
 0xa02   : > { %v1602_v33 = vmul.f32 %v2570_v32, %v2562_v7  ;;  %1819 = vrot.lane.b32.xlu0 %v3016_v15, %s2598_s29 }
 0xa04   : > { %v1603_v51 = vpack.c.bf16 %v1602_v33, %v1602_v33 }
 0xa06   : > { %2459 = vmatmul.mubr.msk.bf16.vlgmr.msra.gmra.mrb[32].mxu1 %vm855_vm7, %v1603_v51 }
 0xa07   : > { %2469 = vmatpush3.bf16.msra.mxu1 %v1718_v37  ;;  %2470 = vmatprep.mubr.msk.bf16.mxu1 %vm2595_vm2, %v2594_v17 }
 0xa08   : > { %2480 = vmatprep.subr.bf16.mxu1 %v2594_v17 }
 0xa69   : > { %v1707_v38 = vpop.xlane.xlu0 %1706 }
 0xa6a   : > { %2571 = vrcp.f32 %v1707_v38 }
 0xa71   : > { %v1815_v39 = vpop.xlane.xlu1 %1814 }
 0xa72   : > { %2573 = vrcp.f32 %v1815_v39  ;;  %v2253_v39 = vld [vmem:[%s3166_s14] ss:$0 sm:$0xff] }
 0xa74   : > { %v2572_v0 = vpop.eup %2571 }
 0xa75   : > { %v1709_v40 = vmul.f32 %v2572_v0, %v2564_v20  ;;  %v1927_v44 = vpop.permute.xlu1 %1926  ;;  %v1436_v0 = vadd.f32 %v2253_v39, %v3021_v24 }
 0xa76   : > { %v1932_v62 = vsel %vm872_vm4, %v1927_v44, 0 }
 0xa77   : > { %v1710_v13 = vpack.c.bf16 %v1709_v40, %v1709_v40 }
 0xa79   : > { %2471 = vmatmul.mubr.msk.bf16.vlgmr.msra.gmra.mrb[36].mxu1 %vm855_vm7, %v1710_v13  ;;  %v1922_v15 = vpop.xlane.xlu0 %1921 }
 0xa7a   : > { %2575 = vrcp.f32 %v1922_v15  ;;  %2482 = vmatprep.mubr.msk.bf16.mxu1 %vm2595_vm2, %v2594_v17 }
 0xa7c   : > { %v2574_v19 = vpop.eup %2573 }
 0xa7d   : > { %v1817_v41 = vmul.f32 %v2574_v19, %v2566_v27  ;;  %v1820_v42 = vpop.permute.xlu0 %1819  ;;  %v2040_v27 = vld [vmem:[%s3167_s15 + $0x38] sm:$0xff] }
 0xa7e   : > { %v1825_v43 = vsel %vm872_vm4, %v1820_v42, 0  ;;  %v2045_v28 = vpack.c.bf16 %v2040_v27, %v2039_v26 }
 0xa7f   : > { %2481 = vmatpush3.bf16.msra.mxu1 %v1825_v43  ;;  %v1818_v21 = vpack.c.bf16 %v1817_v41, %v1817_v41 }
 0xa80   : > { %2492 = vmatprep.subr.bf16.mxu1 %v2594_v17 }
 0xa82   : > { %2483 = vmatmul.mubr.msk.bf16.vlgmr.msra.gmra.mrb[40].mxu1 %vm855_vm7, %v1818_v21 }
 0xa83   : > { %2493 = vmatpush3.bf16.msra.mxu1 %v1932_v62  ;;  %2494 = vmatprep.mubr.msk.bf16.mxu1 %vm2595_vm2, %v2594_v17 }
 0xa84   : > { %v2576_v8 = vpop.eup %2575  ;;  %2506 = vmatprep.subr.bf16.mxu1 %v2594_v17 }
 0xa85   : > { %v1924_v45 = vmul.f32 %v2576_v8, %v2568_v3 }
 0xa87   : > { %v1925_v2 = vpack.c.bf16 %v1924_v45, %v1924_v45 }
 0xa8a   : > { %2495 = vmatmul.mubr.msk.bf16.vlgmr.msra.gmra.mrb[44].mxu1 %vm855_vm7, %v1925_v2 }
 0xa8b   : > { %2510 = vmatprep.mubr.msk.bf16.mxu1 %vm2595_vm2, %v2594_v17  ;;  %2507 = vmatpush3.bf16.msra.mxu1 %v2044_v58 }
 0xa8c   : > { %2508 = vmatprep.subr.bf16.mxu1 %v2594_v17 }
 0xa8f   : > { %2509 = vmatpush3.bf16.msra.mxu1 %v2045_v28 }
 0xad9   : > { %v1645_v48 = vpop.f32.mrb[32].mxu1 }
 0xada   : > { %v2460_v16 = vpop.f32.mrb[33].mxu1 }
 0xadb   : > { %v1648_v49 = vpop.f32.mrb[34].mxu1 }
 0xadc   : > { %v2461_v46 = vpop.f32.mrb[35].mxu1  ;;  %v2585_v49 = vld [vmem:[%s2716_s20] sm:$0xff] }
 0xb4c   : > { %v1754_v50 = vpop.f32.mrb[36].mxu1 }
 0xb4d   : > { %1975 = vrot.lane.b32.xlu1 %v1754_v50, %s2600_s18  ;;  %v2472_v52 = vpop.f32.mrb[37].mxu1  ;;  %s3178_s18 = smov 24  }
 0xb4e   : > { %v1757_v53 = vpop.f32.mrb[38].mxu1 }
 0xb4f   : > { %v2473_v54 = vpop.f32.mrb[39].mxu1 }
 0xb55   : > { %v1861_v57 = vpop.f32.mrb[40].mxu1 }
 0xb56   : > { %1979 = vrot.lane.b32.xlu1 %v1861_v57, %s3177_s0  ;;  %v2484_v59 = vpop.f32.mrb[41].mxu1 }
 0xb57   : > { %v1864_v60 = vpop.f32.mrb[42].mxu1 }
 0xb58   : > { %v2485_v63 = vpop.f32.mrb[43].mxu1 }
 0xb5d   : > { %v1968_v4 = vpop.f32.mrb[44].mxu1 }
 0xb5e   : > { %1983 = vrot.lane.b32.xlu0 %v1968_v4, %s3178_s18  ;;  %v2496_v5 = vpop.f32.mrb[45].mxu1 }
 0xb5f   : > { %v1971_v34 = vpop.f32.mrb[46].mxu1 }
 0xb60   : > { %v2497_v36 = vpop.f32.mrb[47].mxu1 }
 0xbbf   : > { %v1976_v6 = vpop.permute.xlu1 %1975 }
 0xbc0   : > { %v1986_v11 = vsel %vm799_vm3, %v1645_v48, %v1976_v6 }
 0xbc8   : > { %v1980_v7 = vpop.permute.xlu1 %1979 }
 0xbc9   : > { %v1987_v18 = vsel %vm1268_vm8, %v1986_v11, %v1980_v7 }
 0xbd0   : > { %v1984_v29 = vpop.permute.xlu0 %1983 }
 0xbd1   : > { %v1988_v12 = vsel %vm1270_vm9, %v1987_v18, %v1984_v29 }
 0xbd2   : > { %v1989_v20 = vpack.c.bf16 %v1988_v12, %v1988_v12 }
 0xbd4   : > { %2503 = vmatmul.mubr.msk.bf16.vlgmr.msra.gmra.mrb[48].mxu0 %vm582_vm1, %v1989_v20 }
 0xbd5   : > { %2515 = vmatpush3.bf16.msra.mxu0 %v2041_v14  ;;  %2518 = vmatprep.mubr.msk.bf16.mxu0 %vm2595_vm2, %v2594_v17 }
 0xbd6   : > { %2516 = vmatprep.subr.bf16.mxu0 %v2594_v17 }
 0xbd9   : > { %2517 = vmatpush3.bf16.msra.mxu0 %v2042_v25 }
 0xbdc   : > { %2519 = vmatmul.mubr.msk.bf16.vlgmr.msra.gmra.mrb[52].mxu0 %vm582_vm1, %v2965_v47  ;;  %v2254_v47 = vmul.f32 -1.442695, %v1436_v0 }
 0xbde   : > { %2577 = vpow2.f32 %v2254_v47 }
 0xbe8   : > { %v2578_v44 = vpop.eup %2577 }
 0xbe9   : > { %v1440_v21 = vadd.f32 1.0, %v2578_v44 }
 0xca7   : > { %v2027_v17 = vpop.f32.mrb[48].mxu0 }
 0xca8   : > { %v2028_v3 = vadd.f32 %v2998_v61, %v2027_v17  ;;  %v2504_v30 = vpop.f32.mrb[49].mxu0  ;;  %v2268_v61 = vld [vmem:[%s3168_s16] ss:$0 sm:$0xff] }
 0xca9   : > { %v2030_v31 = vpop.f32.mrb[50].mxu0 }
 0xcaa   : > { %v2043_v32 = vpack.c.bf16 %v2028_v3, %v2028_v3  ;;  %v2505_v33 = vpop.f32.mrb[51].mxu0 }
 0xcac   : > { %2511 = vmatmul.mubr.msk.bf16.vlgmr.msra.gmra.mrb[48].mxu1 %vm582_vm1, %v2043_v32 }
 0xcaf   : > { %v2123_v35 = vpop.f32.mrb[52].mxu0 }
 0xcb0   : > { %v2520_v51 = vpop.f32.mrb[53].mxu0 }
 0xcb1   : > { %v2126_v37 = vpop.f32.mrb[54].mxu0 }
 0xcb2   : > { %v2521_v38 = vpop.f32.mrb[55].mxu0 }
 0xd7f   : > { %v2083_v40 = vpop.f32.mrb[48].mxu1 }
 0xd80   : > { %v2124_v13 = vadd.f32 %v2123_v35, %v2083_v40  ;;  %v2512_v15 = vpop.f32.mrb[49].mxu1 }
 0xd81   : > { %v2086_v19 = vpop.f32.mrb[50].mxu1 }
 0xd82   : > { %v2136_v41 = vadd.f32 %v2268_v61, %v2124_v13  ;;  %v2513_v42 = vpop.f32.mrb[51].mxu1 }
 0xd84   : > { %v2269_v43 = vmul.f32 -1.442695, %v2136_v41 }
 0xd86   : > { %2579 = vpow2.f32 %v2269_v43 }
 0xd87   : > { %2581 = vrcp.f32 %v1440_v21 }
 0xd90   : > { %v2580_v24 = vpop.eup %2579 }
 0xd91   : > { %v2140_v62 = vadd.f32 1.0, %v2580_v24  ;;  %v2582_v8 = vpop.eup %2581 }
 0xd92   : > { %v1444_v45 = vsub.f32 1.0, %v2582_v8  ;;  %v1443_v46 = vmul.f32 %v2585_v49, %v2582_v8 }
 0xd93   : > { %2583 = vrcp.f32 %v2140_v62 }
 0xd94   : > { %v1445_v48 = vmul.f32 %v1444_v45, %v3001_v1 }
 0xd96   : > { %v1446_v53 = vadd.f32 %v1445_v48, %v1443_v46 }
 0xd9d   : > { %v2584_v2 = vpop.eup %2583 }
 0xd9e   : > { %v2144_v16 = vsub.f32 1.0, %v2584_v2  ;;  %v2143_v50 = vmul.f32 %v2585_v49, %v2584_v2 }
 0xda0   : > { %v2145_v52 = vmul.f32 %v2144_v16, %v2028_v3 }
 0xda2   : > { %v2146_v54 = vadd.f32 %v2145_v52, %v2143_v50 }
 0xda4   : > { %v2147_v55 = vadd.f32 %v2146_v54, %v1446_v53 }
 0xda6   : > { %v2148_v56 = vmul.f32 0.70710677, %v2147_v55 }
 0xda8   : > { %2149 = vst.msk [vmem:[%s577_s26] sm:$0xff] %vm582_vm1, %v2148_v56 }
 0xda9 PF: > { %s27_s24 = sadd.s32 1, %s2592_s24  }
 0xdaa   : > { %p24_p4 = scmp.ge.s32.totalorder %s27_s24, 4  }
 0xdac   :  { %26 = sbr.rel (!%p24_p4) target bundleno = 3 (0x3), region = 124 }

</bundles_post_ra>
